<compile_context>
chip_gen: v7x
topology: tpu7x:2x2x1
jax: 0.10.0
libtpu: 0.0.40
codegen_flags: <defaults>
</compile_context>

<pallas_src>
import jax
import jax.numpy as jnp
from jax import lax
from jax.experimental import pallas as pl
from jax.experimental.pallas import tpu as pltpu

HIDDEN_SIZE = 128
INPUT_SIZE = 28
NUM_CLASSES = 10
NUM_LAYERS = 2  # hard-wired to 2 in the kernel below


def _lstm_fc_kernel(x_ref,            # (T, Bt, In)   f32
                    wih1_ref,          # (In, 4H)      bf16
                    whh1_ref,          # (H, 4H)       bf16
                    b1_ref,            # (1, 4H)       f32   (b_ih + b_hh, layer 1)
                    wih2_ref,          # (H, 4H)       bf16
                    whh2_ref,          # (H, 4H)       bf16
                    b2_ref,            # (1, 4H)       f32   (b_ih + b_hh, layer 2)
                    wfc_ref,           # (H, C)        bf16
                    bfc_ref,           # (1, C)        f32
                    out_ref,           # (Bt, C)       f32
                    gates1_ref):       # scratch VMEM (T, Bt, 4H) f32
    T, Bt, In = x_ref.shape
    H = whh1_ref.shape[0]

    # ---- hoisted layer-1 input projection: one matmul over all timesteps ----
    x_flat = x_ref[...].reshape(T * Bt, In).astype(jnp.bfloat16)
    g1_all = (jnp.dot(x_flat, wih1_ref[...], preferred_element_type=jnp.float32)
              + b1_ref[...])                                    # (T*Bt, 4H) f32
    gates1_ref[...] = g1_all.reshape(T, Bt, 4 * H)

    whh1 = whh1_ref[...]   # bf16 (H, 4H)
    wih2 = wih2_ref[...]   # bf16 (H, 4H)
    whh2 = whh2_ref[...]   # bf16 (H, 4H)
    # Hoist the (1,4H) -> (Bt,4H) bias broadcast out of the unrolled loop.
    b2_full = jnp.broadcast_to(b2_ref[...], (Bt, 4 * H))        # f32

    def sig(v):
        # sigmoid via tanh: single EUP push per gate; mul/add go to the VALU.
        return 0.5 * jnp.tanh(0.5 * v) + 0.5

    def gate_math(g, c):
        # gate slices are lane-aligned (multiples of H=128 on the lane axis)
        i = sig(g[:, 0 * H:1 * H])
        f = sig(g[:, 1 * H:2 * H])
        gg = jnp.tanh(g[:, 2 * H:3 * H])
        o = sig(g[:, 3 * H:4 * H])
        c_new = f * c + i * gg                 # f32 cell-state math
        h_new = o * jnp.tanh(c_new)
        return h_new, c_new

    zeros = jnp.zeros((Bt, H), jnp.float32)

    def step(t, carry):
        h1, c1, h2, c2 = carry
        # layer-2 recurrent half: depends only on h2(t-1), so it sits OFF the
        # layer-1 critical chain of this step and can overlap with it.
        g2_rec = jnp.dot(h2.astype(jnp.bfloat16), whh2,
                         preferred_element_type=jnp.float32)
        # layer 1: only the recurrent matmul is in the dependency chain
        g1 = gates1_ref[t] + jnp.dot(h1.astype(jnp.bfloat16), whh1,
                                     preferred_element_type=jnp.float32)
        h1, c1 = gate_math(g1, c1)
        # layer-2 input half (needs the fresh h1)
        g2 = (g2_rec
              + jnp.dot(h1.astype(jnp.bfloat16), wih2,
                        preferred_element_type=jnp.float32)
              + b2_full)
        h2, c2 = gate_math(g2, c2)
        return (h1, c1, h2, c2)

    _, _, h2, _ = lax.fori_loop(0, T, step, (zeros, zeros, zeros, zeros),
                                unroll=True)

    # fc on the last timestep's top-layer hidden state (bf16 operands, f32 accum)
    out_ref[...] = (jnp.dot(h2.astype(jnp.bfloat16), wfc_ref[...],
                            preferred_element_type=jnp.float32)
                    + bfc_ref[...]).astype(out_ref.dtype)


def _round_up(v, m):
    return ((v + m - 1) // m) * m


def rnn_forward(x, params):
    """x: (B, T, INPUT_SIZE) float32. params: dict of pre-transposed f32 weights."""
    B, T, In = x.shape
    H, C = HIDDEN_SIZE, NUM_CLASSES

    # Weight prep (once per call, cheap XLA ops): bf16 MXU operands, layer-2 kept un-fused.
    wih1 = params["wih1_t"].astype(jnp.bfloat16)                       # (In, 4H)
    whh1 = params["whh1_t"].astype(jnp.bfloat16)                       # (H, 4H)
    wih2 = params["wih2_t"].astype(jnp.bfloat16)                       # (H, 4H)
    whh2 = params["whh2_t"].astype(jnp.bfloat16)                       # (H, 4H)
    b1, b2 = params["b1"], params["b2"]                                # f32
    wfc = params["wfc_t"].astype(jnp.bfloat16)                         # (H, C) bf16
    bfc = params["bfc"]                                                # f32

    # Batch padding / tiling: guarantee >= 2 grid points whenever B >= 16 so the
    # "parallel" batch axis occupies both TensorCores on v7x.  Tiles are multiples of
    # 16 (sublane friendly) and capped at 128 (v5e MXU granularity; VMEM is nowhere
    # near any limit at this size: ~3 MiB/tile at Bt=128).
    b_pad0 = _round_up(B, 8)
    if b_pad0 >= 16:
        b_tile = min(_round_up((b_pad0 + 1) // 2, 16), 128)
    else:
        b_tile = b_pad0          # single tile; block dims equal full array dims
    b_pad = _round_up(b_pad0, b_tile)

    x_p = jnp.pad(x, ((0, b_pad - B), (0, 0), (0, 0)))
    x_tbi = jnp.transpose(x_p, (1, 0, 2))                              # (T, B_pad, In)

    out = pl.pallas_call(
        _lstm_fc_kernel,
        out_shape=jax.ShapeDtypeStruct((b_pad, C), jnp.float32),
        grid=(b_pad // b_tile,),
        in_specs=[
            pl.BlockSpec((T, b_tile, In), lambda b: (0, b, 0)),
            pl.BlockSpec(wih1.shape, lambda b: (0, 0)),
            pl.BlockSpec(whh1.shape, lambda b: (0, 0)),
            pl.BlockSpec(b1.shape, lambda b: (0, 0)),
            pl.BlockSpec(wih2.shape, lambda b: (0, 0)),
            pl.BlockSpec(whh2.shape, lambda b: (0, 0)),
            pl.BlockSpec(b2.shape, lambda b: (0, 0)),
            pl.BlockSpec(wfc.shape, lambda b: (0, 0)),
            pl.BlockSpec(bfc.shape, lambda b: (0, 0)),
        ],
        out_specs=pl.BlockSpec((b_tile, C), lambda b: (b, 0)),
        scratch_shapes=[pltpu.VMEM((T, b_tile, 4 * H), jnp.float32)],
        compiler_params=pltpu.CompilerParams(dimension_semantics=("parallel",)),
    )(x_tbi, wih1, whh1, b1, wih2, whh2, b2, wfc, bfc)

    return out[:B]


def init_params(key):
    """Deterministic init mirroring PyTorch shapes; uniform(-1/sqrt(H), 1/sqrt(H))."""
    H, In, C = HIDDEN_SIZE, INPUT_SIZE, NUM_CLASSES
    k = 1.0 / jnp.sqrt(jnp.float32(H))
    keys = jax.random.split(key, 12)

    def u(kk, shape):
        return jax.random.uniform(kk, shape, jnp.float32, -k, k)

    # layer 0
    w_ih0 = u(keys[0], (4 * H, In))
    w_hh0 = u(keys[1], (4 * H, H))
    b_ih0 = u(keys[2], (4 * H,))
    b_hh0 = u(keys[3], (4 * H,))
    # layer 1
    w_ih1 = u(keys[4], (4 * H, H))
    w_hh1 = u(keys[5], (4 * H, H))
    b_ih1 = u(keys[6], (4 * H,))
    b_hh1 = u(keys[7], (4 * H,))
    # fc
    kfc = 1.0 / jnp.sqrt(jnp.float32(H))
    w_fc = jax.random.uniform(keys[8], (C, H), jnp.float32, -kfc, kfc)
    b_fc = jax.random.uniform(keys[9], (C,), jnp.float32, -kfc, kfc)

    return {
        "wih1_t": w_ih0.T, "whh1_t": w_hh0.T, "b1": (b_ih0 + b_hh0)[None, :],
        "wih2_t": w_ih1.T, "whh2_t": w_hh1.T, "b2": (b_ih1 + b_hh1)[None, :],
        "wfc_t": w_fc.T, "bfc": b_fc[None, :],
    }


def reference_forward(x, params, matmul_dtype=jnp.float32):
    """Pure-JAX reference of nn.LSTM(2, batch_first) + Linear on the last step.
    matmul_dtype=bfloat16 mirrors the kernel's bf16 MXU operands."""
    B, T, _ = x.shape
    H = HIDDEN_SIZE
    md = matmul_dtype
    wih1 = params["wih1_t"].astype(md)
    whh1 = params["whh1_t"].astype(md)
    wih2 = params["wih2_t"].astype(md)
    whh2 = params["whh2_t"].astype(md)
    wfc = params["wfc_t"].astype(md)

    def cell(x_t, h, c, wih, whh, b):
        g = (jnp.dot(x_t.astype(md), wih, preferred_element_type=jnp.float32)
             + jnp.dot(h.astype(md), whh, preferred_element_type=jnp.float32)
             + b)
        i = jax.nn.sigmoid(g[:, :H]); f = jax.nn.sigmoid(g[:, H:2 * H])
        gg = jnp.tanh(g[:, 2 * H:3 * H]); o = jax.nn.sigmoid(g[:, 3 * H:])
        c = f * c + i * gg
        return o * jnp.tanh(c), c

    h1 = c1 = h2 = c2 = jnp.zeros((B, H), jnp.float32)
    for t in range(T):
        h1, c1 = cell(x[:, t, :], h1, c1, wih1, whh1, params["b1"])
        h2, c2 = cell(h1, h2, c2, wih2, whh2, params["b2"])
    return (jnp.dot(h2.astype(md), wfc, preferred_element_type=jnp.float32)
            + params["bfc"])


if __name__ == "__main__":
    key = jax.random.PRNGKey(0)
    kx, kp = jax.random.split(key)

    batch, seq = 2, 8
    x = jax.random.normal(kx, (batch, seq, INPUT_SIZE), jnp.float32)
    params = init_params(kp)

    out = jax.block_until_ready(rnn_forward(x, params))
    assert out.shape == (batch, NUM_CLASSES)

    # Tight check vs. a reference that uses the same bf16 matmul operands.
    ref_bf16 = reference_forward(x, params, matmul_dtype=jnp.bfloat16)
    assert jnp.allclose(out, ref_bf16, atol=2e-3, rtol=2e-3), "mismatch vs bf16-matched reference"

    # Semantics check vs. the full-f32 module math (loose tol absorbs bf16 MXU rounding).
    ref_f32 = reference_forward(x, params, matmul_dtype=jnp.float32)
    assert jnp.allclose(out, ref_f32, atol=5e-2, rtol=5e-2), "mismatch vs f32 reference"

    print("KERNEL_OK")
</pallas_src>

<mosaic_0001>
module attributes {stable_mosaic.version = 11 : i64} {
  func.func @_lstm_fc_kernel(%arg0: i32, %arg1: memref<8x8x28xf32, #tpu.memory_space<vmem>>, %arg2: memref<28x512xbf16, #tpu.memory_space<vmem>>, %arg3: memref<128x512xbf16, #tpu.memory_space<vmem>>, %arg4: memref<1x512xf32, #tpu.memory_space<vmem>>, %arg5: memref<128x512xbf16, #tpu.memory_space<vmem>>, %arg6: memref<128x512xbf16, #tpu.memory_space<vmem>>, %arg7: memref<1x512xf32, #tpu.memory_space<vmem>>, %arg8: memref<128x10xbf16, #tpu.memory_space<vmem>>, %arg9: memref<1x10xf32, #tpu.memory_space<vmem>>, %arg10: memref<8x10xf32, #tpu.memory_space<vmem>>, %arg11: memref<8x8x512xf32, #tpu.memory_space<vmem>>) attributes {dimension_semantics = [#tpu.dimension_semantics<parallel>], iteration_bounds = array<i64: 1>, scalar_prefetch = 0 : i64, scratch_operands = 1 : i64, tpu.core_type = #tpu.core_type<tc>, window_params = [{transform_indices = @transform_0, window_bounds = array<i64: 8, 8, 28>}, {pipeline_mode = #tpu.pipeline_mode<synchronous>, transform_indices = @transform_1, window_bounds = array<i64: 28, 512>}, {pipeline_mode = #tpu.pipeline_mode<synchronous>, transform_indices = @transform_2, window_bounds = array<i64: 128, 512>}, {pipeline_mode = #tpu.pipeline_mode<synchronous>, transform_indices = @transform_3, window_bounds = array<i64: 1, 512>}, {pipeline_mode = #tpu.pipeline_mode<synchronous>, transform_indices = @transform_4, window_bounds = array<i64: 128, 512>}, {pipeline_mode = #tpu.pipeline_mode<synchronous>, transform_indices = @transform_5, window_bounds = array<i64: 128, 512>}, {pipeline_mode = #tpu.pipeline_mode<synchronous>, transform_indices = @transform_6, window_bounds = array<i64: 1, 512>}, {pipeline_mode = #tpu.pipeline_mode<synchronous>, transform_indices = @transform_7, window_bounds = array<i64: 128, 10>}, {pipeline_mode = #tpu.pipeline_mode<synchronous>, transform_indices = @transform_8, window_bounds = array<i64: 1, 10>}, {transform_indices = @transform_9, window_bounds = array<i64: 8, 10>}]} {
    %c0 = arith.constant 0 : index
    %c0_0 = arith.constant 0 : index
    %c0_1 = arith.constant 0 : index
    %0 = vector.load %arg1[%c0, %c0_0, %c0_1] : memref<8x8x28xf32, #tpu.memory_space<vmem>>, vector<8x8x28xf32>
    %1 = vector.shape_cast %0 : vector<8x8x28xf32> to vector<64x28xf32>
    %2 = arith.truncf %1 : vector<64x28xf32> to vector<64x28xbf16>
    %c0_2 = arith.constant 0 : index
    %c0_3 = arith.constant 0 : index
    %3 = vector.load %arg2[%c0_2, %c0_3] : memref<28x512xbf16, #tpu.memory_space<vmem>>, vector<28x512xbf16>
    %cst = arith.constant dense<0.000000e+00> : vector<64x512xf32>
    %4 = tpu.matmul %2, %3, %cst {dimension_numbers = #tpu.dot_dimension_numbers<[1], [0], [0], [1], [0, 0, 1, 1], [], []>} : vector<64x28xbf16>, vector<28x512xbf16>, vector<64x512xf32> -> vector<64x512xf32>
    %c0_4 = arith.constant 0 : index
    %c0_5 = arith.constant 0 : index
    %5 = vector.load %arg4[%c0_4, %c0_5] : memref<1x512xf32, #tpu.memory_space<vmem>>, vector<1x512xf32>
    %6 = vector.broadcast %5 : vector<1x512xf32> to vector<64x512xf32>
    %7 = arith.addf %4, %6 : vector<64x512xf32>
    %8 = vector.shape_cast %7 : vector<64x512xf32> to vector<8x8x512xf32>
    %c0_6 = arith.constant 0 : index
    %c0_7 = arith.constant 0 : index
    %c0_8 = arith.constant 0 : index
    %9 = vector.load %arg11[%c0_6, %c0_7, %c0_8] : memref<8x8x512xf32, #tpu.memory_space<vmem>>, vector<8x8x512xf32>
    tpu.vector_store %arg11[%c0_6, %c0_7, %c0_8], %8 {strides = array<i32>} : memref<8x8x512xf32, #tpu.memory_space<vmem>>, vector<8x8x512xf32>,
    %c0_9 = arith.constant 0 : index
    %c0_10 = arith.constant 0 : index
    %10 = vector.load %arg3[%c0_9, %c0_10] : memref<128x512xbf16, #tpu.memory_space<vmem>>, vector<128x512xbf16>
    %c0_11 = arith.constant 0 : index
    %c0_12 = arith.constant 0 : index
    %11 = vector.load %arg5[%c0_11, %c0_12] : memref<128x512xbf16, #tpu.memory_space<vmem>>, vector<128x512xbf16>
    %c0_13 = arith.constant 0 : index
    %c0_14 = arith.constant 0 : index
    %12 = vector.load %arg6[%c0_13, %c0_14] : memref<128x512xbf16, #tpu.memory_space<vmem>>, vector<128x512xbf16>
    %c0_15 = arith.constant 0 : index
    %c0_16 = arith.constant 0 : index
    %13 = vector.load %arg7[%c0_15, %c0_16] : memref<1x512xf32, #tpu.memory_space<vmem>>, vector<1x512xf32>
    %14 = vector.shape_cast %13 : vector<1x512xf32> to vector<1x512xf32>
    %15 = vector.broadcast %14 : vector<1x512xf32> to vector<8x512xf32>
    %cst_17 = arith.constant 0.000000e+00 : f32
    %16 = vector.broadcast %cst_17 : f32 to vector<8x128xf32>
    %c0_i32 = arith.constant 0 : i32
    %17 = arith.truncf %16 : vector<8x128xf32> to vector<8x128xbf16>
    %cst_18 = arith.constant dense<0.000000e+00> : vector<8x512xf32>
    %18 = tpu.matmul %17, %12, %cst_18 {dimension_numbers = #tpu.dot_dimension_numbers<[1], [0], [0], [1], [0, 0, 1, 1], [], []>} : vector<8x128xbf16>, vector<128x512xbf16>, vector<8x512xf32> -> vector<8x512xf32>
    %19 = arith.index_cast %c0_i32 : i32 to index
    %c0_19 = arith.constant 0 : index
    %c0_20 = arith.constant 0 : index
    %20 = vector.load %arg11[%19, %c0_19, %c0_20] : memref<8x8x512xf32, #tpu.memory_space<vmem>>, vector<1x8x512xf32>
    %21 = vector.shape_cast %20 : vector<1x8x512xf32> to vector<8x512xf32>
    %22 = arith.truncf %16 : vector<8x128xf32> to vector<8x128xbf16>
    %cst_21 = arith.constant dense<0.000000e+00> : vector<8x512xf32>
    %23 = tpu.matmul %22, %10, %cst_21 {dimension_numbers = #tpu.dot_dimension_numbers<[1], [0], [0], [1], [0, 0, 1, 1], [], []>} : vector<8x128xbf16>, vector<128x512xbf16>, vector<8x512xf32> -> vector<8x512xf32>
    %24 = arith.addf %21, %23 : vector<8x512xf32>
    %25 = vector.extract_strided_slice %24 {offsets = [0, 0], sizes = [8, 128], strides = [1, 1]} : vector<8x512xf32> to vector<8x128xf32>
    %cst_22 = arith.constant 5.000000e-01 : f32
    %26 = vector.broadcast %cst_22 : f32 to vector<8x128xf32>
    %27 = arith.mulf %26, %25 : vector<8x128xf32>
    %28 = math.tanh %27 : vector<8x128xf32>
    %cst_23 = arith.constant 5.000000e-01 : f32
    %29 = vector.broadcast %cst_23 : f32 to vector<8x128xf32>
    %30 = arith.mulf %29, %28 : vector<8x128xf32>
    %cst_24 = arith.constant 5.000000e-01 : f32
    %31 = vector.broadcast %cst_24 : f32 to vector<8x128xf32>
    %32 = arith.addf %30, %31 : vector<8x128xf32>
    %33 = vector.extract_strided_slice %24 {offsets = [0, 128], sizes = [8, 128], strides = [1, 1]} : vector<8x512xf32> to vector<8x128xf32>
    %cst_25 = arith.constant 5.000000e-01 : f32
    %34 = vector.broadcast %cst_25 : f32 to vector<8x128xf32>
    %35 = arith.mulf %34, %33 : vector<8x128xf32>
    %36 = math.tanh %35 : vector<8x128xf32>
    %cst_26 = arith.constant 5.000000e-01 : f32
    %37 = vector.broadcast %cst_26 : f32 to vector<8x128xf32>
    %38 = arith.mulf %37, %36 : vector<8x128xf32>
    %cst_27 = arith.constant 5.000000e-01 : f32
    %39 = vector.broadcast %cst_27 : f32 to vector<8x128xf32>
    %40 = arith.addf %38, %39 : vector<8x128xf32>
    %41 = vector.extract_strided_slice %24 {offsets = [0, 256], sizes = [8, 128], strides = [1, 1]} : vector<8x512xf32> to vector<8x128xf32>
    %42 = math.tanh %41 : vector<8x128xf32>
    %43 = vector.extract_strided_slice %24 {offsets = [0, 384], sizes = [8, 128], strides = [1, 1]} : vector<8x512xf32> to vector<8x128xf32>
    %cst_28 = arith.constant 5.000000e-01 : f32
    %44 = vector.broadcast %cst_28 : f32 to vector<8x128xf32>
    %45 = arith.mulf %44, %43 : vector<8x128xf32>
    %46 = math.tanh %45 : vector<8x128xf32>
    %cst_29 = arith.constant 5.000000e-01 : f32
    %47 = vector.broadcast %cst_29 : f32 to vector<8x128xf32>
    %48 = arith.mulf %47, %46 : vector<8x128xf32>
    %cst_30 = arith.constant 5.000000e-01 : f32
    %49 = vector.broadcast %cst_30 : f32 to vector<8x128xf32>
    %50 = arith.addf %48, %49 : vector<8x128xf32>
    %51 = arith.mulf %40, %16 : vector<8x128xf32>
    %52 = arith.mulf %32, %42 : vector<8x128xf32>
    %53 = arith.addf %51, %52 : vector<8x128xf32>
    %54 = math.tanh %53 : vector<8x128xf32>
    %55 = arith.mulf %50, %54 : vector<8x128xf32>
    %56 = arith.truncf %55 : vector<8x128xf32> to vector<8x128xbf16>
    %cst_31 = arith.constant dense<0.000000e+00> : vector<8x512xf32>
    %57 = tpu.matmul %56, %11, %cst_31 {dimension_numbers = #tpu.dot_dimension_numbers<[1], [0], [0], [1], [0, 0, 1, 1], [], []>} : vector<8x128xbf16>, vector<128x512xbf16>, vector<8x512xf32> -> vector<8x512xf32>
    %58 = arith.addf %18, %57 : vector<8x512xf32>
    %59 = arith.addf %58, %15 : vector<8x512xf32>
    %60 = vector.extract_strided_slice %59 {offsets = [0, 0], sizes = [8, 128], strides = [1, 1]} : vector<8x512xf32> to vector<8x128xf32>
    %cst_32 = arith.constant 5.000000e-01 : f32
    %61 = vector.broadcast %cst_32 : f32 to vector<8x128xf32>
    %62 = arith.mulf %61, %60 : vector<8x128xf32>
    %63 = math.tanh %62 : vector<8x128xf32>
    %cst_33 = arith.constant 5.000000e-01 : f32
    %64 = vector.broadcast %cst_33 : f32 to vector<8x128xf32>
    %65 = arith.mulf %64, %63 : vector<8x128xf32>
    %cst_34 = arith.constant 5.000000e-01 : f32
    %66 = vector.broadcast %cst_34 : f32 to vector<8x128xf32>
    %67 = arith.addf %65, %66 : vector<8x128xf32>
    %68 = vector.extract_strided_slice %59 {offsets = [0, 128], sizes = [8, 128], strides = [1, 1]} : vector<8x512xf32> to vector<8x128xf32>
    %cst_35 = arith.constant 5.000000e-01 : f32
    %69 = vector.broadcast %cst_35 : f32 to vector<8x128xf32>
    %70 = arith.mulf %69, %68 : vector<8x128xf32>
    %71 = math.tanh %70 : vector<8x128xf32>
    %cst_36 = arith.constant 5.000000e-01 : f32
    %72 = vector.broadcast %cst_36 : f32 to vector<8x128xf32>
    %73 = arith.mulf %72, %71 : vector<8x128xf32>
    %cst_37 = arith.constant 5.000000e-01 : f32
    %74 = vector.broadcast %cst_37 : f32 to vector<8x128xf32>
    %75 = arith.addf %73, %74 : vector<8x128xf32>
    %76 = vector.extract_strided_slice %59 {offsets = [0, 256], sizes = [8, 128], strides = [1, 1]} : vector<8x512xf32> to vector<8x128xf32>
    %77 = math.tanh %76 : vector<8x128xf32>
    %78 = vector.extract_strided_slice %59 {offsets = [0, 384], sizes = [8, 128], strides = [1, 1]} : vector<8x512xf32> to vector<8x128xf32>
    %cst_38 = arith.constant 5.000000e-01 : f32
    %79 = vector.broadcast %cst_38 : f32 to vector<8x128xf32>
    %80 = arith.mulf %79, %78 : vector<8x128xf32>
    %81 = math.tanh %80 : vector<8x128xf32>
    %cst_39 = arith.constant 5.000000e-01 : f32
    %82 = vector.broadcast %cst_39 : f32 to vector<8x128xf32>
    %83 = arith.mulf %82, %81 : vector<8x128xf32>
    %cst_40 = arith.constant 5.000000e-01 : f32
    %84 = vector.broadcast %cst_40 : f32 to vector<8x128xf32>
    %85 = arith.addf %83, %84 : vector<8x128xf32>
    %86 = arith.mulf %75, %16 : vector<8x128xf32>
    %87 = arith.mulf %67, %77 : vector<8x128xf32>
    %88 = arith.addf %86, %87 : vector<8x128xf32>
    %89 = math.tanh %88 : vector<8x128xf32>
    %90 = arith.mulf %85, %89 : vector<8x128xf32>
    %c1_i32 = arith.constant 1 : i32
    %91 = arith.truncf %90 : vector<8x128xf32> to vector<8x128xbf16>
    %cst_41 = arith.constant dense<0.000000e+00> : vector<8x512xf32>
    %92 = tpu.matmul %91, %12, %cst_41 {dimension_numbers = #tpu.dot_dimension_numbers<[1], [0], [0], [1], [0, 0, 1, 1], [], []>} : vector<8x128xbf16>, vector<128x512xbf16>, vector<8x512xf32> -> vector<8x512xf32>
    %93 = arith.index_cast %c1_i32 : i32 to index
    %c0_42 = arith.constant 0 : index
    %c0_43 = arith.constant 0 : index
    %94 = vector.load %arg11[%93, %c0_42, %c0_43] : memref<8x8x512xf32, #tpu.memory_space<vmem>>, vector<1x8x512xf32>
    %95 = vector.shape_cast %94 : vector<1x8x512xf32> to vector<8x512xf32>
    %96 = arith.truncf %55 : vector<8x128xf32> to vector<8x128xbf16>
    %cst_44 = arith.constant dense<0.000000e+00> : vector<8x512xf32>
    %97 = tpu.matmul %96, %10, %cst_44 {dimension_numbers = #tpu.dot_dimension_numbers<[1], [0], [0], [1], [0, 0, 1, 1], [], []>} : vector<8x128xbf16>, vector<128x512xbf16>, vector<8x512xf32> -> vector<8x512xf32>
    %98 = arith.addf %95, %97 : vector<8x512xf32>
    %99 = vector.extract_strided_slice %98 {offsets = [0, 0], sizes = [8, 128], strides = [1, 1]} : vector<8x512xf32> to vector<8x128xf32>
    %cst_45 = arith.constant 5.000000e-01 : f32
    %100 = vector.broadcast %cst_45 : f32 to vector<8x128xf32>
    %101 = arith.mulf %100, %99 : vector<8x128xf32>
    %102 = math.tanh %101 : vector<8x128xf32>
    %cst_46 = arith.constant 5.000000e-01 : f32
    %103 = vector.broadcast %cst_46 : f32 to vector<8x128xf32>
    %104 = arith.mulf %103, %102 : vector<8x128xf32>
    %cst_47 = arith.constant 5.000000e-01 : f32
    %105 = vector.broadcast %cst_47 : f32 to vector<8x128xf32>
    %106 = arith.addf %104, %105 : vector<8x128xf32>
    %107 = vector.extract_strided_slice %98 {offsets = [0, 128], sizes = [8, 128], strides = [1, 1]} : vector<8x512xf32> to vector<8x128xf32>
    %cst_48 = arith.constant 5.000000e-01 : f32
    %108 = vector.broadcast %cst_48 : f32 to vector<8x128xf32>
    %109 = arith.mulf %108, %107 : vector<8x128xf32>
    %110 = math.tanh %109 : vector<8x128xf32>
    %cst_49 = arith.constant 5.000000e-01 : f32
    %111 = vector.broadcast %cst_49 : f32 to vector<8x128xf32>
    %112 = arith.mulf %111, %110 : vector<8x128xf32>
    %cst_50 = arith.constant 5.000000e-01 : f32
    %113 = vector.broadcast %cst_50 : f32 to vector<8x128xf32>
    %114 = arith.addf %112, %113 : vector<8x128xf32>
    %115 = vector.extract_strided_slice %98 {offsets = [0, 256], sizes = [8, 128], strides = [1, 1]} : vector<8x512xf32> to vector<8x128xf32>
    %116 = math.tanh %115 : vector<8x128xf32>
    %117 = vector.extract_strided_slice %98 {offsets = [0, 384], sizes = [8, 128], strides = [1, 1]} : vector<8x512xf32> to vector<8x128xf32>
    %cst_51 = arith.constant 5.000000e-01 : f32
    %118 = vector.broadcast %cst_51 : f32 to vector<8x128xf32>
    %119 = arith.mulf %118, %117 : vector<8x128xf32>
    %120 = math.tanh %119 : vector<8x128xf32>
    %cst_52 = arith.constant 5.000000e-01 : f32
    %121 = vector.broadcast %cst_52 : f32 to vector<8x128xf32>
    %122 = arith.mulf %121, %120 : vector<8x128xf32>
    %cst_53 = arith.constant 5.000000e-01 : f32
    %123 = vector.broadcast %cst_53 : f32 to vector<8x128xf32>
    %124 = arith.addf %122, %123 : vector<8x128xf32>
    %125 = arith.mulf %114, %53 : vector<8x128xf32>
    %126 = arith.mulf %106, %116 : vector<8x128xf32>
    %127 = arith.addf %125, %126 : vector<8x128xf32>
    %128 = math.tanh %127 : vector<8x128xf32>
    %129 = arith.mulf %124, %128 : vector<8x128xf32>
    %130 = arith.truncf %129 : vector<8x128xf32> to vector<8x128xbf16>
    %cst_54 = arith.constant dense<0.000000e+00> : vector<8x512xf32>
    %131 = tpu.matmul %130, %11, %cst_54 {dimension_numbers = #tpu.dot_dimension_numbers<[1], [0], [0], [1], [0, 0, 1, 1], [], []>} : vector<8x128xbf16>, vector<128x512xbf16>, vector<8x512xf32> -> vector<8x512xf32>
    %132 = arith.addf %92, %131 : vector<8x512xf32>
    %133 = arith.addf %132, %15 : vector<8x512xf32>
    %134 = vector.extract_strided_slice %133 {offsets = [0, 0], sizes = [8, 128], strides = [1, 1]} : vector<8x512xf32> to vector<8x128xf32>
    %cst_55 = arith.constant 5.000000e-01 : f32
    %135 = vector.broadcast %cst_55 : f32 to vector<8x128xf32>
    %136 = arith.mulf %135, %134 : vector<8x128xf32>
    %137 = math.tanh %136 : vector<8x128xf32>
    %cst_56 = arith.constant 5.000000e-01 : f32
    %138 = vector.broadcast %cst_56 : f32 to vector<8x128xf32>
    %139 = arith.mulf %138, %137 : vector<8x128xf32>
    %cst_57 = arith.constant 5.000000e-01 : f32
    %140 = vector.broadcast %cst_57 : f32 to vector<8x128xf32>
    %141 = arith.addf %139, %140 : vector<8x128xf32>
    %142 = vector.extract_strided_slice %133 {offsets = [0, 128], sizes = [8, 128], strides = [1, 1]} : vector<8x512xf32> to vector<8x128xf32>
    %cst_58 = arith.constant 5.000000e-01 : f32
    %143 = vector.broadcast %cst_58 : f32 to vector<8x128xf32>
    %144 = arith.mulf %143, %142 : vector<8x128xf32>
    %145 = math.tanh %144 : vector<8x128xf32>
    %cst_59 = arith.constant 5.000000e-01 : f32
    %146 = vector.broadcast %cst_59 : f32 to vector<8x128xf32>
    %147 = arith.mulf %146, %145 : vector<8x128xf32>
    %cst_60 = arith.constant 5.000000e-01 : f32
    %148 = vector.broadcast %cst_60 : f32 to vector<8x128xf32>
    %149 = arith.addf %147, %148 : vector<8x128xf32>
    %150 = vector.extract_strided_slice %133 {offsets = [0, 256], sizes = [8, 128], strides = [1, 1]} : vector<8x512xf32> to vector<8x128xf32>
    %151 = math.tanh %150 : vector<8x128xf32>
    %152 = vector.extract_strided_slice %133 {offsets = [0, 384], sizes = [8, 128], strides = [1, 1]} : vector<8x512xf32> to vector<8x128xf32>
    %cst_61 = arith.constant 5.000000e-01 : f32
    %153 = vector.broadcast %cst_61 : f32 to vector<8x128xf32>
    %154 = arith.mulf %153, %152 : vector<8x128xf32>
    %155 = math.tanh %154 : vector<8x128xf32>
    %cst_62 = arith.constant 5.000000e-01 : f32
    %156 = vector.broadcast %cst_62 : f32 to vector<8x128xf32>
    %157 = arith.mulf %156, %155 : vector<8x128xf32>
    %cst_63 = arith.constant 5.000000e-01 : f32
    %158 = vector.broadcast %cst_63 : f32 to vector<8x128xf32>
    %159 = arith.addf %157, %158 : vector<8x128xf32>
    %160 = arith.mulf %149, %88 : vector<8x128xf32>
    %161 = arith.mulf %141, %151 : vector<8x128xf32>
    %162 = arith.addf %160, %161 : vector<8x128xf32>
    %163 = math.tanh %162 : vector<8x128xf32>
    %164 = arith.mulf %159, %163 : vector<8x128xf32>
    %c2_i32 = arith.constant 2 : i32
    %165 = arith.truncf %164 : vector<8x128xf32> to vector<8x128xbf16>
    %cst_64 = arith.constant dense<0.000000e+00> : vector<8x512xf32>
    %166 = tpu.matmul %165, %12, %cst_64 {dimension_numbers = #tpu.dot_dimension_numbers<[1], [0], [0], [1], [0, 0, 1, 1], [], []>} : vector<8x128xbf16>, vector<128x512xbf16>, vector<8x512xf32> -> vector<8x512xf32>
    %167 = arith.index_cast %c2_i32 : i32 to index
    %c0_65 = arith.constant 0 : index
    %c0_66 = arith.constant 0 : index
    %168 = vector.load %arg11[%167, %c0_65, %c0_66] : memref<8x8x512xf32, #tpu.memory_space<vmem>>, vector<1x8x512xf32>
    %169 = vector.shape_cast %168 : vector<1x8x512xf32> to vector<8x512xf32>
    %170 = arith.truncf %129 : vector<8x128xf32> to vector<8x128xbf16>
    %cst_67 = arith.constant dense<0.000000e+00> : vector<8x512xf32>
    %171 = tpu.matmul %170, %10, %cst_67 {dimension_numbers = #tpu.dot_dimension_numbers<[1], [0], [0], [1], [0, 0, 1, 1], [], []>} : vector<8x128xbf16>, vector<128x512xbf16>, vector<8x512xf32> -> vector<8x512xf32>
    %172 = arith.addf %169, %171 : vector<8x512xf32>
    %173 = vector.extract_strided_slice %172 {offsets = [0, 0], sizes = [8, 128], strides = [1, 1]} : vector<8x512xf32> to vector<8x128xf32>
    %cst_68 = arith.constant 5.000000e-01 : f32
    %174 = vector.broadcast %cst_68 : f32 to vector<8x128xf32>
    %175 = arith.mulf %174, %173 : vector<8x128xf32>
    %176 = math.tanh %175 : vector<8x128xf32>
    %cst_69 = arith.constant 5.000000e-01 : f32
    %177 = vector.broadcast %cst_69 : f32 to vector<8x128xf32>
    %178 = arith.mulf %177, %176 : vector<8x128xf32>
    %cst_70 = arith.constant 5.000000e-01 : f32
    %179 = vector.broadcast %cst_70 : f32 to vector<8x128xf32>
    %180 = arith.addf %178, %179 : vector<8x128xf32>
    %181 = vector.extract_strided_slice %172 {offsets = [0, 128], sizes = [8, 128], strides = [1, 1]} : vector<8x512xf32> to vector<8x128xf32>
    %cst_71 = arith.constant 5.000000e-01 : f32
    %182 = vector.broadcast %cst_71 : f32 to vector<8x128xf32>
    %183 = arith.mulf %182, %181 : vector<8x128xf32>
    %184 = math.tanh %183 : vector<8x128xf32>
    %cst_72 = arith.constant 5.000000e-01 : f32
    %185 = vector.broadcast %cst_72 : f32 to vector<8x128xf32>
    %186 = arith.mulf %185, %184 : vector<8x128xf32>
    %cst_73 = arith.constant 5.000000e-01 : f32
    %187 = vector.broadcast %cst_73 : f32 to vector<8x128xf32>
    %188 = arith.addf %186, %187 : vector<8x128xf32>
    %189 = vector.extract_strided_slice %172 {offsets = [0, 256], sizes = [8, 128], strides = [1, 1]} : vector<8x512xf32> to vector<8x128xf32>
    %190 = math.tanh %189 : vector<8x128xf32>
    %191 = vector.extract_strided_slice %172 {offsets = [0, 384], sizes = [8, 128], strides = [1, 1]} : vector<8x512xf32> to vector<8x128xf32>
    %cst_74 = arith.constant 5.000000e-01 : f32
    %192 = vector.broadcast %cst_74 : f32 to vector<8x128xf32>
    %193 = arith.mulf %192, %191 : vector<8x128xf32>
    %194 = math.tanh %193 : vector<8x128xf32>
    %cst_75 = arith.constant 5.000000e-01 : f32
    %195 = vector.broadcast %cst_75 : f32 to vector<8x128xf32>
    %196 = arith.mulf %195, %194 : vector<8x128xf32>
    %cst_76 = arith.constant 5.000000e-01 : f32
    %197 = vector.broadcast %cst_76 : f32 to vector<8x128xf32>
    %198 = arith.addf %196, %197 : vector<8x128xf32>
    %199 = arith.mulf %188, %127 : vector<8x128xf32>
    %200 = arith.mulf %180, %190 : vector<8x128xf32>
    %201 = arith.addf %199, %200 : vector<8x128xf32>
    %202 = math.tanh %201 : vector<8x128xf32>
    %203 = arith.mulf %198, %202 : vector<8x128xf32>
    %204 = arith.truncf %203 : vector<8x128xf32> to vector<8x128xbf16>
    %cst_77 = arith.constant dense<0.000000e+00> : vector<8x512xf32>
    %205 = tpu.matmul %204, %11, %cst_77 {dimension_numbers = #tpu.dot_dimension_numbers<[1], [0], [0], [1], [0, 0, 1, 1], [], []>} : vector<8x128xbf16>, vector<128x512xbf16>, vector<8x512xf32> -> vector<8x512xf32>
    %206 = arith.addf %166, %205 : vector<8x512xf32>
    %207 = arith.addf %206, %15 : vector<8x512xf32>
    %208 = vector.extract_strided_slice %207 {offsets = [0, 0], sizes = [8, 128], strides = [1, 1]} : vector<8x512xf32> to vector<8x128xf32>
    %cst_78 = arith.constant 5.000000e-01 : f32
    %209 = vector.broadcast %cst_78 : f32 to vector<8x128xf32>
    %210 = arith.mulf %209, %208 : vector<8x128xf32>
    %211 = math.tanh %210 : vector<8x128xf32>
    %cst_79 = arith.constant 5.000000e-01 : f32
    %212 = vector.broadcast %cst_79 : f32 to vector<8x128xf32>
    %213 = arith.mulf %212, %211 : vector<8x128xf32>
    %cst_80 = arith.constant 5.000000e-01 : f32
    %214 = vector.broadcast %cst_80 : f32 to vector<8x128xf32>
    %215 = arith.addf %213, %214 : vector<8x128xf32>
    %216 = vector.extract_strided_slice %207 {offsets = [0, 128], sizes = [8, 128], strides = [1, 1]} : vector<8x512xf32> to vector<8x128xf32>
    %cst_81 = arith.constant 5.000000e-01 : f32
    %217 = vector.broadcast %cst_81 : f32 to vector<8x128xf32>
    %218 = arith.mulf %217, %216 : vector<8x128xf32>
    %219 = math.tanh %218 : vector<8x128xf32>
    %cst_82 = arith.constant 5.000000e-01 : f32
    %220 = vector.broadcast %cst_82 : f32 to vector<8x128xf32>
    %221 = arith.mulf %220, %219 : vector<8x128xf32>
    %cst_83 = arith.constant 5.000000e-01 : f32
    %222 = vector.broadcast %cst_83 : f32 to vector<8x128xf32>
    %223 = arith.addf %221, %222 : vector<8x128xf32>
    %224 = vector.extract_strided_slice %207 {offsets = [0, 256], sizes = [8, 128], strides = [1, 1]} : vector<8x512xf32> to vector<8x128xf32>
    %225 = math.tanh %224 : vector<8x128xf32>
    %226 = vector.extract_strided_slice %207 {offsets = [0, 384], sizes = [8, 128], strides = [1, 1]} : vector<8x512xf32> to vector<8x128xf32>
    %cst_84 = arith.constant 5.000000e-01 : f32
    %227 = vector.broadcast %cst_84 : f32 to vector<8x128xf32>
    %228 = arith.mulf %227, %226 : vector<8x128xf32>
    %229 = math.tanh %228 : vector<8x128xf32>
    %cst_85 = arith.constant 5.000000e-01 : f32
    %230 = vector.broadcast %cst_85 : f32 to vector<8x128xf32>
    %231 = arith.mulf %230, %229 : vector<8x128xf32>
    %cst_86 = arith.constant 5.000000e-01 : f32
    %232 = vector.broadcast %cst_86 : f32 to vector<8x128xf32>
    %233 = arith.addf %231, %232 : vector<8x128xf32>
    %234 = arith.mulf %223, %162 : vector<8x128xf32>
    %235 = arith.mulf %215, %225 : vector<8x128xf32>
    %236 = arith.addf %234, %235 : vector<8x128xf32>
    %237 = math.tanh %236 : vector<8x128xf32>
    %238 = arith.mulf %233, %237 : vector<8x128xf32>
    %c3_i32 = arith.constant 3 : i32
    %239 = arith.truncf %238 : vector<8x128xf32> to vector<8x128xbf16>
    %cst_87 = arith.constant dense<0.000000e+00> : vector<8x512xf32>
    %240 = tpu.matmul %239, %12, %cst_87 {dimension_numbers = #tpu.dot_dimension_numbers<[1], [0], [0], [1], [0, 0, 1, 1], [], []>} : vector<8x128xbf16>, vector<128x512xbf16>, vector<8x512xf32> -> vector<8x512xf32>
    %241 = arith.index_cast %c3_i32 : i32 to index
    %c0_88 = arith.constant 0 : index
    %c0_89 = arith.constant 0 : index
    %242 = vector.load %arg11[%241, %c0_88, %c0_89] : memref<8x8x512xf32, #tpu.memory_space<vmem>>, vector<1x8x512xf32>
    %243 = vector.shape_cast %242 : vector<1x8x512xf32> to vector<8x512xf32>
    %244 = arith.truncf %203 : vector<8x128xf32> to vector<8x128xbf16>
    %cst_90 = arith.constant dense<0.000000e+00> : vector<8x512xf32>
    %245 = tpu.matmul %244, %10, %cst_90 {dimension_numbers = #tpu.dot_dimension_numbers<[1], [0], [0], [1], [0, 0, 1, 1], [], []>} : vector<8x128xbf16>, vector<128x512xbf16>, vector<8x512xf32> -> vector<8x512xf32>
    %246 = arith.addf %243, %245 : vector<8x512xf32>
    %247 = vector.extract_strided_slice %246 {offsets = [0, 0], sizes = [8, 128], strides = [1, 1]} : vector<8x512xf32> to vector<8x128xf32>
    %cst_91 = arith.constant 5.000000e-01 : f32
    %248 = vector.broadcast %cst_91 : f32 to vector<8x128xf32>
    %249 = arith.mulf %248, %247 : vector<8x128xf32>
    %250 = math.tanh %249 : vector<8x128xf32>
    %cst_92 = arith.constant 5.000000e-01 : f32
    %251 = vector.broadcast %cst_92 : f32 to vector<8x128xf32>
    %252 = arith.mulf %251, %250 : vector<8x128xf32>
    %cst_93 = arith.constant 5.000000e-01 : f32
    %253 = vector.broadcast %cst_93 : f32 to vector<8x128xf32>
    %254 = arith.addf %252, %253 : vector<8x128xf32>
    %255 = vector.extract_strided_slice %246 {offsets = [0, 128], sizes = [8, 128], strides = [1, 1]} : vector<8x512xf32> to vector<8x128xf32>
    %cst_94 = arith.constant 5.000000e-01 : f32
    %256 = vector.broadcast %cst_94 : f32 to vector<8x128xf32>
    %257 = arith.mulf %256, %255 : vector<8x128xf32>
    %258 = math.tanh %257 : vector<8x128xf32>
    %cst_95 = arith.constant 5.000000e-01 : f32
    %259 = vector.broadcast %cst_95 : f32 to vector<8x128xf32>
    %260 = arith.mulf %259, %258 : vector<8x128xf32>
    %cst_96 = arith.constant 5.000000e-01 : f32
    %261 = vector.broadcast %cst_96 : f32 to vector<8x128xf32>
    %262 = arith.addf %260, %261 : vector<8x128xf32>
    %263 = vector.extract_strided_slice %246 {offsets = [0, 256], sizes = [8, 128], strides = [1, 1]} : vector<8x512xf32> to vector<8x128xf32>
    %264 = math.tanh %263 : vector<8x128xf32>
    %265 = vector.extract_strided_slice %246 {offsets = [0, 384], sizes = [8, 128], strides = [1, 1]} : vector<8x512xf32> to vector<8x128xf32>
    %cst_97 = arith.constant 5.000000e-01 : f32
    %266 = vector.broadcast %cst_97 : f32 to vector<8x128xf32>
    %267 = arith.mulf %266, %265 : vector<8x128xf32>
    %268 = math.tanh %267 : vector<8x128xf32>
    %cst_98 = arith.constant 5.000000e-01 : f32
    %269 = vector.broadcast %cst_98 : f32 to vector<8x128xf32>
    %270 = arith.mulf %269, %268 : vector<8x128xf32>
    %cst_99 = arith.constant 5.000000e-01 : f32
    %271 = vector.broadcast %cst_99 : f32 to vector<8x128xf32>
    %272 = arith.addf %270, %271 : vector<8x128xf32>
    %273 = arith.mulf %262, %201 : vector<8x128xf32>
    %274 = arith.mulf %254, %264 : vector<8x128xf32>
    %275 = arith.addf %273, %274 : vector<8x128xf32>
    %276 = math.tanh %275 : vector<8x128xf32>
    %277 = arith.mulf %272, %276 : vector<8x128xf32>
    %278 = arith.truncf %277 : vector<8x128xf32> to vector<8x128xbf16>
    %cst_100 = arith.constant dense<0.000000e+00> : vector<8x512xf32>
    %279 = tpu.matmul %278, %11, %cst_100 {dimension_numbers = #tpu.dot_dimension_numbers<[1], [0], [0], [1], [0, 0, 1, 1], [], []>} : vector<8x128xbf16>, vector<128x512xbf16>, vector<8x512xf32> -> vector<8x512xf32>
    %280 = arith.addf %240, %279 : vector<8x512xf32>
    %281 = arith.addf %280, %15 : vector<8x512xf32>
    %282 = vector.extract_strided_slice %281 {offsets = [0, 0], sizes = [8, 128], strides = [1, 1]} : vector<8x512xf32> to vector<8x128xf32>
    %cst_101 = arith.constant 5.000000e-01 : f32
    %283 = vector.broadcast %cst_101 : f32 to vector<8x128xf32>
    %284 = arith.mulf %283, %282 : vector<8x128xf32>
    %285 = math.tanh %284 : vector<8x128xf32>
    %cst_102 = arith.constant 5.000000e-01 : f32
    %286 = vector.broadcast %cst_102 : f32 to vector<8x128xf32>
    %287 = arith.mulf %286, %285 : vector<8x128xf32>
    %cst_103 = arith.constant 5.000000e-01 : f32
    %288 = vector.broadcast %cst_103 : f32 to vector<8x128xf32>
    %289 = arith.addf %287, %288 : vector<8x128xf32>
    %290 = vector.extract_strided_slice %281 {offsets = [0, 128], sizes = [8, 128], strides = [1, 1]} : vector<8x512xf32> to vector<8x128xf32>
    %cst_104 = arith.constant 5.000000e-01 : f32
    %291 = vector.broadcast %cst_104 : f32 to vector<8x128xf32>
    %292 = arith.mulf %291, %290 : vector<8x128xf32>
    %293 = math.tanh %292 : vector<8x128xf32>
    %cst_105 = arith.constant 5.000000e-01 : f32
    %294 = vector.broadcast %cst_105 : f32 to vector<8x128xf32>
    %295 = arith.mulf %294, %293 : vector<8x128xf32>
    %cst_106 = arith.constant 5.000000e-01 : f32
    %296 = vector.broadcast %cst_106 : f32 to vector<8x128xf32>
    %297 = arith.addf %295, %296 : vector<8x128xf32>
    %298 = vector.extract_strided_slice %281 {offsets = [0, 256], sizes = [8, 128], strides = [1, 1]} : vector<8x512xf32> to vector<8x128xf32>
    %299 = math.tanh %298 : vector<8x128xf32>
    %300 = vector.extract_strided_slice %281 {offsets = [0, 384], sizes = [8, 128], strides = [1, 1]} : vector<8x512xf32> to vector<8x128xf32>
    %cst_107 = arith.constant 5.000000e-01 : f32
    %301 = vector.broadcast %cst_107 : f32 to vector<8x128xf32>
    %302 = arith.mulf %301, %300 : vector<8x128xf32>
    %303 = math.tanh %302 : vector<8x128xf32>
    %cst_108 = arith.constant 5.000000e-01 : f32
    %304 = vector.broadcast %cst_108 : f32 to vector<8x128xf32>
    %305 = arith.mulf %304, %303 : vector<8x128xf32>
    %cst_109 = arith.constant 5.000000e-01 : f32
    %306 = vector.broadcast %cst_109 : f32 to vector<8x128xf32>
    %307 = arith.addf %305, %306 : vector<8x128xf32>
    %308 = arith.mulf %297, %236 : vector<8x128xf32>
    %309 = arith.mulf %289, %299 : vector<8x128xf32>
    %310 = arith.addf %308, %309 : vector<8x128xf32>
    %311 = math.tanh %310 : vector<8x128xf32>
    %312 = arith.mulf %307, %311 : vector<8x128xf32>
    %c4_i32 = arith.constant 4 : i32
    %313 = arith.truncf %312 : vector<8x128xf32> to vector<8x128xbf16>
    %cst_110 = arith.constant dense<0.000000e+00> : vector<8x512xf32>
    %314 = tpu.matmul %313, %12, %cst_110 {dimension_numbers = #tpu.dot_dimension_numbers<[1], [0], [0], [1], [0, 0, 1, 1], [], []>} : vector<8x128xbf16>, vector<128x512xbf16>, vector<8x512xf32> -> vector<8x512xf32>
    %315 = arith.index_cast %c4_i32 : i32 to index
    %c0_111 = arith.constant 0 : index
    %c0_112 = arith.constant 0 : index
    %316 = vector.load %arg11[%315, %c0_111, %c0_112] : memref<8x8x512xf32, #tpu.memory_space<vmem>>, vector<1x8x512xf32>
    %317 = vector.shape_cast %316 : vector<1x8x512xf32> to vector<8x512xf32>
    %318 = arith.truncf %277 : vector<8x128xf32> to vector<8x128xbf16>
    %cst_113 = arith.constant dense<0.000000e+00> : vector<8x512xf32>
    %319 = tpu.matmul %318, %10, %cst_113 {dimension_numbers = #tpu.dot_dimension_numbers<[1], [0], [0], [1], [0, 0, 1, 1], [], []>} : vector<8x128xbf16>, vector<128x512xbf16>, vector<8x512xf32> -> vector<8x512xf32>
    %320 = arith.addf %317, %319 : vector<8x512xf32>
    %321 = vector.extract_strided_slice %320 {offsets = [0, 0], sizes = [8, 128], strides = [1, 1]} : vector<8x512xf32> to vector<8x128xf32>
    %cst_114 = arith.constant 5.000000e-01 : f32
    %322 = vector.broadcast %cst_114 : f32 to vector<8x128xf32>
    %323 = arith.mulf %322, %321 : vector<8x128xf32>
    %324 = math.tanh %323 : vector<8x128xf32>
    %cst_115 = arith.constant 5.000000e-01 : f32
    %325 = vector.broadcast %cst_115 : f32 to vector<8x128xf32>
    %326 = arith.mulf %325, %324 : vector<8x128xf32>
    %cst_116 = arith.constant 5.000000e-01 : f32
    %327 = vector.broadcast %cst_116 : f32 to vector<8x128xf32>
    %328 = arith.addf %326, %327 : vector<8x128xf32>
    %329 = vector.extract_strided_slice %320 {offsets = [0, 128], sizes = [8, 128], strides = [1, 1]} : vector<8x512xf32> to vector<8x128xf32>
    %cst_117 = arith.constant 5.000000e-01 : f32
    %330 = vector.broadcast %cst_117 : f32 to vector<8x128xf32>
    %331 = arith.mulf %330, %329 : vector<8x128xf32>
    %332 = math.tanh %331 : vector<8x128xf32>
    %cst_118 = arith.constant 5.000000e-01 : f32
    %333 = vector.broadcast %cst_118 : f32 to vector<8x128xf32>
    %334 = arith.mulf %333, %332 : vector<8x128xf32>
    %cst_119 = arith.constant 5.000000e-01 : f32
    %335 = vector.broadcast %cst_119 : f32 to vector<8x128xf32>
    %336 = arith.addf %334, %335 : vector<8x128xf32>
    %337 = vector.extract_strided_slice %320 {offsets = [0, 256], sizes = [8, 128], strides = [1, 1]} : vector<8x512xf32> to vector<8x128xf32>
    %338 = math.tanh %337 : vector<8x128xf32>
    %339 = vector.extract_strided_slice %320 {offsets = [0, 384], sizes = [8, 128], strides = [1, 1]} : vector<8x512xf32> to vector<8x128xf32>
    %cst_120 = arith.constant 5.000000e-01 : f32
    %340 = vector.broadcast %cst_120 : f32 to vector<8x128xf32>
    %341 = arith.mulf %340, %339 : vector<8x128xf32>
    %342 = math.tanh %341 : vector<8x128xf32>
    %cst_121 = arith.constant 5.000000e-01 : f32
    %343 = vector.broadcast %cst_121 : f32 to vector<8x128xf32>
    %344 = arith.mulf %343, %342 : vector<8x128xf32>
    %cst_122 = arith.constant 5.000000e-01 : f32
    %345 = vector.broadcast %cst_122 : f32 to vector<8x128xf32>
    %346 = arith.addf %344, %345 : vector<8x128xf32>
    %347 = arith.mulf %336, %275 : vector<8x128xf32>
    %348 = arith.mulf %328, %338 : vector<8x128xf32>
    %349 = arith.addf %347, %348 : vector<8x128xf32>
    %350 = math.tanh %349 : vector<8x128xf32>
    %351 = arith.mulf %346, %350 : vector<8x128xf32>
    %352 = arith.truncf %351 : vector<8x128xf32> to vector<8x128xbf16>
    %cst_123 = arith.constant dense<0.000000e+00> : vector<8x512xf32>
    %353 = tpu.matmul %352, %11, %cst_123 {dimension_numbers = #tpu.dot_dimension_numbers<[1], [0], [0], [1], [0, 0, 1, 1], [], []>} : vector<8x128xbf16>, vector<128x512xbf16>, vector<8x512xf32> -> vector<8x512xf32>
    %354 = arith.addf %314, %353 : vector<8x512xf32>
    %355 = arith.addf %354, %15 : vector<8x512xf32>
    %356 = vector.extract_strided_slice %355 {offsets = [0, 0], sizes = [8, 128], strides = [1, 1]} : vector<8x512xf32> to vector<8x128xf32>
    %cst_124 = arith.constant 5.000000e-01 : f32
    %357 = vector.broadcast %cst_124 : f32 to vector<8x128xf32>
    %358 = arith.mulf %357, %356 : vector<8x128xf32>
    %359 = math.tanh %358 : vector<8x128xf32>
    %cst_125 = arith.constant 5.000000e-01 : f32
    %360 = vector.broadcast %cst_125 : f32 to vector<8x128xf32>
    %361 = arith.mulf %360, %359 : vector<8x128xf32>
    %cst_126 = arith.constant 5.000000e-01 : f32
    %362 = vector.broadcast %cst_126 : f32 to vector<8x128xf32>
    %363 = arith.addf %361, %362 : vector<8x128xf32>
    %364 = vector.extract_strided_slice %355 {offsets = [0, 128], sizes = [8, 128], strides = [1, 1]} : vector<8x512xf32> to vector<8x128xf32>
    %cst_127 = arith.constant 5.000000e-01 : f32
    %365 = vector.broadcast %cst_127 : f32 to vector<8x128xf32>
    %366 = arith.mulf %365, %364 : vector<8x128xf32>
    %367 = math.tanh %366 : vector<8x128xf32>
    %cst_128 = arith.constant 5.000000e-01 : f32
    %368 = vector.broadcast %cst_128 : f32 to vector<8x128xf32>
    %369 = arith.mulf %368, %367 : vector<8x128xf32>
    %cst_129 = arith.constant 5.000000e-01 : f32
    %370 = vector.broadcast %cst_129 : f32 to vector<8x128xf32>
    %371 = arith.addf %369, %370 : vector<8x128xf32>
    %372 = vector.extract_strided_slice %355 {offsets = [0, 256], sizes = [8, 128], strides = [1, 1]} : vector<8x512xf32> to vector<8x128xf32>
    %373 = math.tanh %372 : vector<8x128xf32>
    %374 = vector.extract_strided_slice %355 {offsets = [0, 384], sizes = [8, 128], strides = [1, 1]} : vector<8x512xf32> to vector<8x128xf32>
    %cst_130 = arith.constant 5.000000e-01 : f32
    %375 = vector.broadcast %cst_130 : f32 to vector<8x128xf32>
    %376 = arith.mulf %375, %374 : vector<8x128xf32>
    %377 = math.tanh %376 : vector<8x128xf32>
    %cst_131 = arith.constant 5.000000e-01 : f32
    %378 = vector.broadcast %cst_131 : f32 to vector<8x128xf32>
    %379 = arith.mulf %378, %377 : vector<8x128xf32>
    %cst_132 = arith.constant 5.000000e-01 : f32
    %380 = vector.broadcast %cst_132 : f32 to vector<8x128xf32>
    %381 = arith.addf %379, %380 : vector<8x128xf32>
    %382 = arith.mulf %371, %310 : vector<8x128xf32>
    %383 = arith.mulf %363, %373 : vector<8x128xf32>
    %384 = arith.addf %382, %383 : vector<8x128xf32>
    %385 = math.tanh %384 : vector<8x128xf32>
    %386 = arith.mulf %381, %385 : vector<8x128xf32>
    %c5_i32 = arith.constant 5 : i32
    %387 = arith.truncf %386 : vector<8x128xf32> to vector<8x128xbf16>
    %cst_133 = arith.constant dense<0.000000e+00> : vector<8x512xf32>
    %388 = tpu.matmul %387, %12, %cst_133 {dimension_numbers = #tpu.dot_dimension_numbers<[1], [0], [0], [1], [0, 0, 1, 1], [], []>} : vector<8x128xbf16>, vector<128x512xbf16>, vector<8x512xf32> -> vector<8x512xf32>
    %389 = arith.index_cast %c5_i32 : i32 to index
    %c0_134 = arith.constant 0 : index
    %c0_135 = arith.constant 0 : index
    %390 = vector.load %arg11[%389, %c0_134, %c0_135] : memref<8x8x512xf32, #tpu.memory_space<vmem>>, vector<1x8x512xf32>
    %391 = vector.shape_cast %390 : vector<1x8x512xf32> to vector<8x512xf32>
    %392 = arith.truncf %351 : vector<8x128xf32> to vector<8x128xbf16>
    %cst_136 = arith.constant dense<0.000000e+00> : vector<8x512xf32>
    %393 = tpu.matmul %392, %10, %cst_136 {dimension_numbers = #tpu.dot_dimension_numbers<[1], [0], [0], [1], [0, 0, 1, 1], [], []>} : vector<8x128xbf16>, vector<128x512xbf16>, vector<8x512xf32> -> vector<8x512xf32>
    %394 = arith.addf %391, %393 : vector<8x512xf32>
    %395 = vector.extract_strided_slice %394 {offsets = [0, 0], sizes = [8, 128], strides = [1, 1]} : vector<8x512xf32> to vector<8x128xf32>
    %cst_137 = arith.constant 5.000000e-01 : f32
    %396 = vector.broadcast %cst_137 : f32 to vector<8x128xf32>
    %397 = arith.mulf %396, %395 : vector<8x128xf32>
    %398 = math.tanh %397 : vector<8x128xf32>
    %cst_138 = arith.constant 5.000000e-01 : f32
    %399 = vector.broadcast %cst_138 : f32 to vector<8x128xf32>
    %400 = arith.mulf %399, %398 : vector<8x128xf32>
    %cst_139 = arith.constant 5.000000e-01 : f32
    %401 = vector.broadcast %cst_139 : f32 to vector<8x128xf32>
    %402 = arith.addf %400, %401 : vector<8x128xf32>
    %403 = vector.extract_strided_slice %394 {offsets = [0, 128], sizes = [8, 128], strides = [1, 1]} : vector<8x512xf32> to vector<8x128xf32>
    %cst_140 = arith.constant 5.000000e-01 : f32
    %404 = vector.broadcast %cst_140 : f32 to vector<8x128xf32>
    %405 = arith.mulf %404, %403 : vector<8x128xf32>
    %406 = math.tanh %405 : vector<8x128xf32>
    %cst_141 = arith.constant 5.000000e-01 : f32
    %407 = vector.broadcast %cst_141 : f32 to vector<8x128xf32>
    %408 = arith.mulf %407, %406 : vector<8x128xf32>
    %cst_142 = arith.constant 5.000000e-01 : f32
    %409 = vector.broadcast %cst_142 : f32 to vector<8x128xf32>
    %410 = arith.addf %408, %409 : vector<8x128xf32>
    %411 = vector.extract_strided_slice %394 {offsets = [0, 256], sizes = [8, 128], strides = [1, 1]} : vector<8x512xf32> to vector<8x128xf32>
    %412 = math.tanh %411 : vector<8x128xf32>
    %413 = vector.extract_strided_slice %394 {offsets = [0, 384], sizes = [8, 128], strides = [1, 1]} : vector<8x512xf32> to vector<8x128xf32>
    %cst_143 = arith.constant 5.000000e-01 : f32
    %414 = vector.broadcast %cst_143 : f32 to vector<8x128xf32>
    %415 = arith.mulf %414, %413 : vector<8x128xf32>
    %416 = math.tanh %415 : vector<8x128xf32>
    %cst_144 = arith.constant 5.000000e-01 : f32
    %417 = vector.broadcast %cst_144 : f32 to vector<8x128xf32>
    %418 = arith.mulf %417, %416 : vector<8x128xf32>
    %cst_145 = arith.constant 5.000000e-01 : f32
    %419 = vector.broadcast %cst_145 : f32 to vector<8x128xf32>
    %420 = arith.addf %418, %419 : vector<8x128xf32>
    %421 = arith.mulf %410, %349 : vector<8x128xf32>
    %422 = arith.mulf %402, %412 : vector<8x128xf32>
    %423 = arith.addf %421, %422 : vector<8x128xf32>
    %424 = math.tanh %423 : vector<8x128xf32>
    %425 = arith.mulf %420, %424 : vector<8x128xf32>
    %426 = arith.truncf %425 : vector<8x128xf32> to vector<8x128xbf16>
    %cst_146 = arith.constant dense<0.000000e+00> : vector<8x512xf32>
    %427 = tpu.matmul %426, %11, %cst_146 {dimension_numbers = #tpu.dot_dimension_numbers<[1], [0], [0], [1], [0, 0, 1, 1], [], []>} : vector<8x128xbf16>, vector<128x512xbf16>, vector<8x512xf32> -> vector<8x512xf32>
    %428 = arith.addf %388, %427 : vector<8x512xf32>
    %429 = arith.addf %428, %15 : vector<8x512xf32>
    %430 = vector.extract_strided_slice %429 {offsets = [0, 0], sizes = [8, 128], strides = [1, 1]} : vector<8x512xf32> to vector<8x128xf32>
    %cst_147 = arith.constant 5.000000e-01 : f32
    %431 = vector.broadcast %cst_147 : f32 to vector<8x128xf32>
    %432 = arith.mulf %431, %430 : vector<8x128xf32>
    %433 = math.tanh %432 : vector<8x128xf32>
    %cst_148 = arith.constant 5.000000e-01 : f32
    %434 = vector.broadcast %cst_148 : f32 to vector<8x128xf32>
    %435 = arith.mulf %434, %433 : vector<8x128xf32>
    %cst_149 = arith.constant 5.000000e-01 : f32
    %436 = vector.broadcast %cst_149 : f32 to vector<8x128xf32>
    %437 = arith.addf %435, %436 : vector<8x128xf32>
    %438 = vector.extract_strided_slice %429 {offsets = [0, 128], sizes = [8, 128], strides = [1, 1]} : vector<8x512xf32> to vector<8x128xf32>
    %cst_150 = arith.constant 5.000000e-01 : f32
    %439 = vector.broadcast %cst_150 : f32 to vector<8x128xf32>
    %440 = arith.mulf %439, %438 : vector<8x128xf32>
    %441 = math.tanh %440 : vector<8x128xf32>
    %cst_151 = arith.constant 5.000000e-01 : f32
    %442 = vector.broadcast %cst_151 : f32 to vector<8x128xf32>
    %443 = arith.mulf %442, %441 : vector<8x128xf32>
    %cst_152 = arith.constant 5.000000e-01 : f32
    %444 = vector.broadcast %cst_152 : f32 to vector<8x128xf32>
    %445 = arith.addf %443, %444 : vector<8x128xf32>
    %446 = vector.extract_strided_slice %429 {offsets = [0, 256], sizes = [8, 128], strides = [1, 1]} : vector<8x512xf32> to vector<8x128xf32>
    %447 = math.tanh %446 : vector<8x128xf32>
    %448 = vector.extract_strided_slice %429 {offsets = [0, 384], sizes = [8, 128], strides = [1, 1]} : vector<8x512xf32> to vector<8x128xf32>
    %cst_153 = arith.constant 5.000000e-01 : f32
    %449 = vector.broadcast %cst_153 : f32 to vector<8x128xf32>
    %450 = arith.mulf %449, %448 : vector<8x128xf32>
    %451 = math.tanh %450 : vector<8x128xf32>
    %cst_154 = arith.constant 5.000000e-01 : f32
    %452 = vector.broadcast %cst_154 : f32 to vector<8x128xf32>
    %453 = arith.mulf %452, %451 : vector<8x128xf32>
    %cst_155 = arith.constant 5.000000e-01 : f32
    %454 = vector.broadcast %cst_155 : f32 to vector<8x128xf32>
    %455 = arith.addf %453, %454 : vector<8x128xf32>
    %456 = arith.mulf %445, %384 : vector<8x128xf32>
    %457 = arith.mulf %437, %447 : vector<8x128xf32>
    %458 = arith.addf %456, %457 : vector<8x128xf32>
    %459 = math.tanh %458 : vector<8x128xf32>
    %460 = arith.mulf %455, %459 : vector<8x128xf32>
    %c6_i32 = arith.constant 6 : i32
    %461 = arith.truncf %460 : vector<8x128xf32> to vector<8x128xbf16>
    %cst_156 = arith.constant dense<0.000000e+00> : vector<8x512xf32>
    %462 = tpu.matmul %461, %12, %cst_156 {dimension_numbers = #tpu.dot_dimension_numbers<[1], [0], [0], [1], [0, 0, 1, 1], [], []>} : vector<8x128xbf16>, vector<128x512xbf16>, vector<8x512xf32> -> vector<8x512xf32>
    %463 = arith.index_cast %c6_i32 : i32 to index
    %c0_157 = arith.constant 0 : index
    %c0_158 = arith.constant 0 : index
    %464 = vector.load %arg11[%463, %c0_157, %c0_158] : memref<8x8x512xf32, #tpu.memory_space<vmem>>, vector<1x8x512xf32>
    %465 = vector.shape_cast %464 : vector<1x8x512xf32> to vector<8x512xf32>
    %466 = arith.truncf %425 : vector<8x128xf32> to vector<8x128xbf16>
    %cst_159 = arith.constant dense<0.000000e+00> : vector<8x512xf32>
    %467 = tpu.matmul %466, %10, %cst_159 {dimension_numbers = #tpu.dot_dimension_numbers<[1], [0], [0], [1], [0, 0, 1, 1], [], []>} : vector<8x128xbf16>, vector<128x512xbf16>, vector<8x512xf32> -> vector<8x512xf32>
    %468 = arith.addf %465, %467 : vector<8x512xf32>
    %469 = vector.extract_strided_slice %468 {offsets = [0, 0], sizes = [8, 128], strides = [1, 1]} : vector<8x512xf32> to vector<8x128xf32>
    %cst_160 = arith.constant 5.000000e-01 : f32
    %470 = vector.broadcast %cst_160 : f32 to vector<8x128xf32>
    %471 = arith.mulf %470, %469 : vector<8x128xf32>
    %472 = math.tanh %471 : vector<8x128xf32>
    %cst_161 = arith.constant 5.000000e-01 : f32
    %473 = vector.broadcast %cst_161 : f32 to vector<8x128xf32>
    %474 = arith.mulf %473, %472 : vector<8x128xf32>
    %cst_162 = arith.constant 5.000000e-01 : f32
    %475 = vector.broadcast %cst_162 : f32 to vector<8x128xf32>
    %476 = arith.addf %474, %475 : vector<8x128xf32>
    %477 = vector.extract_strided_slice %468 {offsets = [0, 128], sizes = [8, 128], strides = [1, 1]} : vector<8x512xf32> to vector<8x128xf32>
    %cst_163 = arith.constant 5.000000e-01 : f32
    %478 = vector.broadcast %cst_163 : f32 to vector<8x128xf32>
    %479 = arith.mulf %478, %477 : vector<8x128xf32>
    %480 = math.tanh %479 : vector<8x128xf32>
    %cst_164 = arith.constant 5.000000e-01 : f32
    %481 = vector.broadcast %cst_164 : f32 to vector<8x128xf32>
    %482 = arith.mulf %481, %480 : vector<8x128xf32>
    %cst_165 = arith.constant 5.000000e-01 : f32
    %483 = vector.broadcast %cst_165 : f32 to vector<8x128xf32>
    %484 = arith.addf %482, %483 : vector<8x128xf32>
    %485 = vector.extract_strided_slice %468 {offsets = [0, 256], sizes = [8, 128], strides = [1, 1]} : vector<8x512xf32> to vector<8x128xf32>
    %486 = math.tanh %485 : vector<8x128xf32>
    %487 = vector.extract_strided_slice %468 {offsets = [0, 384], sizes = [8, 128], strides = [1, 1]} : vector<8x512xf32> to vector<8x128xf32>
    %cst_166 = arith.constant 5.000000e-01 : f32
    %488 = vector.broadcast %cst_166 : f32 to vector<8x128xf32>
    %489 = arith.mulf %488, %487 : vector<8x128xf32>
    %490 = math.tanh %489 : vector<8x128xf32>
    %cst_167 = arith.constant 5.000000e-01 : f32
    %491 = vector.broadcast %cst_167 : f32 to vector<8x128xf32>
    %492 = arith.mulf %491, %490 : vector<8x128xf32>
    %cst_168 = arith.constant 5.000000e-01 : f32
    %493 = vector.broadcast %cst_168 : f32 to vector<8x128xf32>
    %494 = arith.addf %492, %493 : vector<8x128xf32>
    %495 = arith.mulf %484, %423 : vector<8x128xf32>
    %496 = arith.mulf %476, %486 : vector<8x128xf32>
    %497 = arith.addf %495, %496 : vector<8x128xf32>
    %498 = math.tanh %497 : vector<8x128xf32>
    %499 = arith.mulf %494, %498 : vector<8x128xf32>
    %500 = arith.truncf %499 : vector<8x128xf32> to vector<8x128xbf16>
    %cst_169 = arith.constant dense<0.000000e+00> : vector<8x512xf32>
    %501 = tpu.matmul %500, %11, %cst_169 {dimension_numbers = #tpu.dot_dimension_numbers<[1], [0], [0], [1], [0, 0, 1, 1], [], []>} : vector<8x128xbf16>, vector<128x512xbf16>, vector<8x512xf32> -> vector<8x512xf32>
    %502 = arith.addf %462, %501 : vector<8x512xf32>
    %503 = arith.addf %502, %15 : vector<8x512xf32>
    %504 = vector.extract_strided_slice %503 {offsets = [0, 0], sizes = [8, 128], strides = [1, 1]} : vector<8x512xf32> to vector<8x128xf32>
    %cst_170 = arith.constant 5.000000e-01 : f32
    %505 = vector.broadcast %cst_170 : f32 to vector<8x128xf32>
    %506 = arith.mulf %505, %504 : vector<8x128xf32>
    %507 = math.tanh %506 : vector<8x128xf32>
    %cst_171 = arith.constant 5.000000e-01 : f32
    %508 = vector.broadcast %cst_171 : f32 to vector<8x128xf32>
    %509 = arith.mulf %508, %507 : vector<8x128xf32>
    %cst_172 = arith.constant 5.000000e-01 : f32
    %510 = vector.broadcast %cst_172 : f32 to vector<8x128xf32>
    %511 = arith.addf %509, %510 : vector<8x128xf32>
    %512 = vector.extract_strided_slice %503 {offsets = [0, 128], sizes = [8, 128], strides = [1, 1]} : vector<8x512xf32> to vector<8x128xf32>
    %cst_173 = arith.constant 5.000000e-01 : f32
    %513 = vector.broadcast %cst_173 : f32 to vector<8x128xf32>
    %514 = arith.mulf %513, %512 : vector<8x128xf32>
    %515 = math.tanh %514 : vector<8x128xf32>
    %cst_174 = arith.constant 5.000000e-01 : f32
    %516 = vector.broadcast %cst_174 : f32 to vector<8x128xf32>
    %517 = arith.mulf %516, %515 : vector<8x128xf32>
    %cst_175 = arith.constant 5.000000e-01 : f32
    %518 = vector.broadcast %cst_175 : f32 to vector<8x128xf32>
    %519 = arith.addf %517, %518 : vector<8x128xf32>
    %520 = vector.extract_strided_slice %503 {offsets = [0, 256], sizes = [8, 128], strides = [1, 1]} : vector<8x512xf32> to vector<8x128xf32>
    %521 = math.tanh %520 : vector<8x128xf32>
    %522 = vector.extract_strided_slice %503 {offsets = [0, 384], sizes = [8, 128], strides = [1, 1]} : vector<8x512xf32> to vector<8x128xf32>
    %cst_176 = arith.constant 5.000000e-01 : f32
    %523 = vector.broadcast %cst_176 : f32 to vector<8x128xf32>
    %524 = arith.mulf %523, %522 : vector<8x128xf32>
    %525 = math.tanh %524 : vector<8x128xf32>
    %cst_177 = arith.constant 5.000000e-01 : f32
    %526 = vector.broadcast %cst_177 : f32 to vector<8x128xf32>
    %527 = arith.mulf %526, %525 : vector<8x128xf32>
    %cst_178 = arith.constant 5.000000e-01 : f32
    %528 = vector.broadcast %cst_178 : f32 to vector<8x128xf32>
    %529 = arith.addf %527, %528 : vector<8x128xf32>
    %530 = arith.mulf %519, %458 : vector<8x128xf32>
    %531 = arith.mulf %511, %521 : vector<8x128xf32>
    %532 = arith.addf %530, %531 : vector<8x128xf32>
    %533 = math.tanh %532 : vector<8x128xf32>
    %534 = arith.mulf %529, %533 : vector<8x128xf32>
    %c7_i32 = arith.constant 7 : i32
    %535 = arith.truncf %534 : vector<8x128xf32> to vector<8x128xbf16>
    %cst_179 = arith.constant dense<0.000000e+00> : vector<8x512xf32>
    %536 = tpu.matmul %535, %12, %cst_179 {dimension_numbers = #tpu.dot_dimension_numbers<[1], [0], [0], [1], [0, 0, 1, 1], [], []>} : vector<8x128xbf16>, vector<128x512xbf16>, vector<8x512xf32> -> vector<8x512xf32>
    %537 = arith.index_cast %c7_i32 : i32 to index
    %c0_180 = arith.constant 0 : index
    %c0_181 = arith.constant 0 : index
    %538 = vector.load %arg11[%537, %c0_180, %c0_181] : memref<8x8x512xf32, #tpu.memory_space<vmem>>, vector<1x8x512xf32>
    %539 = vector.shape_cast %538 : vector<1x8x512xf32> to vector<8x512xf32>
    %540 = arith.truncf %499 : vector<8x128xf32> to vector<8x128xbf16>
    %cst_182 = arith.constant dense<0.000000e+00> : vector<8x512xf32>
    %541 = tpu.matmul %540, %10, %cst_182 {dimension_numbers = #tpu.dot_dimension_numbers<[1], [0], [0], [1], [0, 0, 1, 1], [], []>} : vector<8x128xbf16>, vector<128x512xbf16>, vector<8x512xf32> -> vector<8x512xf32>
    %542 = arith.addf %539, %541 : vector<8x512xf32>
    %543 = vector.extract_strided_slice %542 {offsets = [0, 0], sizes = [8, 128], strides = [1, 1]} : vector<8x512xf32> to vector<8x128xf32>
    %cst_183 = arith.constant 5.000000e-01 : f32
    %544 = vector.broadcast %cst_183 : f32 to vector<8x128xf32>
    %545 = arith.mulf %544, %543 : vector<8x128xf32>
    %546 = math.tanh %545 : vector<8x128xf32>
    %cst_184 = arith.constant 5.000000e-01 : f32
    %547 = vector.broadcast %cst_184 : f32 to vector<8x128xf32>
    %548 = arith.mulf %547, %546 : vector<8x128xf32>
    %cst_185 = arith.constant 5.000000e-01 : f32
    %549 = vector.broadcast %cst_185 : f32 to vector<8x128xf32>
    %550 = arith.addf %548, %549 : vector<8x128xf32>
    %551 = vector.extract_strided_slice %542 {offsets = [0, 128], sizes = [8, 128], strides = [1, 1]} : vector<8x512xf32> to vector<8x128xf32>
    %cst_186 = arith.constant 5.000000e-01 : f32
    %552 = vector.broadcast %cst_186 : f32 to vector<8x128xf32>
    %553 = arith.mulf %552, %551 : vector<8x128xf32>
    %554 = math.tanh %553 : vector<8x128xf32>
    %cst_187 = arith.constant 5.000000e-01 : f32
    %555 = vector.broadcast %cst_187 : f32 to vector<8x128xf32>
    %556 = arith.mulf %555, %554 : vector<8x128xf32>
    %cst_188 = arith.constant 5.000000e-01 : f32
    %557 = vector.broadcast %cst_188 : f32 to vector<8x128xf32>
    %558 = arith.addf %556, %557 : vector<8x128xf32>
    %559 = vector.extract_strided_slice %542 {offsets = [0, 256], sizes = [8, 128], strides = [1, 1]} : vector<8x512xf32> to vector<8x128xf32>
    %560 = math.tanh %559 : vector<8x128xf32>
    %561 = vector.extract_strided_slice %542 {offsets = [0, 384], sizes = [8, 128], strides = [1, 1]} : vector<8x512xf32> to vector<8x128xf32>
    %cst_189 = arith.constant 5.000000e-01 : f32
    %562 = vector.broadcast %cst_189 : f32 to vector<8x128xf32>
    %563 = arith.mulf %562, %561 : vector<8x128xf32>
    %564 = math.tanh %563 : vector<8x128xf32>
    %cst_190 = arith.constant 5.000000e-01 : f32
    %565 = vector.broadcast %cst_190 : f32 to vector<8x128xf32>
    %566 = arith.mulf %565, %564 : vector<8x128xf32>
    %cst_191 = arith.constant 5.000000e-01 : f32
    %567 = vector.broadcast %cst_191 : f32 to vector<8x128xf32>
    %568 = arith.addf %566, %567 : vector<8x128xf32>
    %569 = arith.mulf %558, %497 : vector<8x128xf32>
    %570 = arith.mulf %550, %560 : vector<8x128xf32>
    %571 = arith.addf %569, %570 : vector<8x128xf32>
    %572 = math.tanh %571 : vector<8x128xf32>
    %573 = arith.mulf %568, %572 : vector<8x128xf32>
    %574 = arith.truncf %573 : vector<8x128xf32> to vector<8x128xbf16>
    %cst_192 = arith.constant dense<0.000000e+00> : vector<8x512xf32>
    %575 = tpu.matmul %574, %11, %cst_192 {dimension_numbers = #tpu.dot_dimension_numbers<[1], [0], [0], [1], [0, 0, 1, 1], [], []>} : vector<8x128xbf16>, vector<128x512xbf16>, vector<8x512xf32> -> vector<8x512xf32>
    %576 = arith.addf %536, %575 : vector<8x512xf32>
    %577 = arith.addf %576, %15 : vector<8x512xf32>
    %578 = vector.extract_strided_slice %577 {offsets = [0, 0], sizes = [8, 128], strides = [1, 1]} : vector<8x512xf32> to vector<8x128xf32>
    %cst_193 = arith.constant 5.000000e-01 : f32
    %579 = vector.broadcast %cst_193 : f32 to vector<8x128xf32>
    %580 = arith.mulf %579, %578 : vector<8x128xf32>
    %581 = math.tanh %580 : vector<8x128xf32>
    %cst_194 = arith.constant 5.000000e-01 : f32
    %582 = vector.broadcast %cst_194 : f32 to vector<8x128xf32>
    %583 = arith.mulf %582, %581 : vector<8x128xf32>
    %cst_195 = arith.constant 5.000000e-01 : f32
    %584 = vector.broadcast %cst_195 : f32 to vector<8x128xf32>
    %585 = arith.addf %583, %584 : vector<8x128xf32>
    %586 = vector.extract_strided_slice %577 {offsets = [0, 128], sizes = [8, 128], strides = [1, 1]} : vector<8x512xf32> to vector<8x128xf32>
    %cst_196 = arith.constant 5.000000e-01 : f32
    %587 = vector.broadcast %cst_196 : f32 to vector<8x128xf32>
    %588 = arith.mulf %587, %586 : vector<8x128xf32>
    %589 = math.tanh %588 : vector<8x128xf32>
    %cst_197 = arith.constant 5.000000e-01 : f32
    %590 = vector.broadcast %cst_197 : f32 to vector<8x128xf32>
    %591 = arith.mulf %590, %589 : vector<8x128xf32>
    %cst_198 = arith.constant 5.000000e-01 : f32
    %592 = vector.broadcast %cst_198 : f32 to vector<8x128xf32>
    %593 = arith.addf %591, %592 : vector<8x128xf32>
    %594 = vector.extract_strided_slice %577 {offsets = [0, 256], sizes = [8, 128], strides = [1, 1]} : vector<8x512xf32> to vector<8x128xf32>
    %595 = math.tanh %594 : vector<8x128xf32>
    %596 = vector.extract_strided_slice %577 {offsets = [0, 384], sizes = [8, 128], strides = [1, 1]} : vector<8x512xf32> to vector<8x128xf32>
    %cst_199 = arith.constant 5.000000e-01 : f32
    %597 = vector.broadcast %cst_199 : f32 to vector<8x128xf32>
    %598 = arith.mulf %597, %596 : vector<8x128xf32>
    %599 = math.tanh %598 : vector<8x128xf32>
    %cst_200 = arith.constant 5.000000e-01 : f32
    %600 = vector.broadcast %cst_200 : f32 to vector<8x128xf32>
    %601 = arith.mulf %600, %599 : vector<8x128xf32>
    %cst_201 = arith.constant 5.000000e-01 : f32
    %602 = vector.broadcast %cst_201 : f32 to vector<8x128xf32>
    %603 = arith.addf %601, %602 : vector<8x128xf32>
    %604 = arith.mulf %593, %532 : vector<8x128xf32>
    %605 = arith.mulf %585, %595 : vector<8x128xf32>
    %606 = arith.addf %604, %605 : vector<8x128xf32>
    %607 = math.tanh %606 : vector<8x128xf32>
    %608 = arith.mulf %603, %607 : vector<8x128xf32>
    %c8_i32 = arith.constant 8 : i32
    %609 = arith.truncf %608 : vector<8x128xf32> to vector<8x128xbf16>
    %c0_202 = arith.constant 0 : index
    %c0_203 = arith.constant 0 : index
    %610 = vector.load %arg8[%c0_202, %c0_203] : memref<128x10xbf16, #tpu.memory_space<vmem>>, vector<128x10xbf16>
    %cst_204 = arith.constant dense<0.000000e+00> : vector<8x10xf32>
    %611 = tpu.matmul %609, %610, %cst_204 {dimension_numbers = #tpu.dot_dimension_numbers<[1], [0], [0], [1], [0, 0, 1, 1], [], []>} : vector<8x128xbf16>, vector<128x10xbf16>, vector<8x10xf32> -> vector<8x10xf32>
    %c0_205 = arith.constant 0 : index
    %c0_206 = arith.constant 0 : index
    %612 = vector.load %arg9[%c0_205, %c0_206] : memref<1x10xf32, #tpu.memory_space<vmem>>, vector<1x10xf32>
    %613 = vector.broadcast %612 : vector<1x10xf32> to vector<8x10xf32>
    %614 = arith.addf %611, %613 : vector<8x10xf32>
    %c0_207 = arith.constant 0 : index
    %c0_208 = arith.constant 0 : index
    %615 = vector.load %arg10[%c0_207, %c0_208] : memref<8x10xf32, #tpu.memory_space<vmem>>, vector<8x10xf32>
    tpu.vector_store %arg10[%c0_207, %c0_208], %614 {strides = array<i32>} : memref<8x10xf32, #tpu.memory_space<vmem>>, vector<8x10xf32>,
    return
  }
  func.func @transform_0(%arg0: i32) -> (i32, i32, i32) {
    %c0_i32 = arith.constant 0 : i32
    %c0_i32_0 = arith.constant 0 : i32
    %c0_i32_1 = arith.constant 0 : i32
    return %c0_i32, %arg0, %c0_i32_0 : i32, i32, i32
  }
  func.func @transform_1(%arg0: i32) -> (i32, i32) {
    %c0_i32 = arith.constant 0 : i32
    %c0_i32_0 = arith.constant 0 : i32
    %c0_i32_1 = arith.constant 0 : i32
    return %c0_i32, %c0_i32_0 : i32, i32
  }
  func.func @transform_2(%arg0: i32) -> (i32, i32) {
    %c0_i32 = arith.constant 0 : i32
    %c0_i32_0 = arith.constant 0 : i32
    %c0_i32_1 = arith.constant 0 : i32
    return %c0_i32, %c0_i32_0 : i32, i32
  }
  func.func @transform_3(%arg0: i32) -> (i32, i32) {
    %c0_i32 = arith.constant 0 : i32
    %c0_i32_0 = arith.constant 0 : i32
    %c0_i32_1 = arith.constant 0 : i32
    return %c0_i32, %c0_i32_0 : i32, i32
  }
  func.func @transform_4(%arg0: i32) -> (i32, i32) {
    %c0_i32 = arith.constant 0 : i32
    %c0_i32_0 = arith.constant 0 : i32
    %c0_i32_1 = arith.constant 0 : i32
    return %c0_i32, %c0_i32_0 : i32, i32
  }
  func.func @transform_5(%arg0: i32) -> (i32, i32) {
    %c0_i32 = arith.constant 0 : i32
    %c0_i32_0 = arith.constant 0 : i32
    %c0_i32_1 = arith.constant 0 : i32
    return %c0_i32, %c0_i32_0 : i32, i32
  }
  func.func @transform_6(%arg0: i32) -> (i32, i32) {
    %c0_i32 = arith.constant 0 : i32
    %c0_i32_0 = arith.constant 0 : i32
    %c0_i32_1 = arith.constant 0 : i32
    return %c0_i32, %c0_i32_0 : i32, i32
  }
  func.func @transform_7(%arg0: i32) -> (i32, i32) {
    %c0_i32 = arith.constant 0 : i32
    %c0_i32_0 = arith.constant 0 : i32
    %c0_i32_1 = arith.constant 0 : i32
    return %c0_i32, %c0_i32_0 : i32, i32
  }
  func.func @transform_8(%arg0: i32) -> (i32, i32) {
    %c0_i32 = arith.constant 0 : i32
    %c0_i32_0 = arith.constant 0 : i32
    %c0_i32_1 = arith.constant 0 : i32
    return %c0_i32, %c0_i32_0 : i32, i32
  }
  func.func @transform_9(%arg0: i32) -> (i32, i32) {
    %c0_i32 = arith.constant 0 : i32
    %c0_i32_0 = arith.constant 0 : i32
    return %arg0, %c0_i32 : i32, i32
  }
}

</mosaic_0001>

<bundles_post_ra>
// kernel: tpu_custom_call.1
= control target key start
LH: loop header
LB: loop body
LE: loop exit
PB: predicated region body
PF: predicated region fallthrough
CT: control target
= control target key end

     0   :  { %14 = vsyncpa [#allocation4], 0  ;;  %s6161_s0 = inlined_call_operand.vmem [shape: f32[8,8,28], index: 0, kind: input, shape index: {}]   ;;  %s6162_s1 = inlined_call_operand.hbm [shape: bf16[28,512], index: 1, kind: input, shape index: {}]   ;;  %s6163_s2 = inlined_call_operand.hbm [shape: bf16[128,512], index: 2, kind: input, shape index: {}]   ;;  %s6164_s3 = inlined_call_operand.vmem [shape: f32[1,512], index: 3, kind: input, shape index: {}]   ;;  %s6165_s4 = inlined_call_operand.hbm [shape: bf16[128,512], index: 4, kind: input, shape index: {}]   ;;  %s6166_s5 = inlined_call_operand.hbm [shape: bf16[128,512], index: 5, kind: input, shape index: {}]   ;;  %s6167_s6 = inlined_call_operand.vmem [shape: f32[1,512], index: 6, kind: input, shape index: {}]   ;;  %s6168_s7 = inlined_call_operand.vmem [shape: bf16[128,10], index: 7, kind: input, shape index: {}]   ;;  %s6169_s8 = inlined_call_operand.vmem [shape: f32[1,10], index: 8, kind: input, shape index: {}]   ;;  %s6170_s9 = inlined_call_operand.hbm [shape: f32[8,10], index: 9, kind: output, shape index: {}]  }
   0x1   :  { %15 = vsyncpa [#allocation7], 0 }
   0x2   :  { %16 = vsyncpa [#allocation10], 0 }
   0x3   :  { %17 = vsyncpa [#allocation5], 0  ;;  %s4270_s30 = smov [#allocation6]   ;;  %s4271_s11 = smov [#allocation3]  }
   0x4   :  { %s37_s10 = sshll.u32 %s4270_s30, 4  ;;  %s25_s12 = sshll.u32 %s4271_s11, 4  ;;  %s38_s10 = int_to_ptr.vmem [resolvable:$true] %s37_s10  ;;  %s4330_s12 = int_to_ptr.vmem [resolvable:$true] %s25_s12 }
   0x5   :  { %s4152_s15 = scalar_lea.hbm %s6163_s2, 4096 }
   0x6   :  { %p4153_p0 = scmp.ne.s32.totalorder %s6163_s2, %s4152_s15  ;;  %p4156_p1 = scmp.lt.u32.totalorder %s4152_s15, %s6163_s2 }
   0x8   :  { %p4158_p2 = pnand %p4156_p1, %p4153_p0 }
   0xa   :  { %4161 = shalt.err (!%p4158_p2)
}
   0xb   :  { %s4162_s20 = scalar_lea.vmem %s38_s10, 4096  ;;  %p4167_p4 = scmp.lt.s32.totalorder %s38_s10, %s38_s10 }
   0xc   :  { %p4163_p3 = scmp.ne.s32.totalorder %s38_s10, %s4162_s20  ;;  %p4168_p5 = scmp.lt.s32.totalorder %s4162_s20, %s4162_s20 }
   0xe   :  { %p4169_p6 = por %p4168_p5, %p4167_p4 }
  0x10   :  { %p4170_p7 = pnand %p4169_p6, %p4163_p3 }
  0x12   :  { %4173 = shalt.err (!%p4170_p7)
}
  0x13   :  { %s4272_s21 = smov 256   ;;  %s4273_s22 = smov 16  }
  0x14   :  { %43 = dma.hbm_to_vmem [thread:$0]  %s6163_s2, 4096, %s38_s10, [#allocation7], %s4272_s21, %s4272_s21, %s4273_s22  }
  0x15   :  { %s4174_s27 = scalar_lea.hbm %s6162_s1, 1024 }
  0x16   :  { %p4175_p8 = scmp.ne.s32.totalorder %s6162_s1, %s4174_s27  ;;  %p4178_p9 = scmp.lt.u32.totalorder %s4174_s27, %s6162_s1 }
  0x18   :  { %p4180_p10 = pnand %p4178_p9, %p4175_p8 }
  0x1a   :  { %4183 = shalt.err (!%p4180_p10)
}
  0x1b   :  { %s4184_s13 = scalar_lea.vmem %s4330_s12, 1024  ;;  %p4189_p12 = scmp.lt.s32.totalorder %s4330_s12, %s4330_s12 }
  0x1c   :  { %p4185_p11 = scmp.ne.s32.totalorder %s4330_s12, %s4184_s13  ;;  %p4190_p13 = scmp.lt.s32.totalorder %s4184_s13, %s4184_s13 }
  0x1e   :  { %p4191_p0 = por %p4190_p13, %p4189_p12 }
  0x20   :  { %p4192_p1 = pnand %p4191_p0, %p4185_p11 }
  0x22   :  { %4195 = shalt.err (!%p4192_p1)
}
  0x23   :  { %31 = dma.hbm_to_vmem [thread:$0]  %s6162_s1, 1024, %s4330_s12, [#allocation4], %s4272_s21, %s4272_s21, %s4273_s22  }
  0x24   :  { %s4274_s14 = smov [#allocation8]   ;;  %s4275_s16 = smov [#allocation9]  }
  0x25   :  { %s51_s15 = sshll.u32 %s4274_s14, 4  ;;  %s63_s17 = sshll.u32 %s4275_s16, 4  ;;  %s52_s15 = int_to_ptr.vmem [resolvable:$true] %s51_s15  ;;  %s4367_s17 = int_to_ptr.vmem [resolvable:$true] %s63_s17 }
  0x26   :  { %s4196_s20 = scalar_lea.hbm %s6165_s4, 4096 }
  0x27   :  { %p4197_p2 = scmp.ne.s32.totalorder %s6165_s4, %s4196_s20  ;;  %p4200_p3 = scmp.lt.u32.totalorder %s4196_s20, %s6165_s4 }
  0x29   :  { %p4202_p4 = pnand %p4200_p3, %p4197_p2 }
  0x2b   :  { %4205 = shalt.err (!%p4202_p4)
}
  0x2c   :  { %s4206_s1 = scalar_lea.vmem %s52_s15, 4096  ;;  %p4211_p6 = scmp.lt.s32.totalorder %s52_s15, %s52_s15 }
  0x2d   :  { %p4207_p5 = scmp.ne.s32.totalorder %s52_s15, %s4206_s1  ;;  %p4212_p7 = scmp.lt.s32.totalorder %s4206_s1, %s4206_s1 }
  0x2f   :  { %p4213_p8 = por %p4212_p7, %p4211_p6 }
  0x31   :  { %p4214_p9 = pnand %p4213_p8, %p4207_p5 }
  0x33   :  { %4217 = shalt.err (!%p4214_p9)
}
  0x34   :  { %57 = dma.hbm_to_vmem [thread:$0]  %s6165_s4, 4096, %s52_s15, [#allocation7], %s4272_s21, %s4272_s21, %s4273_s22  }
  0x35   :  { %s4218_s30 = scalar_lea.hbm %s6166_s5, 4096 }
  0x36   :  { %p4219_p10 = scmp.ne.s32.totalorder %s6166_s5, %s4218_s30  ;;  %p4222_p11 = scmp.lt.u32.totalorder %s4218_s30, %s6166_s5 }
  0x38   :  { %p4224_p12 = pnand %p4222_p11, %p4219_p10 }
  0x3a   :  { %4227 = shalt.err (!%p4224_p12)
}
  0x3b   :  { %s4228_s14 = scalar_lea.vmem %s4367_s17, 4096  ;;  %p4233_p0 = scmp.lt.s32.totalorder %s4367_s17, %s4367_s17 }
  0x3c   :  { %p4229_p13 = scmp.ne.s32.totalorder %s4367_s17, %s4228_s14  ;;  %p4234_p1 = scmp.lt.s32.totalorder %s4228_s14, %s4228_s14 }
  0x3e   :  { %p4235_p2 = por %p4234_p1, %p4233_p0 }
  0x40   :  { %p4236_p3 = pnand %p4235_p2, %p4229_p13 }
  0x42   :  { %4239 = shalt.err (!%p4236_p3)
}
  0x43   :  { %69 = dma.hbm_to_vmem [thread:$0]  %s6166_s5, 4096, %s4367_s17, [#allocation10], %s4272_s21, %s4272_s21, %s4273_s22  }
  0x44   :  { %4262 = dma.done.wait [#allocation4], 1024  }
  0x45   :  { %4263 = vsyncadd [#allocation4], 4294966272 }
  0x46   :  { %4264 = dma.done.wait [#allocation7], 8192  }
  0x47   :  { %4265 = vsyncadd [#allocation7], 4294959104 }
  0x48   :  { %4266 = dma.done.wait [#allocation10], 4096  }
  0x49   :  { %4267 = vsyncadd [#allocation10], 4294963200  ;;  %v6171_v0 = vmov 0   ;;  %v3636_v1 = vld [vmem:[#allocation3 + $0x4] ss:$16 sps:$4 sm:$0xff]   ;;  %vm180_vm0 = vcmask 1045504  }
  0x4a   :  { %225 = vmatprep.mubr.bf16.mxu0 %v6171_v0  ;;  %298 = vmatprep.mubr.bf16.mxu1 %v6171_v0  ;;  %v3638_v2 = vld [vmem:[#allocation3 + $0xc] ss:$16 sps:$4 sm:$0xff]   ;;  %v3640_v3 = vld [vmem:[#allocation3] ss:$16 sps:$4 sm:$0xff]   ;;  %v3641_v4 = vld [vmem:[#allocation3 + $0x8] ss:$16 sps:$4 sm:$0xff]  }
  0x4b   :  { %193 = vmatprep.subr.bf16.mxu0 %v3636_v1  ;;  %266 = vmatprep.subr.bf16.mxu1 %v3638_v2  ;;  %v3642_v5 = vld [vmem:[#allocation3 + $0x24] ss:$16 sps:$4 sm:$0x3f]   ;;  %v3644_v6 = vld [vmem:[#allocation3 + $0x2c] ss:$16 sps:$4 sm:$0x3f]  }
  0x4c   :  { %194 = vmatpush1.bf16.msra.mxu0 %v3640_v3  ;;  %267 = vmatpush1.bf16.msra.mxu1 %v3641_v4  ;;  %v89_v7 = vld [vmem:[%s6161_s0] sm:$0xff]  ;;  %v3647_v9 = vld [vmem:[#allocation3 + $0x28] ss:$16 sps:$4 sm:$0x3f]   ;;  %vm167_vm1 = vcmask 228352   ;;  %v91_v22 = vld [vmem:[%s6161_s0 + $0x10] sm:$0xff] }
  0x4d   :  { %3482 = vmatprep.subr.msk.bf16.mxu0 %vm180_vm0, %v3642_v5  ;;  %v3646_v8 = vld [vmem:[#allocation3 + $0x20] ss:$16 sps:$4 sm:$0x3f]   ;;  %3487 = vmatprep.subr.msk.bf16.mxu1 %vm180_vm0, %v3644_v6  ;;  %v90_v10 = vld [vmem:[%s6161_s0 + $0x8] sm:$0xff]  ;;  %v188_v12 = vsel %vm180_vm0, %v3647_v9, 0  ;;  %v92_v23 = vld [vmem:[%s6161_s0 + $0x18] sm:$0xff] }
  0x4e   :  { %v182_v11 = vsel %vm180_vm0, %v3646_v8, 0  ;;  %v97_v13 = vpack.c.bf16 %v90_v10, %v89_v7  ;;  %v4412_v14 = vld [vmem:[#allocation6 + $0x4] ss:$16 sps:$4 sm:$0xff]   ;;  %v4414_v15 = vld [vmem:[#allocation6 + $0xc] ss:$16 sps:$4 sm:$0xff]   ;;  %v98_v26 = vpack.c.bf16 %v92_v23, %v91_v22  ;;  %vm4278_vm2 = vmmov 0  }
  0x4f   :  { %v4416_v16 = vld [vmem:[#allocation6] ss:$16 sps:$4 sm:$0xff]   ;;  %v4418_v17 = vld [vmem:[#allocation6 + $0x8] ss:$16 sps:$4 sm:$0xff]   ;;  %v4421_v18 = vld [vmem:[#allocation6 + $0x24] ss:$16 sps:$4 sm:$0xff]  }
  0x50   :  { %196 = vmatpush1.bf16.msra.mxu0 %v182_v11  ;;  %269 = vmatpush1.bf16.msra.mxu1 %v188_v12  ;;  %v4424_v19 = vld [vmem:[#allocation6 + $0x2c] ss:$16 sps:$4 sm:$0xff]   ;;  %v4428_v20 = vld [vmem:[#allocation6 + $0x20] ss:$16 sps:$4 sm:$0xff]   ;;  %v4430_v21 = vld [vmem:[#allocation6 + $0x28] ss:$16 sps:$4 sm:$0xff]  }
  0x51   :  { %653 = vmatprep.subr.bf16.mxu0 %v4412_v14  ;;  %694 = vmatprep.subr.bf16.mxu1 %v4414_v15  ;;  %v4442_v24 = vld [vmem:[#allocation6 + $0x44] ss:$16 sps:$4 sm:$0xff]   ;;  %v4446_v25 = vld [vmem:[#allocation6 + $0x4c] ss:$16 sps:$4 sm:$0xff]   ;;  %v4448_v27 = vld [vmem:[#allocation6 + $0x40] ss:$16 sps:$4 sm:$0xff]  }
  0x52   :  { %v4452_v28 = vld [vmem:[#allocation6 + $0x48] ss:$16 sps:$4 sm:$0xff]   ;;  %v4456_v29 = vld [vmem:[#allocation6 + $0x64] ss:$16 sps:$4 sm:$0xff]   ;;  %v4458_v30 = vld [vmem:[#allocation6 + $0x6c] ss:$16 sps:$4 sm:$0xff]  }
  0x53   :  { %3483 = vmatmul.mubr.msk.bf16.vlgmr.msra.gmra.mrb[0].mxu0 %vm167_vm1, %v97_v13  ;;  %3488 = vmatmul.mubr.msk.bf16.vlgmr.msra.gmra.mrb[0].mxu1 %vm167_vm1, %v97_v13  ;;  %v4460_v31 = vld [vmem:[#allocation6 + $0x60] ss:$16 sps:$4 sm:$0xff]   ;;  %v4464_v32 = vld [vmem:[#allocation6 + $0x68] ss:$16 sps:$4 sm:$0xff]   ;;  %v4474_v35 = vld [vmem:[#allocation6 + $0x84] ss:$16 sps:$4 sm:$0xff]  }
  0x54   :  { %654 = vmatpush1.bf16.msra.mxu0 %v4416_v16  ;;  %695 = vmatpush1.bf16.msra.mxu1 %v4418_v17  ;;  %v93_v33 = vld [vmem:[%s6161_s0 + $0x20] sm:$0xff]  ;;  %v94_v34 = vld [vmem:[%s6161_s0 + $0x28] sm:$0xff]  ;;  %v95_v44 = vld [vmem:[%s6161_s0 + $0x30] sm:$0xff]  ;;  %s4279_s24 = smov [#allocation11]   ;;  %vm3455_vm3 = vcmask 80896  }
  0x55   :  { %655 = vmatprep.subr.bf16.mxu0 %v4421_v18  ;;  %696 = vmatprep.subr.bf16.mxu1 %v4424_v19  ;;  %v4478_v36 = vld [vmem:[#allocation6 + $0x8c] ss:$16 sps:$4 sm:$0xff]   ;;  %v99_v37 = vpack.c.bf16 %v94_v34, %v93_v33  ;;  %v4482_v38 = vld [vmem:[#allocation6 + $0x80] ss:$16 sps:$4 sm:$0xff]   ;;  %v4484_v39 = vld [vmem:[#allocation6 + $0x88] ss:$16 sps:$4 sm:$0xff]  }
  0x56   :  { %235 = vmatprep.mubr.bf16.mxu0 %v6171_v0  ;;  %308 = vmatprep.mubr.bf16.mxu1 %v6171_v0  ;;  %v4488_v40 = vld [vmem:[#allocation6 + $0xa4] ss:$16 sps:$4 sm:$0xff]   ;;  %v4492_v41 = vld [vmem:[#allocation6 + $0xac] ss:$16 sps:$4 sm:$0xff]   ;;  %v4494_v42 = vld [vmem:[#allocation6 + $0xa0] ss:$16 sps:$4 sm:$0xff]  }
  0x57   :  { %v4496_v43 = vld [vmem:[#allocation6 + $0xa8] ss:$16 sps:$4 sm:$0xff]   ;;  %v4510_v46 = vld [vmem:[#allocation6 + $0xc4] ss:$16 sps:$4 sm:$0xff]   ;;  %v4512_v47 = vld [vmem:[#allocation6 + $0xcc] ss:$16 sps:$4 sm:$0xff]  }
  0x58   :  { %656 = vmatpush1.bf16.msra.mxu0 %v4428_v20  ;;  %697 = vmatpush1.bf16.msra.mxu1 %v4430_v21  ;;  %v96_v45 = vld [vmem:[%s6161_s0 + $0x38] sm:$0xff]  ;;  %v4516_v48 = vld [vmem:[#allocation6 + $0xc0] ss:$16 sps:$4 sm:$0xff]   ;;  %v4520_v51 = vld [vmem:[#allocation6 + $0xe4] ss:$16 sps:$4 sm:$0xff]   ;;  %s3463_s25 = sshll.u32 %s4279_s24, 4  ;;  %s3464_s25 = int_to_ptr.vmem [resolvable:$true] %s3463_s25 }
  0x59   :  { %657 = vmatprep.subr.bf16.mxu0 %v4442_v24  ;;  %698 = vmatprep.subr.bf16.mxu1 %v4446_v25  ;;  %v4518_v49 = vld [vmem:[#allocation6 + $0xc8] ss:$16 sps:$4 sm:$0xff]   ;;  %v100_v50 = vpack.c.bf16 %v96_v45, %v95_v44  ;;  %v4522_v52 = vld [vmem:[#allocation6 + $0xec] ss:$16 sps:$4 sm:$0xff]   ;;  %v4528_v53 = vld [vmem:[#allocation6 + $0xe0] ss:$16 sps:$4 sm:$0xff]   ;;  %p4245_p5 = scmp.lt.s32.totalorder %s3464_s25, %s3464_s25 }
  0x5a   :  { %v4530_v54 = vld [vmem:[#allocation6 + $0xe8] ss:$16 sps:$4 sm:$0xff]   ;;  %v4546_v55 = vld [vmem:[#allocation8 + $0x4] ss:$16 sps:$4 sm:$0xff]   ;;  %v4548_v56 = vld [vmem:[#allocation8 + $0xc] ss:$16 sps:$4 sm:$0xff]  }
  0x5b   :  { %3484 = vmatmul.mubr.msk.bf16.gmra.mrb[4].mxu0 %vm167_vm1, %v98_v26  ;;  %3489 = vmatmul.mubr.msk.bf16.gmra.mrb[4].mxu1 %vm167_vm1, %v98_v26  ;;  %v4550_v57 = vld [vmem:[#allocation8] ss:$16 sps:$4 sm:$0xff]   ;;  %v4552_v58 = vld [vmem:[#allocation8 + $0x8] ss:$16 sps:$4 sm:$0xff]   ;;  %v4558_v59 = vld [vmem:[#allocation8 + $0x24] ss:$16 sps:$4 sm:$0xff]  }
  0x5c   :  { %658 = vmatpush1.bf16.msra.mxu0 %v4448_v27  ;;  %699 = vmatpush1.bf16.msra.mxu1 %v4452_v28  ;;  %v4560_v60 = vld [vmem:[#allocation8 + $0x2c] ss:$16 sps:$4 sm:$0xff]   ;;  %v4562_v61 = vld [vmem:[#allocation8 + $0x20] ss:$16 sps:$4 sm:$0xff]   ;;  %v4564_v62 = vld [vmem:[#allocation8 + $0x28] ss:$16 sps:$4 sm:$0xff]  }
  0x5d   :  { %659 = vmatprep.subr.bf16.mxu0 %v4456_v29  ;;  %700 = vmatprep.subr.bf16.mxu1 %v4458_v30  ;;  %6488 = vst [vmem:[#allocation16_spill] sm:$0xff] %v4564_v62  ;;  %v4570_v63 = vld [vmem:[#allocation8 + $0x44] ss:$16 sps:$4 sm:$0xff]   ;;  %v4572_v1 = vld [vmem:[#allocation8 + $0x4c] ss:$16 sps:$4 sm:$0xff]   ;;  %s4240_s26 = scalar_lea.vmem %s3464_s25, 128 }
  0x5e   :  { %245 = vmatprep.mubr.bf16.mxu0 %v6171_v0  ;;  %318 = vmatprep.mubr.bf16.mxu1 %v6171_v0  ;;  %6489 = vst [vmem:[#allocation17_spill] sm:$0xff] %v4570_v63  ;;  %6490 = vst [vmem:[#allocation18_spill] sm:$0xff] %v4572_v1  ;;  %v4574_v2 = vld [vmem:[#allocation8 + $0x40] ss:$16 sps:$4 sm:$0xff]   ;;  %v4576_v3 = vld [vmem:[#allocation8 + $0x48] ss:$16 sps:$4 sm:$0xff]   ;;  %p4241_p4 = scmp.ne.s32.totalorder %s3464_s25, %s4240_s26  ;;  %p4246_p6 = scmp.lt.s32.totalorder %s4240_s26, %s4240_s26 }
  0x5f   :  { %6491 = vst [vmem:[#allocation19_spill] sm:$0xff] %v4574_v2  ;;  %6492 = vst [vmem:[#allocation20_spill] sm:$0xff] %v4576_v3  ;;  %v4582_v4 = vld [vmem:[#allocation8 + $0x64] ss:$16 sps:$4 sm:$0xff]   ;;  %v4584_v5 = vld [vmem:[#allocation8 + $0x6c] ss:$16 sps:$4 sm:$0xff]  }
  0x60   :  { %660 = vmatpush1.bf16.msra.mxu0 %v4460_v31  ;;  %701 = vmatpush1.bf16.msra.mxu1 %v4464_v32  ;;  %6493 = vst [vmem:[#allocation21_spill] sm:$0xff] %v4582_v4  ;;  %6494 = vst [vmem:[#allocation22_spill] sm:$0xff] %v4584_v5  ;;  %v4586_v6 = vld [vmem:[#allocation8 + $0x60] ss:$16 sps:$4 sm:$0xff]   ;;  %v4588_v7 = vld [vmem:[#allocation8 + $0x68] ss:$16 sps:$4 sm:$0xff]   ;;  %p4247_p7 = por %p4246_p6, %p4245_p5 }
  0x61   :  { %661 = vmatprep.subr.bf16.mxu0 %v4474_v35  ;;  %702 = vmatprep.subr.bf16.mxu1 %v4478_v36  ;;  %6495 = vst [vmem:[#allocation23_spill] sm:$0xff] %v4586_v6  ;;  %6496 = vst [vmem:[#allocation24_spill] sm:$0xff] %v4588_v7  ;;  %v4594_v8 = vld [vmem:[#allocation8 + $0x84] ss:$16 sps:$4 sm:$0xff]   ;;  %v4596_v9 = vld [vmem:[#allocation8 + $0x8c] ss:$16 sps:$4 sm:$0xff]  }
  0x62   :  { %6497 = vst [vmem:[#allocation25_spill] sm:$0xff] %v4594_v8  ;;  %6498 = vst [vmem:[#allocation26_spill] sm:$0xff] %v4596_v9  ;;  %v4598_v10 = vld [vmem:[#allocation8 + $0x80] ss:$16 sps:$4 sm:$0xff]   ;;  %v4600_v11 = vld [vmem:[#allocation8 + $0x88] ss:$16 sps:$4 sm:$0xff]   ;;  %p4248_p8 = pnand %p4247_p7, %p4241_p4 }
  0x63   :  { %3485 = vmatmul.mubr.msk.bf16.gmra.mrb[8].mxu0 %vm167_vm1, %v99_v37  ;;  %3490 = vmatmul.mubr.msk.bf16.gmra.mrb[8].mxu1 %vm167_vm1, %v99_v37  ;;  %6499 = vst [vmem:[#allocation27_spill] sm:$0xff] %v4598_v10  ;;  %6500 = vst [vmem:[#allocation28_spill] sm:$0xff] %v4600_v11  ;;  %v4606_v12 = vld [vmem:[#allocation8 + $0xa4] ss:$16 sps:$4 sm:$0xff]   ;;  %v4608_v13 = vld [vmem:[#allocation8 + $0xac] ss:$16 sps:$4 sm:$0xff]  }
  0x64   :  { %662 = vmatpush1.bf16.msra.mxu0 %v4482_v38  ;;  %703 = vmatpush1.bf16.msra.mxu1 %v4484_v39  ;;  %6501 = vst [vmem:[#allocation29_spill] sm:$0xff] %v4606_v12  ;;  %6502 = vst [vmem:[#allocation30_spill] sm:$0xff] %v4608_v13  ;;  %v4610_v22 = vld [vmem:[#allocation8 + $0xa0] ss:$16 sps:$4 sm:$0xff]   ;;  %v4612_v23 = vld [vmem:[#allocation8 + $0xa8] ss:$16 sps:$4 sm:$0xff]  }
  0x65   :  { %663 = vmatprep.subr.bf16.mxu0 %v4488_v40  ;;  %704 = vmatprep.subr.bf16.mxu1 %v4492_v41  ;;  %6503 = vst [vmem:[#allocation31_spill] sm:$0xff] %v4610_v22  ;;  %6504 = vst [vmem:[#allocation32_spill] sm:$0xff] %v4612_v23  ;;  %v4618_v26 = vld [vmem:[#allocation8 + $0xc4] ss:$16 sps:$4 sm:$0xff]   ;;  %v4620_v33 = vld [vmem:[#allocation8 + $0xcc] ss:$16 sps:$4 sm:$0xff]  }
  0x66   :  { %255 = vmatprep.mubr.bf16.mxu0 %v6171_v0  ;;  %328 = vmatprep.mubr.bf16.mxu1 %v6171_v0  ;;  %6505 = vst [vmem:[#allocation33_spill] sm:$0xff] %v4618_v26  ;;  %6506 = vst [vmem:[#allocation34_spill] sm:$0xff] %v4620_v33  ;;  %v4622_v34 = vld [vmem:[#allocation8 + $0xc0] ss:$16 sps:$4 sm:$0xff]   ;;  %v4624_v37 = vld [vmem:[#allocation8 + $0xc8] ss:$16 sps:$4 sm:$0xff]  }
  0x67   :  { %6507 = vst [vmem:[#allocation35_spill] sm:$0xff] %v4622_v34  ;;  %6508 = vst [vmem:[#allocation36_spill] sm:$0xff] %v4624_v37  ;;  %v4630_v44 = vld [vmem:[#allocation8 + $0xe4] ss:$16 sps:$4 sm:$0xff]   ;;  %v4632_v45 = vld [vmem:[#allocation8 + $0xec] ss:$16 sps:$4 sm:$0xff]  }
  0x68   :  { %664 = vmatpush1.bf16.msra.mxu0 %v4494_v42  ;;  %705 = vmatpush1.bf16.msra.mxu1 %v4496_v43  ;;  %6509 = vst [vmem:[#allocation37_spill] sm:$0xff] %v4630_v44  ;;  %6510 = vst [vmem:[#allocation38_spill] sm:$0xff] %v4632_v45 }
  0x69   :  { %665 = vmatprep.subr.bf16.mxu0 %v4510_v46  ;;  %706 = vmatprep.subr.bf16.mxu1 %v4512_v47 }
  0x6b   :  { %3486 = vmatmul.mubr.msk.bf16.gmra.mrb[12].mxu0 %vm167_vm1, %v100_v50  ;;  %3491 = vmatmul.mubr.msk.bf16.gmra.mrb[12].mxu1 %vm167_vm1, %v100_v50  ;;  %v4634_v50 = vld [vmem:[#allocation8 + $0xe0] ss:$16 sps:$4 sm:$0xff]  }
  0x6c   :  { %666 = vmatpush1.bf16.msra.mxu0 %v4516_v48  ;;  %707 = vmatpush1.bf16.msra.mxu1 %v4518_v49  ;;  %6511 = vst [vmem:[#allocation39_spill] sm:$0xff] %v4634_v50 }
  0x6d   :  { %667 = vmatprep.subr.bf16.mxu0 %v4520_v51  ;;  %708 = vmatprep.subr.bf16.mxu1 %v4522_v52 }
  0x6e   :  { %685 = vmatprep.mubr.bf16.mxu0 %v6171_v0  ;;  %726 = vmatprep.mubr.bf16.mxu1 %v6171_v0 }
  0x70   :  { %668 = vmatpush1.bf16.msra.mxu0 %v4528_v53  ;;  %709 = vmatpush1.bf16.msra.mxu1 %v4530_v54 }
  0x71   :  { %918 = vmatprep.subr.bf16.mxu0 %v4546_v55  ;;  %959 = vmatprep.subr.bf16.mxu1 %v4548_v56 }
  0x73   :  { %686 = vmatmul.mubr.bf16.vlgmr.msra.gmra.mrb[16].mxu0 %v6171_v0  ;;  %727 = vmatmul.mubr.bf16.vlgmr.msra.gmra.mrb[16].mxu1 %v6171_v0 }
  0x74   :  { %950 = vmatprep.mubr.bf16.mxu0 %v6171_v0  ;;  %991 = vmatprep.mubr.bf16.mxu1 %v6171_v0  ;;  %v4636_v0 = vld [vmem:[#allocation8 + $0xe8] ss:$16 sps:$4 sm:$0xff]  }
  0x75   :  { %919 = vmatpush1.bf16.msra.mxu0 %v4550_v57  ;;  %960 = vmatpush1.bf16.msra.mxu1 %v4552_v58  ;;  %6512 = vst [vmem:[#allocation40_spill] sm:$0xff] %v4636_v0 }
  0x76   :  { %920 = vmatprep.subr.bf16.mxu0 %v4558_v59  ;;  %961 = vmatprep.subr.bf16.mxu1 %v4560_v60 }
  0x79   :  { %921 = vmatpush1.bf16.msra.mxu0 %v4562_v61  ;;  %962 = vmatpush1.bf16.msra.mxu1 %v4564_v62 }
  0x7a   :  { %922 = vmatprep.subr.bf16.mxu0 %v4570_v63  ;;  %963 = vmatprep.subr.bf16.mxu1 %v4572_v1 }
  0x7d   :  { %923 = vmatpush1.bf16.msra.mxu0 %v4574_v2  ;;  %964 = vmatpush1.bf16.msra.mxu1 %v4576_v3 }
  0x7e   :  { %924 = vmatprep.subr.bf16.mxu0 %v4582_v4  ;;  %965 = vmatprep.subr.bf16.mxu1 %v4584_v5 }
  0x81   :  { %925 = vmatpush1.bf16.msra.mxu0 %v4586_v6  ;;  %966 = vmatpush1.bf16.msra.mxu1 %v4588_v7 }
  0x82   :  { %926 = vmatprep.subr.bf16.mxu0 %v4594_v8  ;;  %967 = vmatprep.subr.bf16.mxu1 %v4596_v9 }
  0x85   :  { %927 = vmatpush1.bf16.msra.mxu0 %v4598_v10  ;;  %968 = vmatpush1.bf16.msra.mxu1 %v4600_v11 }
  0x86   :  { %928 = vmatprep.subr.bf16.mxu0 %v4606_v12  ;;  %969 = vmatprep.subr.bf16.mxu1 %v4608_v13 }
  0x89   :  { %929 = vmatpush1.bf16.msra.mxu0 %v4610_v22  ;;  %970 = vmatpush1.bf16.msra.mxu1 %v4612_v23 }
  0x8a   :  { %930 = vmatprep.subr.bf16.mxu0 %v4618_v26  ;;  %971 = vmatprep.subr.bf16.mxu1 %v4620_v33  ;;  %v4642_v33 = vld [vmem:[#allocation9 + $0x4] ss:$16 sps:$4 sm:$0xff]  }
  0x8b   :  { %6513 = vst [vmem:[#allocation41_spill] sm:$0xff] %v4642_v33 }
  0x8d   :  { %931 = vmatpush1.bf16.msra.mxu0 %v4622_v34  ;;  %972 = vmatpush1.bf16.msra.mxu1 %v4624_v37  ;;  %v4644_v34 = vld [vmem:[#allocation9 + $0xc] ss:$16 sps:$4 sm:$0xff]   ;;  %v111_v37 = vlaneseq }
  0x8e   :  { %932 = vmatprep.subr.bf16.mxu0 %v4630_v44  ;;  %973 = vmatprep.subr.bf16.mxu1 %v4632_v45  ;;  %6514 = vst [vmem:[#allocation42_spill] sm:$0xff] %v4644_v34 }
  0x8f   :  { %v4648_v26 = vshrl.u32 %v111_v37, 7 }
  0x91   :  { %933 = vmatpush1.bf16.msra.mxu0 %v4634_v50  ;;  %974 = vmatpush1.bf16.msra.mxu1 %v4636_v0  ;;  %6515 = vst [vmem:[#allocation43_spill] sm:$0xff] %v4648_v26  ;;  %v6209_v23 = vsub.s32 2, %v4648_v26  ;;  %v6218_v44 = vsub.s32 3, %v4648_v26  ;;  %v6219_v45 = vsub.s32 0, %v4648_v26  ;;  %v109_v0 = vld [vmem:[%s6164_s3] sm:$0xf] }
  0x92   :  { %1160 = vmatprep.subr.bf16.mxu0 %v4642_v33  ;;  %1201 = vmatprep.subr.bf16.mxu1 %v4644_v34  ;;  %v6226_v50 = vsub.s32 1, %v4648_v26 }
  0x93   :  { %v4659_v33 = vrot.slane %v109_v0, %v6209_v23  ;;  %v4667_v22 = vrot.slane %v109_v0, %v6218_v44  ;;  %v114_v13 = vrot.slane %v109_v0, %v6219_v45 }
  0x94   :  { %v118_v10 = vrot.slane %v109_v0, %v6226_v50 }
 0x126   :  { %v4661_v34 = vpop.f32.mrb[0].mxu0  ;;  %v4663_v37 = vpop.f32.mrb[0].mxu1 }
 0x127   :  { %v229_v12 = vpop.f32.mrb[1].mxu0  ;;  %v302_v11 = vpop.f32.mrb[1].mxu1 }
 0x128   :  { %v231_v9 = vpop.f32.mrb[2].mxu0  ;;  %v304_v8 = vpop.f32.mrb[2].mxu1 }
 0x129   :  { %v4673_v23 = vadd.f32 %v231_v9, %v114_v13  ;;  %v233_v7 = vpop.f32.mrb[3].mxu0  ;;  %v4676_v6 = vadd.f32 %v304_v8, %v4659_v33  ;;  %v306_v5 = vpop.f32.mrb[3].mxu1 }
 0x12a   :  { %v4678_v4 = vadd.f32 %v233_v7, %v118_v10  ;;  %v4681_v44 = vadd.f32 %v306_v5, %v4667_v22 }
 0x12b   :  { %6516 = vst [vmem:[#allocation44_spill] sm:$0xff] %v4673_v23  ;;  %6517 = vst [vmem:[#allocation45_spill] sm:$0xff] %v4676_v6 }
 0x12c   :  { %6518 = vst [vmem:[#allocation46_spill] sm:$0xff] %v4678_v4  ;;  %6519 = vst [vmem:[#allocation47_spill] sm:$0xff] %v4681_v44 }
 0x12e   :  { %v237_v45 = vpop.f32.mrb[4].mxu0  ;;  %v310_v3 = vpop.f32.mrb[4].mxu1 }
 0x12f   :  { %v4683_v2 = vadd.f32 %v237_v45, %v114_v13  ;;  %v239_v26 = vpop.f32.mrb[5].mxu0  ;;  %v4686_v0 = vadd.f32 %v310_v3, %v4659_v33  ;;  %v312_v9 = vpop.f32.mrb[5].mxu1 }
 0x130   :  { %v4688_v50 = vadd.f32 %v239_v26, %v118_v10  ;;  %v241_v23 = vpop.f32.mrb[6].mxu0  ;;  %v4691_v8 = vadd.f32 %v312_v9, %v4667_v22  ;;  %v314_v7 = vpop.f32.mrb[6].mxu1 }
 0x131   :  { %6520 = vst [vmem:[#allocation48_spill] sm:$0xff] %v4683_v2  ;;  %6521 = vst [vmem:[#allocation49_spill] sm:$0xff] %v4686_v0  ;;  %v4693_v4 = vadd.f32 %v241_v23, %v114_v13  ;;  %v243_v5 = vpop.f32.mrb[7].mxu0  ;;  %v4696_v44 = vadd.f32 %v314_v7, %v4659_v33  ;;  %v316_v45 = vpop.f32.mrb[7].mxu1 }
 0x132   :  { %6522 = vst [vmem:[#allocation50_spill] sm:$0xff] %v4688_v50  ;;  %6523 = vst [vmem:[#allocation51_spill] sm:$0xff] %v4691_v8  ;;  %v4698_v2 = vadd.f32 %v243_v5, %v118_v10  ;;  %v4701_v3 = vadd.f32 %v316_v45, %v4667_v22 }
 0x133   :  { %6524 = vst [vmem:[#allocation52_spill] sm:$0xff] %v4693_v4  ;;  %6525 = vst [vmem:[#allocation53_spill] sm:$0xff] %v4696_v44 }
 0x134   :  { %6526 = vst [vmem:[#allocation54_spill] sm:$0xff] %v4698_v2  ;;  %6527 = vst [vmem:[#allocation55_spill] sm:$0xff] %v4701_v3 }
 0x136   :  { %v247_v0 = vpop.f32.mrb[8].mxu0  ;;  %v320_v26 = vpop.f32.mrb[8].mxu1 }
 0x137   :  { %v4703_v50 = vadd.f32 %v247_v0, %v114_v13  ;;  %v249_v6 = vpop.f32.mrb[9].mxu0  ;;  %v4706_v9 = vadd.f32 %v320_v26, %v4659_v33  ;;  %v322_v23 = vpop.f32.mrb[9].mxu1 }
 0x138   :  { %v4708_v4 = vadd.f32 %v249_v6, %v118_v10  ;;  %v251_v8 = vpop.f32.mrb[10].mxu0  ;;  %v4711_v7 = vadd.f32 %v322_v23, %v4667_v22  ;;  %v324_v5 = vpop.f32.mrb[10].mxu1 }
 0x139   :  { %6528 = vst [vmem:[#allocation56_spill] sm:$0xff] %v4703_v50  ;;  %6529 = vst [vmem:[#allocation57_spill] sm:$0xff] %v4706_v9  ;;  %v4713_v2 = vadd.f32 %v251_v8, %v114_v13  ;;  %v253_v45 = vpop.f32.mrb[11].mxu0  ;;  %v4716_v3 = vadd.f32 %v324_v5, %v4659_v33  ;;  %v326_v0 = vpop.f32.mrb[11].mxu1 }
 0x13a   :  { %6530 = vst [vmem:[#allocation58_spill] sm:$0xff] %v4708_v4  ;;  %6531 = vst [vmem:[#allocation59_spill] sm:$0xff] %v4711_v7  ;;  %v4718_v50 = vadd.f32 %v253_v45, %v118_v10  ;;  %v4721_v26 = vadd.f32 %v326_v0, %v4667_v22 }
 0x13b   :  { %6532 = vst [vmem:[#allocation60_spill] sm:$0xff] %v4713_v2  ;;  %6533 = vst [vmem:[#allocation61_spill] sm:$0xff] %v4716_v3 }
 0x13c   :  { %6534 = vst [vmem:[#allocation62_spill] sm:$0xff] %v4718_v50  ;;  %6535 = vst [vmem:[#allocation63_spill] sm:$0xff] %v4721_v26 }
 0x13e   :  { %v257_v9 = vpop.f32.mrb[12].mxu0  ;;  %v330_v6 = vpop.f32.mrb[12].mxu1 }
 0x13f   :  { %v4723_v4 = vadd.f32 %v257_v9, %v114_v13  ;;  %v259_v44 = vpop.f32.mrb[13].mxu0  ;;  %v4726_v23 = vadd.f32 %v330_v6, %v4659_v33  ;;  %v332_v8 = vpop.f32.mrb[13].mxu1 }
 0x140   :  { %v4728_v2 = vadd.f32 %v259_v44, %v118_v10  ;;  %v261_v7 = vpop.f32.mrb[14].mxu0  ;;  %v4731_v5 = vadd.f32 %v332_v8, %v4667_v22  ;;  %v334_v45 = vpop.f32.mrb[14].mxu1  ;;  %v228_v44 = vadd.f32 %v4661_v34, %v114_v13  ;;  %v230_v8 = vadd.f32 %v229_v12, %v118_v10 }
 0x141   :  { %6536 = vst [vmem:[#allocation64_spill] sm:$0xff] %v4723_v4  ;;  %6537 = vst [vmem:[#allocation65_spill] sm:$0xff] %v4726_v23  ;;  %v4733_v50 = vadd.f32 %v261_v7, %v114_v13  ;;  %v263_v0 = vpop.f32.mrb[15].mxu0  ;;  %v4736_v26 = vadd.f32 %v334_v45, %v4659_v33  ;;  %v336_v9 = vpop.f32.mrb[15].mxu1 }
 0x142   :  { %6538 = vst [vmem:[#allocation66_spill] sm:$0xff] %v4728_v2  ;;  %6539 = vst [vmem:[#allocation67_spill] sm:$0xff] %v4731_v5  ;;  %v4738_v4 = vadd.f32 %v263_v0, %v118_v10  ;;  %v4741_v6 = vadd.f32 %v336_v9, %v4667_v22  ;;  %v301_v2 = vadd.f32 %v4663_v37, %v4659_v33 }
 0x143   :  { %6540 = vst [vmem:[#allocation68_spill] sm:$0xff] %v4733_v50  ;;  %6541 = vst [vmem:[#allocation69_spill] sm:$0xff] %v4736_v26  ;;  %v303_v5 = vadd.f32 %v302_v11, %v4667_v22 }
 0x144   :  { %6542 = vst [vmem:[#allocation70_spill] sm:$0xff] %v4738_v4  ;;  %6543 = vst [vmem:[#allocation71_spill] sm:$0xff] %v4741_v6 }
 0x146   :  { %v687_v7 = vpop.f32.mrb[16].mxu0  ;;  %v728_v50 = vpop.f32.mrb[16].mxu1 }
 0x147   :  { %v735_v23 = vadd.f32 %v687_v7, %v228_v44  ;;  %v737_v3 = vadd.f32 %v728_v50, %v301_v2  ;;  %v689_v45 = vpop.f32.mrb[17].mxu0  ;;  %v730_v26 = vpop.f32.mrb[17].mxu1  ;;  %v4758_v7 = vld [vmem:[#allocation9 + $0x2c] ss:$16 sps:$4 sm:$0xff]  }
 0x148   :  { %v736_v1 = vadd.f32 %v689_v45, %v230_v8  ;;  %v738_v0 = vadd.f32 %v730_v26, %v303_v5  ;;  %v691_v4 = vpop.f32.mrb[18].mxu0  ;;  %v732_v63 = vpop.f32.mrb[18].mxu1  ;;  %v4750_v5 = vld [vmem:[#allocation9] ss:$16 sps:$4 sm:$0xff]   ;;  %v4756_v8 = vld [vmem:[#allocation9 + $0x24] ss:$16 sps:$4 sm:$0xff]  }
 0x149   :  { %v739_v9 = vmul.f32 0.5, %v735_v23  ;;  %v692_v6 = vpop.f32.mrb[19].mxu0  ;;  %v733_v62 = vpop.f32.mrb[19].mxu1  ;;  %v4764_v45 = vld [vmem:[#allocation9 + $0x20] ss:$16 sps:$4 sm:$0xff]  }
 0x14a   :  { %v743_v13 = vmul.f32 0.5, %v736_v1  ;;  %v748_v10 = vmul.f32 0.5, %v738_v0  ;;  %v4752_v6 = vld [vmem:[#allocation9 + $0x8] ss:$16 sps:$4 sm:$0xff]  }
 0x14b   :  { %3800 = vtanh.f32 %v739_v9  ;;  %v4766_v0 = vld [vmem:[#allocation9 + $0x28] ss:$16 sps:$4 sm:$0xff]   ;;  %v4770_v9 = vld [vmem:[#allocation9 + $0x44] ss:$16 sps:$4 sm:$0xff]  }
 0x14c   :  { %3802 = vtanh.f32 %v743_v13  ;;  %v4772_v13 = vld [vmem:[#allocation9 + $0x4c] ss:$16 sps:$4 sm:$0xff]  }
 0x14d   :  { %3804 = vtanh.f32 %v737_v3 }
 0x14e   :  { %3806 = vtanh.f32 %v748_v10  ;;  %v6544_v10 = vmov 0  }
 0x155   :  { %v3801_v12 = vpop.eup %3800 }
 0x156   :  { %v3803_v11 = vpop.eup %3802  ;;  %v741_v22 = vmul.f32 0.5, %v3801_v12  ;;  %v4778_v12 = vld [vmem:[#allocation9 + $0x40] ss:$16 sps:$4 sm:$0xff]  }
 0x157   :  { %v745_v33 = vmul.f32 0.5, %v3803_v11  ;;  %v3805_v34 = vpop.eup %3804  ;;  %v4780_v11 = vld [vmem:[#allocation9 + $0x48] ss:$16 sps:$4 sm:$0xff]  }
 0x158   :  { %v742_v2 = vadd.f32 0.5, %v741_v22  ;;  %v3807_v62 = vpop.eup %3806  ;;  %v4784_v22 = vld [vmem:[#allocation9 + $0x64] ss:$16 sps:$4 sm:$0xff]  }
 0x159   :  { %v746_v50 = vadd.f32 0.5, %v745_v33  ;;  %v750_v63 = vmul.f32 0.5, %v3807_v62  ;;  %v4786_v33 = vld [vmem:[#allocation9 + $0x6c] ss:$16 sps:$4 sm:$0xff]   ;;  %v4804_v62 = vld [vmem:[#allocation9 + $0x88] ss:$16 sps:$4 sm:$0xff]  }
 0x15a   :  { %v753_v37 = vmul.f32 %v3805_v34, %v742_v2  ;;  %v4790_v2 = vld [vmem:[#allocation9 + $0x60] ss:$16 sps:$4 sm:$0xff]   ;;  %v4792_v34 = vld [vmem:[#allocation9 + $0x68] ss:$16 sps:$4 sm:$0xff]   ;;  %6549 = vst [vmem:[#allocation76_spill] sm:$0xff] %v4804_v62 }
 0x15b   :  { %v752_v26 = vmul.f32 0.0, %v746_v50  ;;  %v751_v1 = vadd.f32 0.5, %v750_v63  ;;  %6545 = vst [vmem:[#allocation72_spill] sm:$0xff] %v4792_v34  ;;  %v4796_v50 = vld [vmem:[#allocation9 + $0x84] ss:$16 sps:$4 sm:$0xff]  }
 0x15c   :  { %6546 = vst [vmem:[#allocation73_spill] sm:$0xff] %v4796_v50  ;;  %v4808_v63 = vld [vmem:[#allocation9 + $0xa4] ss:$16 sps:$4 sm:$0xff]  }
 0x15d   :  { %v4747_v4 = vadd.f32 %v753_v37, %v752_v26  ;;  %v4798_v37 = vld [vmem:[#allocation9 + $0x8c] ss:$16 sps:$4 sm:$0xff]   ;;  %v4802_v26 = vld [vmem:[#allocation9 + $0x80] ss:$16 sps:$4 sm:$0xff]   ;;  %6550 = vst [vmem:[#allocation77_spill] sm:$0xff] %v4808_v63 }
 0x15e   :  { %6547 = vst [vmem:[#allocation74_spill] sm:$0xff] %v4798_v37  ;;  %6548 = vst [vmem:[#allocation75_spill] sm:$0xff] %v4802_v26 }
 0x15f   :  { %3808 = vtanh.f32 %v4747_v4 }
 0x169   :  { %v3809_v23 = vpop.eup %3808 }
 0x16a   :  { %v756_v3 = vmul.f32 %v3809_v23, %v751_v1  ;;  %v4810_v1 = vld [vmem:[#allocation9 + $0xac] ss:$16 sps:$4 sm:$0xff]   ;;  %v4814_v23 = vld [vmem:[#allocation9 + $0xa0] ss:$16 sps:$4 sm:$0xff]  }
 0x16b   :  { %6551 = vst [vmem:[#allocation78_spill] sm:$0xff] %v4810_v1  ;;  %6552 = vst [vmem:[#allocation79_spill] sm:$0xff] %v4814_v23 }
 0x16c   :  { %v4754_v44 = vpack.c.bf16 %v756_v3, %v756_v3  ;;  %v4816_v3 = vld [vmem:[#allocation9 + $0xa8] ss:$16 sps:$4 sm:$0xff]  }
 0x16e   :  { %951 = vmatmul.mubr.bf16.vlgmr.msra.gmra.mrb[20].mxu0 %v4754_v44  ;;  %992 = vmatmul.mubr.bf16.vlgmr.msra.gmra.mrb[20].mxu1 %v4754_v44 }
 0x16f   :  { %1161 = vmatpush1.bf16.msra.mxu0 %v4750_v5  ;;  %1202 = vmatpush1.bf16.msra.mxu1 %v4752_v6 }
 0x170   :  { %1162 = vmatprep.subr.bf16.mxu0 %v4756_v8  ;;  %1203 = vmatprep.subr.bf16.mxu1 %v4758_v7 }
 0x171   :  { %1192 = vmatprep.mubr.bf16.mxu0 %v6544_v10  ;;  %1233 = vmatprep.mubr.bf16.mxu1 %v6544_v10 }
 0x173   :  { %1163 = vmatpush1.bf16.msra.mxu0 %v4764_v45  ;;  %1204 = vmatpush1.bf16.msra.mxu1 %v4766_v0 }
 0x174   :  { %1164 = vmatprep.subr.bf16.mxu0 %v4770_v9  ;;  %1205 = vmatprep.subr.bf16.mxu1 %v4772_v13 }
 0x177   :  { %1165 = vmatpush1.bf16.msra.mxu0 %v4778_v12  ;;  %1206 = vmatpush1.bf16.msra.mxu1 %v4780_v11 }
 0x178   :  { %1166 = vmatprep.subr.bf16.mxu0 %v4784_v22  ;;  %1207 = vmatprep.subr.bf16.mxu1 %v4786_v33 }
 0x17b   :  { %1167 = vmatpush1.bf16.msra.mxu0 %v4790_v2  ;;  %1208 = vmatpush1.bf16.msra.mxu1 %v4792_v34  ;;  %v4820_v34 = vld [vmem:[#allocation9 + $0xc4] ss:$16 sps:$4 sm:$0xff]  }
 0x17c   :  { %1168 = vmatprep.subr.bf16.mxu0 %v4796_v50  ;;  %1209 = vmatprep.subr.bf16.mxu1 %v4798_v37  ;;  %v4822_v50 = vld [vmem:[#allocation9 + $0xcc] ss:$16 sps:$4 sm:$0xff]   ;;  %v4826_v37 = vld [vmem:[#allocation9 + $0xc0] ss:$16 sps:$4 sm:$0xff]  }
 0x17f   :  { %1169 = vmatpush1.bf16.msra.mxu0 %v4802_v26  ;;  %1210 = vmatpush1.bf16.msra.mxu1 %v4804_v62  ;;  %v4828_v26 = vld [vmem:[#allocation9 + $0xc8] ss:$16 sps:$4 sm:$0xff]   ;;  %v4832_v62 = vld [vmem:[#allocation9 + $0xe4] ss:$16 sps:$4 sm:$0xff]  }
 0x180   :  { %1170 = vmatprep.subr.bf16.mxu0 %v4808_v63  ;;  %1211 = vmatprep.subr.bf16.mxu1 %v4810_v1  ;;  %v4834_v63 = vld [vmem:[#allocation9 + $0xec] ss:$16 sps:$4 sm:$0xff]   ;;  %v4838_v1 = vld [vmem:[#allocation9 + $0xe0] ss:$16 sps:$4 sm:$0xff]  }
 0x183   :  { %1171 = vmatpush1.bf16.msra.mxu0 %v4814_v23  ;;  %1212 = vmatpush1.bf16.msra.mxu1 %v4816_v3  ;;  %v4840_v23 = vld [vmem:[#allocation9 + $0xe8] ss:$16 sps:$4 sm:$0xff]  }
 0x184   :  { %1172 = vmatprep.subr.bf16.mxu0 %v4820_v34  ;;  %1213 = vmatprep.subr.bf16.mxu1 %v4822_v50 }
 0x187   :  { %1173 = vmatpush1.bf16.msra.mxu0 %v4826_v37  ;;  %1214 = vmatpush1.bf16.msra.mxu1 %v4828_v26 }
 0x188   :  { %1174 = vmatprep.subr.bf16.mxu0 %v4832_v62  ;;  %1215 = vmatprep.subr.bf16.mxu1 %v4834_v63 }
 0x18b   :  { %1175 = vmatpush1.bf16.msra.mxu0 %v4838_v1  ;;  %1216 = vmatpush1.bf16.msra.mxu1 %v4840_v23 }
 0x18c   :  { %1270 = vmatprep.subr.bf16.mxu0 %v4412_v14  ;;  %1311 = vmatprep.subr.bf16.mxu1 %v4414_v15  ;;  %v6553_v14 = vld [vmem:[#allocation16_spill] sm:$0xff]  ;;  %v6554_v15 = vld [vmem:[#allocation17_spill] sm:$0xff] }
 0x18e   :  { %1193 = vmatmul.mubr.bf16.vlgmr.msra.gmra.mrb[24].mxu0 %v6544_v10  ;;  %1234 = vmatmul.mubr.bf16.vlgmr.msra.gmra.mrb[24].mxu1 %v6544_v10 }
 0x18f   :  { %1271 = vmatpush1.bf16.msra.mxu0 %v4416_v16  ;;  %1312 = vmatpush1.bf16.msra.mxu1 %v4418_v17  ;;  %v6555_v16 = vld [vmem:[#allocation18_spill] sm:$0xff]  ;;  %v6556_v17 = vld [vmem:[#allocation19_spill] sm:$0xff] }
 0x190   :  { %1272 = vmatprep.subr.bf16.mxu0 %v4421_v18  ;;  %1313 = vmatprep.subr.bf16.mxu1 %v4424_v19  ;;  %v6557_v18 = vld [vmem:[#allocation20_spill] sm:$0xff]  ;;  %v6558_v19 = vld [vmem:[#allocation21_spill] sm:$0xff] }
 0x191   :  { %1302 = vmatprep.mubr.bf16.mxu0 %v6544_v10  ;;  %1343 = vmatprep.mubr.bf16.mxu1 %v6544_v10 }
 0x193   :  { %1273 = vmatpush1.bf16.msra.mxu0 %v4428_v20  ;;  %1314 = vmatpush1.bf16.msra.mxu1 %v4430_v21  ;;  %v6559_v20 = vld [vmem:[#allocation22_spill] sm:$0xff]  ;;  %v6560_v21 = vld [vmem:[#allocation23_spill] sm:$0xff] }
 0x194   :  { %1274 = vmatprep.subr.bf16.mxu0 %v4442_v24  ;;  %1315 = vmatprep.subr.bf16.mxu1 %v4446_v25  ;;  %v6561_v24 = vld [vmem:[#allocation24_spill] sm:$0xff]  ;;  %v6562_v25 = vld [vmem:[#allocation25_spill] sm:$0xff] }
 0x197   :  { %1275 = vmatpush1.bf16.msra.mxu0 %v4448_v27  ;;  %1316 = vmatpush1.bf16.msra.mxu1 %v4452_v28  ;;  %v6563_v27 = vld [vmem:[#allocation26_spill] sm:$0xff]  ;;  %v6564_v28 = vld [vmem:[#allocation27_spill] sm:$0xff] }
 0x198   :  { %1276 = vmatprep.subr.bf16.mxu0 %v4456_v29  ;;  %1317 = vmatprep.subr.bf16.mxu1 %v4458_v30  ;;  %v6565_v29 = vld [vmem:[#allocation28_spill] sm:$0xff]  ;;  %v6566_v30 = vld [vmem:[#allocation29_spill] sm:$0xff] }
 0x19b   :  { %1277 = vmatpush1.bf16.msra.mxu0 %v4460_v31  ;;  %1318 = vmatpush1.bf16.msra.mxu1 %v4464_v32  ;;  %v6567_v31 = vld [vmem:[#allocation30_spill] sm:$0xff]  ;;  %v6568_v32 = vld [vmem:[#allocation31_spill] sm:$0xff] }
 0x19c   :  { %1278 = vmatprep.subr.bf16.mxu0 %v4474_v35  ;;  %1319 = vmatprep.subr.bf16.mxu1 %v4478_v36  ;;  %v6569_v35 = vld [vmem:[#allocation32_spill] sm:$0xff]  ;;  %v6570_v36 = vld [vmem:[#allocation33_spill] sm:$0xff] }
 0x19f   :  { %1279 = vmatpush1.bf16.msra.mxu0 %v4482_v38  ;;  %1320 = vmatpush1.bf16.msra.mxu1 %v4484_v39  ;;  %v6571_v38 = vld [vmem:[#allocation34_spill] sm:$0xff]  ;;  %v6572_v39 = vld [vmem:[#allocation35_spill] sm:$0xff] }
 0x1a0   :  { %1280 = vmatprep.subr.bf16.mxu0 %v4488_v40  ;;  %1321 = vmatprep.subr.bf16.mxu1 %v4492_v41  ;;  %v6573_v40 = vld [vmem:[#allocation36_spill] sm:$0xff]  ;;  %v6574_v41 = vld [vmem:[#allocation37_spill] sm:$0xff] }
 0x1a3   :  { %1281 = vmatpush1.bf16.msra.mxu0 %v4494_v42  ;;  %1322 = vmatpush1.bf16.msra.mxu1 %v4496_v43  ;;  %v6575_v42 = vld [vmem:[#allocation38_spill] sm:$0xff]  ;;  %v6576_v43 = vld [vmem:[#allocation39_spill] sm:$0xff] }
 0x1a4   :  { %1282 = vmatprep.subr.bf16.mxu0 %v4510_v46  ;;  %1323 = vmatprep.subr.bf16.mxu1 %v4512_v47  ;;  %v6577_v46 = vld [vmem:[#allocation40_spill] sm:$0xff]  ;;  %v6578_v47 = vld [vmem:[#allocation41_spill] sm:$0xff] }
 0x1a7   :  { %1283 = vmatpush1.bf16.msra.mxu0 %v4516_v48  ;;  %1324 = vmatpush1.bf16.msra.mxu1 %v4518_v49  ;;  %v6579_v48 = vld [vmem:[#allocation42_spill] sm:$0xff] }
 0x1a8   :  { %1284 = vmatprep.subr.bf16.mxu0 %v4520_v51  ;;  %1325 = vmatprep.subr.bf16.mxu1 %v4522_v52 }
 0x1ab   :  { %1285 = vmatpush1.bf16.msra.mxu0 %v4528_v53  ;;  %1326 = vmatpush1.bf16.msra.mxu1 %v4530_v54 }
 0x1ac   :  { %1375 = vmatprep.subr.bf16.mxu0 %v4546_v55  ;;  %1416 = vmatprep.subr.bf16.mxu1 %v4548_v56 }
 0x1ae   :  { %1303 = vmatmul.mubr.bf16.vlgmr.msra.gmra.mrb[28].mxu0 %v4754_v44  ;;  %1344 = vmatmul.mubr.bf16.vlgmr.msra.gmra.mrb[28].mxu1 %v4754_v44 }
 0x1af   :  { %1376 = vmatpush1.bf16.msra.mxu0 %v4550_v57  ;;  %1417 = vmatpush1.bf16.msra.mxu1 %v4552_v58 }
 0x1b0   :  { %1377 = vmatprep.subr.bf16.mxu0 %v4558_v59  ;;  %1418 = vmatprep.subr.bf16.mxu1 %v4560_v60 }
 0x1b1   :  { %1407 = vmatprep.mubr.bf16.mxu0 %v6544_v10  ;;  %1448 = vmatprep.mubr.bf16.mxu1 %v6544_v10 }
 0x1b3   :  { %1378 = vmatpush1.bf16.msra.mxu0 %v4562_v61  ;;  %1419 = vmatpush1.bf16.msra.mxu1 %v6553_v14 }
 0x1b4   :  { %1379 = vmatprep.subr.bf16.mxu0 %v6554_v15  ;;  %1420 = vmatprep.subr.bf16.mxu1 %v6555_v16 }
 0x1b7   :  { %1380 = vmatpush1.bf16.msra.mxu0 %v6556_v17  ;;  %1421 = vmatpush1.bf16.msra.mxu1 %v6557_v18 }
 0x1b8   :  { %1381 = vmatprep.subr.bf16.mxu0 %v6558_v19  ;;  %1422 = vmatprep.subr.bf16.mxu1 %v6559_v20 }
 0x1bb   :  { %1382 = vmatpush1.bf16.msra.mxu0 %v6560_v21  ;;  %1423 = vmatpush1.bf16.msra.mxu1 %v6561_v24 }
 0x1bc   :  { %1383 = vmatprep.subr.bf16.mxu0 %v6562_v25  ;;  %1424 = vmatprep.subr.bf16.mxu1 %v6563_v27 }
 0x1bf   :  { %1384 = vmatpush1.bf16.msra.mxu0 %v6564_v28  ;;  %1425 = vmatpush1.bf16.msra.mxu1 %v6565_v29 }
 0x1c0   :  { %1385 = vmatprep.subr.bf16.mxu0 %v6566_v30  ;;  %1426 = vmatprep.subr.bf16.mxu1 %v6567_v31 }
 0x1c3   :  { %1386 = vmatpush1.bf16.msra.mxu0 %v6568_v32  ;;  %1427 = vmatpush1.bf16.msra.mxu1 %v6569_v35 }
 0x1c4   :  { %1387 = vmatprep.subr.bf16.mxu0 %v6570_v36  ;;  %1428 = vmatprep.subr.bf16.mxu1 %v6571_v38 }
 0x1c7   :  { %1388 = vmatpush1.bf16.msra.mxu0 %v6572_v39  ;;  %1429 = vmatpush1.bf16.msra.mxu1 %v6573_v40 }
 0x1c8   :  { %1389 = vmatprep.subr.bf16.mxu0 %v6574_v41  ;;  %1430 = vmatprep.subr.bf16.mxu1 %v6575_v42  ;;  %v4923_v42 = vld [vmem:[%s6167_s6] sm:$0xf] }
 0x1cb   :  { %1390 = vmatpush1.bf16.msra.mxu0 %v6576_v43  ;;  %1431 = vmatpush1.bf16.msra.mxu1 %v6577_v46  ;;  %v6580_v43 = vld [vmem:[#allocation43_spill] sm:$0xff] }
 0x1cc   :  { %1457 = vmatprep.subr.bf16.mxu0 %v6578_v47  ;;  %1498 = vmatprep.subr.bf16.mxu1 %v6579_v48  ;;  %v6581_v41 = vsub.s32 0, %v6580_v43  ;;  %v6583_v38 = vsub.s32 1, %v6580_v43 }
 0x1ce   :  { %v4928_v46 = vrot.slane %v4923_v42, %v6581_v41  ;;  %v4933_v36 = vrot.slane %v4923_v42, %v6583_v38  ;;  %v6585_v41 = vsub.s32 2, %v6580_v43 }
 0x1d0   :  { %6582 = vst [vmem:[#allocation16_spill] sm:$0xff] %v4928_v46  ;;  %6584 = vst [vmem:[#allocation17_spill] sm:$0xff] %v4933_v36  ;;  %v4939_v28 = vrot.slane %v4923_v42, %v6585_v41 }
 0x1d2   :  { %6586 = vst [vmem:[#allocation18_spill] sm:$0xff] %v4939_v28 }
 0x241   :  { %v952_v49 = vpop.f32.mrb[20].mxu0  ;;  %v993_v51 = vpop.f32.mrb[20].mxu1 }
 0x242   :  { %v954_v52 = vpop.f32.mrb[21].mxu0  ;;  %v995_v53 = vpop.f32.mrb[21].mxu1 }
 0x243   :  { %v956_v54 = vpop.f32.mrb[22].mxu0  ;;  %v997_v44 = vpop.f32.mrb[22].mxu1 }
 0x244   :  { %v957_v39 = vpop.f32.mrb[23].mxu0  ;;  %v998_v40 = vpop.f32.mrb[23].mxu1 }
 0x261   :  { %v1194_v47 = vpop.f32.mrb[24].mxu0  ;;  %v1235_v48 = vpop.f32.mrb[24].mxu1 }
 0x262   :  { %v1195_v54 = vadd.f32 %v1194_v47, %v952_v49  ;;  %v1236_v39 = vadd.f32 %v1235_v48, %v993_v51  ;;  %v1196_v40 = vpop.f32.mrb[25].mxu0  ;;  %v1237_v44 = vpop.f32.mrb[25].mxu1 }
 0x263   :  { %v1197_v35 = vadd.f32 %v1196_v40, %v954_v52  ;;  %v1238_v32 = vadd.f32 %v1237_v44, %v995_v53  ;;  %v1198_v31 = vpop.f32.mrb[26].mxu0  ;;  %v1239_v30 = vpop.f32.mrb[26].mxu1 }
 0x264   :  { %v1242_v29 = vadd.f32 %v1195_v54, %v4928_v46  ;;  %v1199_v27 = vpop.f32.mrb[27].mxu0  ;;  %v1240_v25 = vpop.f32.mrb[27].mxu1  ;;  %v1244_v48 = vadd.f32 %v1236_v39, %v4939_v28 }
 0x265   :  { %v1243_v38 = vadd.f32 %v1197_v35, %v4933_v36  ;;  %v6590_v36 = vld [vmem:[#allocation47_spill] sm:$0xff] }
 0x266   :  { %v1246_v24 = vmul.f32 0.5, %v1242_v29  ;;  %v6587_v29 = vld [vmem:[#allocation44_spill] sm:$0xff] }
 0x267   :  { %v1250_v47 = vmul.f32 0.5, %v1243_v38 }
 0x268   :  { %3810 = vtanh.f32 %v1246_v24  ;;  %v6588_v24 = vld [vmem:[#allocation45_spill] sm:$0xff] }
 0x269   :  { %3812 = vtanh.f32 %v1250_v47 }
 0x26a   :  { %3814 = vtanh.f32 %v1244_v48  ;;  %v6589_v48 = vld [vmem:[#allocation46_spill] sm:$0xff] }
 0x272   :  { %v3811_v31 = vpop.eup %3810 }
 0x273   :  { %v3813_v30 = vpop.eup %3812  ;;  %v1248_v49 = vmul.f32 0.5, %v3811_v31 }
 0x274   :  { %v1252_v51 = vmul.f32 0.5, %v3813_v30  ;;  %v3815_v53 = vpop.eup %3814 }
 0x275   :  { %v1249_v52 = vadd.f32 0.5, %v1248_v49 }
 0x276   :  { %v1253_v54 = vadd.f32 0.5, %v1252_v51 }
 0x277   :  { %v1260_v40 = vmul.f32 %v3815_v53, %v1249_v52 }
 0x278   :  { %v1259_v44 = vmul.f32 0.0, %v1253_v54 }
 0x27a   :  { %v4943_v27 = vadd.f32 %v1260_v40, %v1259_v44 }
 0x281   :  { %v1304_v25 = vpop.f32.mrb[28].mxu0  ;;  %v1345_v35 = vpop.f32.mrb[28].mxu1 }
 0x282   :  { %v1352_v41 = vadd.f32 %v1304_v25, %v6587_v29  ;;  %v1354_v38 = vadd.f32 %v1345_v35, %v6588_v24  ;;  %v1306_v39 = vpop.f32.mrb[29].mxu0  ;;  %v1347_v47 = vpop.f32.mrb[29].mxu1 }
 0x283   :  { %v1353_v28 = vadd.f32 %v1306_v39, %v6589_v48  ;;  %v1355_v31 = vadd.f32 %v1347_v47, %v6590_v36  ;;  %v1308_v30 = vpop.f32.mrb[30].mxu0  ;;  %v1349_v49 = vpop.f32.mrb[30].mxu1 }
 0x284   :  { %v1356_v46 = vmul.f32 0.5, %v1352_v41  ;;  %v1309_v51 = vpop.f32.mrb[31].mxu0  ;;  %v1350_v52 = vpop.f32.mrb[31].mxu1 }
 0x285   :  { %v1360_v53 = vmul.f32 0.5, %v1353_v28  ;;  %v1365_v54 = vmul.f32 0.5, %v1355_v31  ;;  %v6591_v31 = vsub.s32 3, %v6580_v43  ;;  %v6594_v43 = vld [vmem:[#allocation74_spill] sm:$0xff] }
 0x286   :  { %3816 = vtanh.f32 %v1356_v46 }
 0x287   :  { %3818 = vtanh.f32 %v1360_v53  ;;  %v4956_v30 = vrot.slane %v4923_v42, %v6591_v31  ;;  %v6593_v42 = vld [vmem:[#allocation73_spill] sm:$0xff] }
 0x288   :  { %3820 = vtanh.f32 %v1354_v38  ;;  %v5008_v31 = vld [vmem:[#allocation6 + $0x24] ss:$16 sps:$4 sm:$0xff]  }
 0x289   :  { %3822 = vtanh.f32 %v1365_v54  ;;  %v1245_v52 = vadd.f32 %v1238_v32, %v4956_v30  ;;  %v6592_v32 = vld [vmem:[#allocation72_spill] sm:$0xff]  ;;  %v6595_v54 = vld [vmem:[#allocation75_spill] sm:$0xff] }
 0x290   :  { %v3817_v40 = vpop.eup %3816 }
 0x291   :  { %v3819_v44 = vpop.eup %3818  ;;  %v1358_v25 = vmul.f32 0.5, %v3817_v40  ;;  %v6596_v40 = vld [vmem:[#allocation76_spill] sm:$0xff] }
 0x292   :  { %v1362_v35 = vmul.f32 0.5, %v3819_v44  ;;  %v3821_v24 = vpop.eup %3820  ;;  %v6597_v44 = vld [vmem:[#allocation77_spill] sm:$0xff] }
 0x293   :  { %v1359_v29 = vadd.f32 0.5, %v1358_v25  ;;  %v3823_v28 = vpop.eup %3822  ;;  %v6598_v25 = vld [vmem:[#allocation78_spill] sm:$0xff] }
 0x294   :  { %v1363_v39 = vadd.f32 0.5, %v1362_v35  ;;  %v1367_v46 = vmul.f32 0.5, %v3823_v28  ;;  %v4996_v28 = vld [vmem:[#allocation6 + $0x4] ss:$16 sps:$4 sm:$0xff]  }
 0x295   :  { %v1370_v48 = vmul.f32 %v3821_v24, %v1359_v29  ;;  %v6599_v29 = vld [vmem:[#allocation79_spill] sm:$0xff] }
 0x296   :  { %v1369_v36 = vmul.f32 %v1363_v39, %v4747_v4  ;;  %v1368_v41 = vadd.f32 0.5, %v1367_v46  ;;  %v1255_v4 = vmul.f32 0.5, %v1245_v52  ;;  %v4999_v46 = vld [vmem:[#allocation6 + $0xc] ss:$16 sps:$4 sm:$0xff]   ;;  %v5016_v52 = vld [vmem:[#allocation6 + $0x20] ss:$16 sps:$4 sm:$0xff]  }
 0x297   :  { %6600 = vst [vmem:[#allocation19_spill] sm:$0xff] %v5016_v52 }
 0x298   :  { %v4950_v47 = vadd.f32 %v1370_v48, %v1369_v36 }
 0x29a   :  { %3824 = vtanh.f32 %v4950_v47 }
 0x29b   :  { %3826 = vtanh.f32 %v1255_v4  ;;  %v5019_v4 = vld [vmem:[#allocation6 + $0x28] ss:$16 sps:$4 sm:$0xff]  }
 0x29c   :  { %3828 = vtanh.f32 %v4943_v27  ;;  %6601 = vst [vmem:[#allocation20_spill] sm:$0xff] %v5019_v4 }
 0x2a4   :  { %v3825_v38 = vpop.eup %3824 }
 0x2a5   :  { %v1373_v49 = vmul.f32 %v3825_v38, %v1368_v41  ;;  %v3827_v53 = vpop.eup %3826  ;;  %v5002_v41 = vld [vmem:[#allocation6] ss:$16 sps:$4 sm:$0xff]   ;;  %v5005_v38 = vld [vmem:[#allocation6 + $0x8] ss:$16 sps:$4 sm:$0xff]  }
 0x2a6   :  { %v1257_v35 = vmul.f32 0.5, %v3827_v53  ;;  %v3829_v24 = vpop.eup %3828  ;;  %v5022_v53 = vld [vmem:[#allocation6 + $0x44] ss:$16 sps:$4 sm:$0xff]  }
 0x2a7   :  { %v4958_v51 = vpack.c.bf16 %v1373_v49, %v1373_v49  ;;  %v5011_v49 = vld [vmem:[#allocation6 + $0x2c] ss:$16 sps:$4 sm:$0xff]   ;;  %6602 = vst [vmem:[#allocation21_spill] sm:$0xff] %v5022_v53 }
 0x2a8   :  { %v1258_v39 = vadd.f32 0.5, %v1257_v35  ;;  %v5025_v35 = vld [vmem:[#allocation6 + $0x4c] ss:$16 sps:$4 sm:$0xff]  }
 0x2a9   :  { %1408 = vmatmul.mubr.bf16.vlgmr.msra.gmra.mrb[32].mxu0 %v4958_v51  ;;  %1449 = vmatmul.mubr.bf16.vlgmr.msra.gmra.mrb[32].mxu1 %v4958_v51  ;;  %6603 = vst [vmem:[#allocation22_spill] sm:$0xff] %v5025_v35 }
 0x2aa   :  { %1458 = vmatpush1.bf16.msra.mxu0 %v4750_v5  ;;  %1499 = vmatpush1.bf16.msra.mxu1 %v4752_v6  ;;  %v1263_v48 = vmul.f32 %v3829_v24, %v1258_v39  ;;  %v5028_v24 = vld [vmem:[#allocation6 + $0x40] ss:$16 sps:$4 sm:$0xff]   ;;  %v5031_v39 = vld [vmem:[#allocation6 + $0x48] ss:$16 sps:$4 sm:$0xff]  }
 0x2ab   :  { %1459 = vmatprep.subr.bf16.mxu0 %v4756_v8  ;;  %1500 = vmatprep.subr.bf16.mxu1 %v4758_v7  ;;  %6604 = vst [vmem:[#allocation23_spill] sm:$0xff] %v5028_v24  ;;  %6605 = vst [vmem:[#allocation43_spill] sm:$0xff] %v5031_v39 }
 0x2ac   :  { %1489 = vmatprep.mubr.bf16.mxu0 %v6544_v10  ;;  %1530 = vmatprep.mubr.bf16.mxu1 %v6544_v10  ;;  %v1264_v36 = vpack.c.bf16 %v1263_v48, %v1263_v48  ;;  %v5034_v48 = vld [vmem:[#allocation6 + $0x64] ss:$16 sps:$4 sm:$0xff]  }
 0x2ad   :  { %6606 = vst [vmem:[#allocation44_spill] sm:$0xff] %v5034_v48 }
 0x2ae   :  { %1460 = vmatpush1.bf16.msra.mxu0 %v4764_v45  ;;  %1501 = vmatpush1.bf16.msra.mxu1 %v4766_v0 }
 0x2af   :  { %1461 = vmatprep.subr.bf16.mxu0 %v4770_v9  ;;  %1502 = vmatprep.subr.bf16.mxu1 %v4772_v13 }
 0x2b2   :  { %1462 = vmatpush1.bf16.msra.mxu0 %v4778_v12  ;;  %1503 = vmatpush1.bf16.msra.mxu1 %v4780_v11 }
 0x2b3   :  { %1463 = vmatprep.subr.bf16.mxu0 %v4784_v22  ;;  %1504 = vmatprep.subr.bf16.mxu1 %v4786_v33 }
 0x2b6   :  { %1464 = vmatpush1.bf16.msra.mxu0 %v4790_v2  ;;  %1505 = vmatpush1.bf16.msra.mxu1 %v6592_v32 }
 0x2b7   :  { %1465 = vmatprep.subr.bf16.mxu0 %v6593_v42  ;;  %1506 = vmatprep.subr.bf16.mxu1 %v6594_v43 }
 0x2ba   :  { %1466 = vmatpush1.bf16.msra.mxu0 %v6595_v54  ;;  %1507 = vmatpush1.bf16.msra.mxu1 %v6596_v40 }
 0x2bb   :  { %1467 = vmatprep.subr.bf16.mxu0 %v6597_v44  ;;  %1508 = vmatprep.subr.bf16.mxu1 %v6598_v25 }
 0x2be   :  { %1468 = vmatpush1.bf16.msra.mxu0 %v6599_v29  ;;  %1509 = vmatpush1.bf16.msra.mxu1 %v4816_v3 }
 0x2bf   :  { %1469 = vmatprep.subr.bf16.mxu0 %v4820_v34  ;;  %1510 = vmatprep.subr.bf16.mxu1 %v4822_v50 }
 0x2c2   :  { %1470 = vmatpush1.bf16.msra.mxu0 %v4826_v37  ;;  %1511 = vmatpush1.bf16.msra.mxu1 %v4828_v26 }
 0x2c3   :  { %1471 = vmatprep.subr.bf16.mxu0 %v4832_v62  ;;  %1512 = vmatprep.subr.bf16.mxu1 %v4834_v63 }
 0x2c6   :  { %1472 = vmatpush1.bf16.msra.mxu0 %v4838_v1  ;;  %1513 = vmatpush1.bf16.msra.mxu1 %v4840_v23 }
 0x2c7   :  { %1567 = vmatprep.subr.bf16.mxu0 %v4996_v28  ;;  %1608 = vmatprep.subr.bf16.mxu1 %v4999_v46 }
 0x2c9   :  { %1490 = vmatmul.mubr.bf16.vlgmr.msra.gmra.mrb[36].mxu0 %v1264_v36  ;;  %1531 = vmatmul.mubr.bf16.vlgmr.msra.gmra.mrb[36].mxu1 %v1264_v36  ;;  %v5037_v36 = vld [vmem:[#allocation6 + $0x6c] ss:$16 sps:$4 sm:$0xff]  }
 0x2ca   :  { %1568 = vmatpush1.bf16.msra.mxu0 %v5002_v41  ;;  %1609 = vmatpush1.bf16.msra.mxu1 %v5005_v38  ;;  %6607 = vst [vmem:[#allocation45_spill] sm:$0xff] %v5037_v36 }
 0x2cb   :  { %1569 = vmatprep.subr.bf16.mxu0 %v5008_v31  ;;  %1610 = vmatprep.subr.bf16.mxu1 %v5011_v49 }
 0x2cc   :  { %1599 = vmatprep.mubr.bf16.mxu0 %v6544_v10  ;;  %1640 = vmatprep.mubr.bf16.mxu1 %v6544_v10 }
 0x2ce   :  { %1570 = vmatpush1.bf16.msra.mxu0 %v5016_v52  ;;  %1611 = vmatpush1.bf16.msra.mxu1 %v5019_v4  ;;  %v6646_v4 = vld [vmem:[#allocation17_spill] sm:$0xff] }
 0x2cf   :  { %1571 = vmatprep.subr.bf16.mxu0 %v5022_v53  ;;  %1612 = vmatprep.subr.bf16.mxu1 %v5025_v35  ;;  %v5040_v53 = vld [vmem:[#allocation6 + $0x60] ss:$16 sps:$4 sm:$0xff]   ;;  %v5043_v35 = vld [vmem:[#allocation6 + $0x68] ss:$16 sps:$4 sm:$0xff]  }
 0x2d0   :  { %6608 = vst [vmem:[#allocation46_spill] sm:$0xff] %v5040_v53  ;;  %6609 = vst [vmem:[#allocation47_spill] sm:$0xff] %v5043_v35 }
 0x2d2   :  { %1572 = vmatpush1.bf16.msra.mxu0 %v5028_v24  ;;  %1613 = vmatpush1.bf16.msra.mxu1 %v5031_v39  ;;  %v5046_v24 = vld [vmem:[#allocation6 + $0x84] ss:$16 sps:$4 sm:$0xff]   ;;  %v5049_v39 = vld [vmem:[#allocation6 + $0x8c] ss:$16 sps:$4 sm:$0xff]  }
 0x2d3   :  { %1573 = vmatprep.subr.bf16.mxu0 %v5034_v48  ;;  %1614 = vmatprep.subr.bf16.mxu1 %v5037_v36  ;;  %6610 = vst [vmem:[#allocation72_spill] sm:$0xff] %v5046_v24  ;;  %6611 = vst [vmem:[#allocation73_spill] sm:$0xff] %v5049_v39  ;;  %v5052_v48 = vld [vmem:[#allocation6 + $0x80] ss:$16 sps:$4 sm:$0xff]   ;;  %v5055_v36 = vld [vmem:[#allocation6 + $0x88] ss:$16 sps:$4 sm:$0xff]  }
 0x2d4   :  { %6612 = vst [vmem:[#allocation74_spill] sm:$0xff] %v5052_v48  ;;  %6613 = vst [vmem:[#allocation75_spill] sm:$0xff] %v5055_v36 }
 0x2d6   :  { %1574 = vmatpush1.bf16.msra.mxu0 %v5040_v53  ;;  %1615 = vmatpush1.bf16.msra.mxu1 %v5043_v35  ;;  %v5058_v53 = vld [vmem:[#allocation6 + $0xa4] ss:$16 sps:$4 sm:$0xff]   ;;  %v5061_v35 = vld [vmem:[#allocation6 + $0xac] ss:$16 sps:$4 sm:$0xff]  }
 0x2d7   :  { %1575 = vmatprep.subr.bf16.mxu0 %v5046_v24  ;;  %1616 = vmatprep.subr.bf16.mxu1 %v5049_v39  ;;  %6614 = vst [vmem:[#allocation76_spill] sm:$0xff] %v5058_v53  ;;  %6615 = vst [vmem:[#allocation77_spill] sm:$0xff] %v5061_v35  ;;  %v5064_v24 = vld [vmem:[#allocation6 + $0xa0] ss:$16 sps:$4 sm:$0xff]   ;;  %v5067_v39 = vld [vmem:[#allocation6 + $0xa8] ss:$16 sps:$4 sm:$0xff]  }
 0x2d8   :  { %6616 = vst [vmem:[#allocation78_spill] sm:$0xff] %v5064_v24  ;;  %6617 = vst [vmem:[#allocation79_spill] sm:$0xff] %v5067_v39 }
 0x2da   :  { %1576 = vmatpush1.bf16.msra.mxu0 %v5052_v48  ;;  %1617 = vmatpush1.bf16.msra.mxu1 %v5055_v36  ;;  %v5070_v48 = vld [vmem:[#allocation6 + $0xc4] ss:$16 sps:$4 sm:$0xff]   ;;  %v5073_v36 = vld [vmem:[#allocation6 + $0xcc] ss:$16 sps:$4 sm:$0xff]  }
 0x2db   :  { %1577 = vmatprep.subr.bf16.mxu0 %v5058_v53  ;;  %1618 = vmatprep.subr.bf16.mxu1 %v5061_v35  ;;  %6618 = vst [vmem:[#allocation80_spill] sm:$0xff] %v5070_v48  ;;  %6619 = vst [vmem:[#allocation81_spill] sm:$0xff] %v5073_v36  ;;  %v5076_v53 = vld [vmem:[#allocation6 + $0xc0] ss:$16 sps:$4 sm:$0xff]   ;;  %v5079_v35 = vld [vmem:[#allocation6 + $0xc8] ss:$16 sps:$4 sm:$0xff]  }
 0x2dc   :  { %6620 = vst [vmem:[#allocation82_spill] sm:$0xff] %v5076_v53  ;;  %6621 = vst [vmem:[#allocation83_spill] sm:$0xff] %v5079_v35 }
 0x2de   :  { %1578 = vmatpush1.bf16.msra.mxu0 %v5064_v24  ;;  %1619 = vmatpush1.bf16.msra.mxu1 %v5067_v39  ;;  %v5082_v24 = vld [vmem:[#allocation6 + $0xe4] ss:$16 sps:$4 sm:$0xff]   ;;  %v5085_v39 = vld [vmem:[#allocation6 + $0xec] ss:$16 sps:$4 sm:$0xff]  }
 0x2df   :  { %1579 = vmatprep.subr.bf16.mxu0 %v5070_v48  ;;  %1620 = vmatprep.subr.bf16.mxu1 %v5073_v36  ;;  %6622 = vst [vmem:[#allocation84_spill] sm:$0xff] %v5082_v24  ;;  %6623 = vst [vmem:[#allocation85_spill] sm:$0xff] %v5085_v39  ;;  %v5088_v48 = vld [vmem:[#allocation6 + $0xe0] ss:$16 sps:$4 sm:$0xff]   ;;  %v5091_v36 = vld [vmem:[#allocation6 + $0xe8] ss:$16 sps:$4 sm:$0xff]  }
 0x2e0   :  { %6624 = vst [vmem:[#allocation86_spill] sm:$0xff] %v5088_v48  ;;  %6625 = vst [vmem:[#allocation87_spill] sm:$0xff] %v5091_v36 }
 0x2e2   :  { %1580 = vmatpush1.bf16.msra.mxu0 %v5076_v53  ;;  %1621 = vmatpush1.bf16.msra.mxu1 %v5079_v35 }
 0x2e3   :  { %1581 = vmatprep.subr.bf16.mxu0 %v5082_v24  ;;  %1622 = vmatprep.subr.bf16.mxu1 %v5085_v39  ;;  %v6645_v24 = vld [vmem:[#allocation16_spill] sm:$0xff] }
 0x2e6   :  { %1582 = vmatpush1.bf16.msra.mxu0 %v5088_v48  ;;  %1623 = vmatpush1.bf16.msra.mxu1 %v5091_v36 }
 0x2e7   :  { %1672 = vmatprep.subr.bf16.mxu0 %v4546_v55  ;;  %1713 = vmatprep.subr.bf16.mxu1 %v4548_v56  ;;  %v6626_v55 = vld [vmem:[#allocation24_spill] sm:$0xff]  ;;  %v6627_v56 = vld [vmem:[#allocation25_spill] sm:$0xff] }
 0x2e9   :  { %1600 = vmatmul.mubr.bf16.vlgmr.msra.gmra.mrb[40].mxu0 %v4958_v51  ;;  %1641 = vmatmul.mubr.bf16.vlgmr.msra.gmra.mrb[40].mxu1 %v4958_v51  ;;  %v6641_v51 = vld [vmem:[#allocation39_spill] sm:$0xff] }
 0x2ea   :  { %1673 = vmatpush1.bf16.msra.mxu0 %v4550_v57  ;;  %1714 = vmatpush1.bf16.msra.mxu1 %v4552_v58  ;;  %v6628_v57 = vld [vmem:[#allocation26_spill] sm:$0xff]  ;;  %v6629_v58 = vld [vmem:[#allocation27_spill] sm:$0xff] }
 0x2eb   :  { %1674 = vmatprep.subr.bf16.mxu0 %v4558_v59  ;;  %1715 = vmatprep.subr.bf16.mxu1 %v4560_v60  ;;  %v6630_v59 = vld [vmem:[#allocation28_spill] sm:$0xff]  ;;  %v6631_v60 = vld [vmem:[#allocation29_spill] sm:$0xff] }
 0x2ec   :  { %1704 = vmatprep.mubr.bf16.mxu0 %v6544_v10  ;;  %1745 = vmatprep.mubr.bf16.mxu1 %v6544_v10 }
 0x2ee   :  { %1675 = vmatpush1.bf16.msra.mxu0 %v4562_v61  ;;  %1716 = vmatpush1.bf16.msra.mxu1 %v6553_v14  ;;  %v6632_v61 = vld [vmem:[#allocation30_spill] sm:$0xff]  ;;  %v6633_v14 = vld [vmem:[#allocation31_spill] sm:$0xff] }
 0x2ef   :  { %1676 = vmatprep.subr.bf16.mxu0 %v6554_v15  ;;  %1717 = vmatprep.subr.bf16.mxu1 %v6555_v16  ;;  %v6634_v15 = vld [vmem:[#allocation32_spill] sm:$0xff]  ;;  %v6635_v16 = vld [vmem:[#allocation33_spill] sm:$0xff] }
 0x2f2   :  { %1677 = vmatpush1.bf16.msra.mxu0 %v6556_v17  ;;  %1718 = vmatpush1.bf16.msra.mxu1 %v6557_v18  ;;  %v6636_v17 = vld [vmem:[#allocation34_spill] sm:$0xff]  ;;  %v6637_v18 = vld [vmem:[#allocation35_spill] sm:$0xff] }
 0x2f3   :  { %1678 = vmatprep.subr.bf16.mxu0 %v6558_v19  ;;  %1719 = vmatprep.subr.bf16.mxu1 %v6559_v20  ;;  %v6638_v19 = vld [vmem:[#allocation36_spill] sm:$0xff]  ;;  %v6639_v20 = vld [vmem:[#allocation37_spill] sm:$0xff] }
 0x2f6   :  { %1679 = vmatpush1.bf16.msra.mxu0 %v6560_v21  ;;  %1720 = vmatpush1.bf16.msra.mxu1 %v6626_v55  ;;  %v6640_v21 = vld [vmem:[#allocation38_spill] sm:$0xff]  ;;  %v6642_v55 = vld [vmem:[#allocation40_spill] sm:$0xff] }
 0x2f7   :  { %1680 = vmatprep.subr.bf16.mxu0 %v6627_v56  ;;  %1721 = vmatprep.subr.bf16.mxu1 %v6628_v57  ;;  %v6643_v56 = vld [vmem:[#allocation41_spill] sm:$0xff]  ;;  %v6644_v57 = vld [vmem:[#allocation42_spill] sm:$0xff] }
 0x2fa   :  { %1681 = vmatpush1.bf16.msra.mxu0 %v6629_v58  ;;  %1722 = vmatpush1.bf16.msra.mxu1 %v6630_v59 }
 0x2fb   :  { %1682 = vmatprep.subr.bf16.mxu0 %v6631_v60  ;;  %1723 = vmatprep.subr.bf16.mxu1 %v6632_v61 }
 0x2fe   :  { %1683 = vmatpush1.bf16.msra.mxu0 %v6633_v14  ;;  %1724 = vmatpush1.bf16.msra.mxu1 %v6634_v15 }
 0x2ff   :  { %1684 = vmatprep.subr.bf16.mxu0 %v6635_v16  ;;  %1725 = vmatprep.subr.bf16.mxu1 %v6636_v17 }
 0x302   :  { %1685 = vmatpush1.bf16.msra.mxu0 %v6637_v18  ;;  %1726 = vmatpush1.bf16.msra.mxu1 %v6638_v19 }
 0x303   :  { %1686 = vmatprep.subr.bf16.mxu0 %v6639_v20  ;;  %1727 = vmatprep.subr.bf16.mxu1 %v6640_v21 }
 0x306   :  { %1687 = vmatpush1.bf16.msra.mxu0 %v6641_v51  ;;  %1728 = vmatpush1.bf16.msra.mxu1 %v6642_v55 }
 0x307   :  { %1754 = vmatprep.subr.bf16.mxu0 %v6643_v56  ;;  %1795 = vmatprep.subr.bf16.mxu1 %v6644_v57 }
 0x37c   :  { %v1409_v58 = vpop.f32.mrb[32].mxu0  ;;  %v1450_v59 = vpop.f32.mrb[32].mxu1 }
 0x37d   :  { %v1411_v60 = vpop.f32.mrb[33].mxu0  ;;  %v1452_v61 = vpop.f32.mrb[33].mxu1 }
 0x37e   :  { %v1413_v14 = vpop.f32.mrb[34].mxu0  ;;  %v1454_v15 = vpop.f32.mrb[34].mxu1 }
 0x37f   :  { %v1414_v16 = vpop.f32.mrb[35].mxu0  ;;  %v1455_v17 = vpop.f32.mrb[35].mxu1 }
 0x380   :  { %v6647_v16 = vld [vmem:[#allocation18_spill] sm:$0xff] }
 0x39c   :  { %v1491_v18 = vpop.f32.mrb[36].mxu0  ;;  %v1532_v19 = vpop.f32.mrb[36].mxu1 }
 0x39d   :  { %v1492_v20 = vadd.f32 %v1491_v18, %v1409_v58  ;;  %v1533_v21 = vadd.f32 %v1532_v19, %v1450_v59  ;;  %v1493_v36 = vpop.f32.mrb[37].mxu0  ;;  %v1534_v51 = vpop.f32.mrb[37].mxu1 }
 0x39e   :  { %v1494_v48 = vadd.f32 %v1493_v36, %v1411_v60  ;;  %v1535_v55 = vadd.f32 %v1534_v51, %v1452_v61  ;;  %v1495_v39 = vpop.f32.mrb[38].mxu0  ;;  %v1536_v56 = vpop.f32.mrb[38].mxu1 }
 0x39f   :  { %v1539_v57 = vadd.f32 %v1492_v20, %v6645_v24  ;;  %v1496_v35 = vpop.f32.mrb[39].mxu0  ;;  %v1537_v53 = vpop.f32.mrb[39].mxu1  ;;  %v1541_v17 = vadd.f32 %v1533_v21, %v6647_v16  ;;  %v6649_v56 = vld [vmem:[#allocation49_spill] sm:$0xff] }
 0x3a0   :  { %v1540_v52 = vadd.f32 %v1494_v48, %v6646_v4 }
 0x3a1   :  { %v1543_v14 = vmul.f32 0.5, %v1539_v57 }
 0x3a2   :  { %v1547_v15 = vmul.f32 0.5, %v1540_v52  ;;  %v6648_v52 = vld [vmem:[#allocation48_spill] sm:$0xff] }
 0x3a3   :  { %3830 = vtanh.f32 %v1543_v14 }
 0x3a4   :  { %3832 = vtanh.f32 %v1547_v15  ;;  %v6650_v15 = vld [vmem:[#allocation50_spill] sm:$0xff] }
 0x3a5   :  { %3834 = vtanh.f32 %v1541_v17 }
 0x3ad   :  { %v3831_v58 = vpop.eup %3830 }
 0x3ae   :  { %v3833_v59 = vpop.eup %3832  ;;  %v1545_v18 = vmul.f32 0.5, %v3831_v58  ;;  %v6651_v58 = vld [vmem:[#allocation51_spill] sm:$0xff] }
 0x3af   :  { %v1549_v36 = vmul.f32 0.5, %v3833_v59  ;;  %v3835_v39 = vpop.eup %3834 }
 0x3b0   :  { %v1546_v60 = vadd.f32 0.5, %v1545_v18 }
 0x3b1   :  { %v1550_v61 = vadd.f32 0.5, %v1549_v36 }
 0x3b2   :  { %v1557_v19 = vmul.f32 %v3835_v39, %v1546_v60 }
 0x3b3   :  { %v1556_v35 = vmul.f32 %v1550_v61, %v4943_v27 }
 0x3b5   :  { %v5136_v53 = vadd.f32 %v1557_v19, %v1556_v35 }
 0x3bc   :  { %v1601_v48 = vpop.f32.mrb[40].mxu0  ;;  %v1642_v20 = vpop.f32.mrb[40].mxu1 }
 0x3bd   :  { %v1649_v51 = vadd.f32 %v1601_v48, %v6648_v52  ;;  %v1651_v21 = vadd.f32 %v1642_v20, %v6649_v56  ;;  %v1603_v57 = vpop.f32.mrb[41].mxu0  ;;  %v1644_v14 = vpop.f32.mrb[41].mxu1 }
 0x3be   :  { %v1650_v17 = vadd.f32 %v1603_v57, %v6650_v15  ;;  %v1652_v59 = vadd.f32 %v1644_v14, %v6651_v58  ;;  %v1605_v18 = vpop.f32.mrb[42].mxu0  ;;  %v1646_v16 = vpop.f32.mrb[42].mxu1 }
 0x3bf   :  { %v1653_v36 = vmul.f32 0.5, %v1649_v51  ;;  %v1606_v60 = vpop.f32.mrb[43].mxu0  ;;  %v1647_v39 = vpop.f32.mrb[43].mxu1 }
 0x3c0   :  { %v1657_v27 = vmul.f32 0.5, %v1650_v17  ;;  %v1662_v61 = vmul.f32 0.5, %v1652_v59  ;;  %v6677_v60 = vld [vmem:[#allocation87_spill] sm:$0xff] }
 0x3c1   :  { %3836 = vtanh.f32 %v1653_v36  ;;  %v1542_v36 = vadd.f32 %v1535_v55, %v4956_v30  ;;  %v6676_v55 = vld [vmem:[#allocation86_spill] sm:$0xff]  ;;  %v5218_v39 = vld [vmem:[#allocation8 + $0x4] ss:$16 sps:$4 sm:$0xff]  }
 0x3c2   :  { %3838 = vtanh.f32 %v1657_v27  ;;  %v5221_v27 = vld [vmem:[#allocation8 + $0xc] ss:$16 sps:$4 sm:$0xff]  }
 0x3c3   :  { %3840 = vtanh.f32 %v1651_v21 }
 0x3c4   :  { %3842 = vtanh.f32 %v1662_v61  ;;  %v5226_v61 = vld [vmem:[#allocation8] ss:$16 sps:$4 sm:$0xff]  }
 0x3cb   :  { %v3837_v19 = vpop.eup %3836 }
 0x3cc   :  { %v3839_v35 = vpop.eup %3838  ;;  %v1655_v48 = vmul.f32 0.5, %v3837_v19  ;;  %v5229_v19 = vld [vmem:[#allocation8 + $0x8] ss:$16 sps:$4 sm:$0xff]  }
 0x3cd   :  { %v1659_v20 = vmul.f32 0.5, %v3839_v35  ;;  %v3841_v56 = vpop.eup %3840  ;;  %v5232_v35 = vld [vmem:[#allocation8 + $0x24] ss:$16 sps:$4 sm:$0xff]  }
 0x3ce   :  { %v1656_v52 = vadd.f32 0.5, %v1655_v48  ;;  %v3843_v51 = vpop.eup %3842  ;;  %6678 = vst [vmem:[#allocation24_spill] sm:$0xff] %v5232_v35  ;;  %v5235_v48 = vld [vmem:[#allocation8 + $0x2c] ss:$16 sps:$4 sm:$0xff]  }
 0x3cf   :  { %v1660_v57 = vadd.f32 0.5, %v1659_v20  ;;  %v1664_v17 = vmul.f32 0.5, %v3843_v51  ;;  %6679 = vst [vmem:[#allocation25_spill] sm:$0xff] %v5235_v48  ;;  %v5240_v20 = vld [vmem:[#allocation8 + $0x20] ss:$16 sps:$4 sm:$0xff]  }
 0x3d0   :  { %v1667_v15 = vmul.f32 %v3841_v56, %v1656_v52  ;;  %6680 = vst [vmem:[#allocation26_spill] sm:$0xff] %v5240_v20  ;;  %v5243_v52 = vld [vmem:[#allocation8 + $0x28] ss:$16 sps:$4 sm:$0xff]   ;;  %v5246_v56 = vld [vmem:[#allocation8 + $0x44] ss:$16 sps:$4 sm:$0xff]  }
 0x3d1   :  { %v1666_v14 = vmul.f32 %v1660_v57, %v4950_v47  ;;  %v1665_v58 = vadd.f32 0.5, %v1664_v17  ;;  %v1552_v47 = vmul.f32 0.5, %v1542_v36  ;;  %6681 = vst [vmem:[#allocation27_spill] sm:$0xff] %v5243_v52  ;;  %6682 = vst [vmem:[#allocation28_spill] sm:$0xff] %v5246_v56  ;;  %v5249_v57 = vld [vmem:[#allocation8 + $0x4c] ss:$16 sps:$4 sm:$0xff]  }
 0x3d2   :  { %6683 = vst [vmem:[#allocation29_spill] sm:$0xff] %v5249_v57  ;;  %v5258_v51 = vld [vmem:[#allocation8 + $0x64] ss:$16 sps:$4 sm:$0xff]   ;;  %v5261_v17 = vld [vmem:[#allocation8 + $0x6c] ss:$16 sps:$4 sm:$0xff]  }
 0x3d3   :  { %v5143_v16 = vadd.f32 %v1667_v15, %v1666_v14  ;;  %v5252_v15 = vld [vmem:[#allocation8 + $0x40] ss:$16 sps:$4 sm:$0xff]   ;;  %v5255_v14 = vld [vmem:[#allocation8 + $0x48] ss:$16 sps:$4 sm:$0xff]   ;;  %6686 = vst [vmem:[#allocation32_spill] sm:$0xff] %v5258_v51  ;;  %6687 = vst [vmem:[#allocation33_spill] sm:$0xff] %v5261_v17 }
 0x3d4   :  { %6684 = vst [vmem:[#allocation30_spill] sm:$0xff] %v5252_v15  ;;  %6685 = vst [vmem:[#allocation31_spill] sm:$0xff] %v5255_v14  ;;  %v5276_v36 = vld [vmem:[#allocation8 + $0x80] ss:$16 sps:$4 sm:$0xff]  }
 0x3d5   :  { %3844 = vtanh.f32 %v5143_v16  ;;  %6692 = vst [vmem:[#allocation38_spill] sm:$0xff] %v5276_v36 }
 0x3d6   :  { %3846 = vtanh.f32 %v1552_v47  ;;  %v5279_v47 = vld [vmem:[#allocation8 + $0x88] ss:$16 sps:$4 sm:$0xff]  }
 0x3d7   :  { %3848 = vtanh.f32 %v5136_v53  ;;  %6693 = vst [vmem:[#allocation39_spill] sm:$0xff] %v5279_v47 }
 0x3df   :  { %v3845_v21 = vpop.eup %3844 }
 0x3e0   :  { %v1670_v59 = vmul.f32 %v3845_v21, %v1665_v58  ;;  %v5264_v58 = vld [vmem:[#allocation8 + $0x60] ss:$16 sps:$4 sm:$0xff]   ;;  %v5267_v21 = vld [vmem:[#allocation8 + $0x68] ss:$16 sps:$4 sm:$0xff]  }
 0x3e1   :  { %6688 = vst [vmem:[#allocation34_spill] sm:$0xff] %v5264_v58  ;;  %6689 = vst [vmem:[#allocation35_spill] sm:$0xff] %v5267_v21 }
 0x3e2   :  { %v5146_v18 = vpack.c.bf16 %v1670_v59, %v1670_v59  ;;  %v5270_v59 = vld [vmem:[#allocation8 + $0x84] ss:$16 sps:$4 sm:$0xff]  }
 0x3e3   :  { %6690 = vst [vmem:[#allocation36_spill] sm:$0xff] %v5270_v59 }
 0x3e4   :  { %1705 = vmatmul.mubr.bf16.vlgmr.msra.gmra.mrb[44].mxu0 %v5146_v18  ;;  %1746 = vmatmul.mubr.bf16.vlgmr.msra.gmra.mrb[44].mxu1 %v5146_v18 }
 0x3e5   :  { %1755 = vmatpush1.bf16.msra.mxu0 %v4750_v5  ;;  %1796 = vmatpush1.bf16.msra.mxu1 %v4752_v6  ;;  %v3847_v5 = vpop.eup %3846 }
 0x3e6   :  { %1756 = vmatprep.subr.bf16.mxu0 %v4756_v8  ;;  %1797 = vmatprep.subr.bf16.mxu1 %v4758_v7  ;;  %v1554_v6 = vmul.f32 0.5, %v3847_v5  ;;  %v3849_v8 = vpop.eup %3848  ;;  %v5282_v5 = vld [vmem:[#allocation8 + $0xa4] ss:$16 sps:$4 sm:$0xff]  }
 0x3e7   :  { %1786 = vmatprep.mubr.bf16.mxu0 %v6544_v10  ;;  %1827 = vmatprep.mubr.bf16.mxu1 %v6544_v10  ;;  %6694 = vst [vmem:[#allocation40_spill] sm:$0xff] %v5282_v5 }
 0x3e8   :  { %v1555_v7 = vadd.f32 0.5, %v1554_v6  ;;  %v5285_v6 = vld [vmem:[#allocation8 + $0xac] ss:$16 sps:$4 sm:$0xff]  }
 0x3e9   :  { %1757 = vmatpush1.bf16.msra.mxu0 %v4764_v45  ;;  %1798 = vmatpush1.bf16.msra.mxu1 %v4766_v0  ;;  %6695 = vst [vmem:[#allocation41_spill] sm:$0xff] %v5285_v6 }
 0x3ea   :  { %1758 = vmatprep.subr.bf16.mxu0 %v4770_v9  ;;  %1799 = vmatprep.subr.bf16.mxu1 %v4772_v13  ;;  %v1560_v45 = vmul.f32 %v3849_v8, %v1555_v7  ;;  %v6652_v9 = vld [vmem:[#allocation19_spill] sm:$0xff]  ;;  %v6653_v13 = vld [vmem:[#allocation20_spill] sm:$0xff] }
 0x3eb   :  { %v5288_v8 = vld [vmem:[#allocation8 + $0xa0] ss:$16 sps:$4 sm:$0xff]   ;;  %v5291_v7 = vld [vmem:[#allocation8 + $0xa8] ss:$16 sps:$4 sm:$0xff]  }
 0x3ec   :  { %v1561_v0 = vpack.c.bf16 %v1560_v45, %v1560_v45  ;;  %6696 = vst [vmem:[#allocation42_spill] sm:$0xff] %v5288_v8  ;;  %6697 = vst [vmem:[#allocation16_spill] sm:$0xff] %v5291_v7  ;;  %v5294_v45 = vld [vmem:[#allocation8 + $0xc4] ss:$16 sps:$4 sm:$0xff]  }
 0x3ed   :  { %1759 = vmatpush1.bf16.msra.mxu0 %v4778_v12  ;;  %1800 = vmatpush1.bf16.msra.mxu1 %v4780_v11  ;;  %v6654_v12 = vld [vmem:[#allocation21_spill] sm:$0xff]  ;;  %v6655_v11 = vld [vmem:[#allocation22_spill] sm:$0xff]  ;;  %6698 = vst [vmem:[#allocation17_spill] sm:$0xff] %v5294_v45 }
 0x3ee   :  { %1760 = vmatprep.subr.bf16.mxu0 %v4784_v22  ;;  %1801 = vmatprep.subr.bf16.mxu1 %v4786_v33  ;;  %v6656_v22 = vld [vmem:[#allocation23_spill] sm:$0xff] }
 0x3ef   :  { %v6657_v33 = vld [vmem:[#allocation43_spill] sm:$0xff] }
 0x3f1   :  { %1761 = vmatpush1.bf16.msra.mxu0 %v4790_v2  ;;  %1802 = vmatpush1.bf16.msra.mxu1 %v6592_v32  ;;  %v6658_v2 = vld [vmem:[#allocation44_spill] sm:$0xff]  ;;  %v6668_v32 = vld [vmem:[#allocation78_spill] sm:$0xff] }
 0x3f2   :  { %1762 = vmatprep.subr.bf16.mxu0 %v6593_v42  ;;  %1803 = vmatprep.subr.bf16.mxu1 %v6594_v43  ;;  %v6669_v42 = vld [vmem:[#allocation79_spill] sm:$0xff]  ;;  %v6670_v43 = vld [vmem:[#allocation80_spill] sm:$0xff] }
 0x3f5   :  { %1763 = vmatpush1.bf16.msra.mxu0 %v6595_v54  ;;  %1804 = vmatpush1.bf16.msra.mxu1 %v6596_v40  ;;  %v6671_v54 = vld [vmem:[#allocation81_spill] sm:$0xff]  ;;  %v6672_v40 = vld [vmem:[#allocation82_spill] sm:$0xff] }
 0x3f6   :  { %1764 = vmatprep.subr.bf16.mxu0 %v6597_v44  ;;  %1805 = vmatprep.subr.bf16.mxu1 %v6598_v25  ;;  %v6673_v44 = vld [vmem:[#allocation83_spill] sm:$0xff]  ;;  %v6674_v25 = vld [vmem:[#allocation84_spill] sm:$0xff] }
 0x3f9   :  { %1765 = vmatpush1.bf16.msra.mxu0 %v6599_v29  ;;  %1806 = vmatpush1.bf16.msra.mxu1 %v4816_v3  ;;  %v6667_v3 = vld [vmem:[#allocation77_spill] sm:$0xff] }
 0x3fa   :  { %1766 = vmatprep.subr.bf16.mxu0 %v4820_v34  ;;  %1807 = vmatprep.subr.bf16.mxu1 %v4822_v50  ;;  %v6659_v34 = vld [vmem:[#allocation45_spill] sm:$0xff]  ;;  %v6660_v50 = vld [vmem:[#allocation46_spill] sm:$0xff] }
 0x3fb   :  { %v6675_v29 = vld [vmem:[#allocation85_spill] sm:$0xff] }
 0x3fd   :  { %1767 = vmatpush1.bf16.msra.mxu0 %v4826_v37  ;;  %1808 = vmatpush1.bf16.msra.mxu1 %v4828_v26  ;;  %v6661_v37 = vld [vmem:[#allocation47_spill] sm:$0xff]  ;;  %v6662_v26 = vld [vmem:[#allocation72_spill] sm:$0xff] }
 0x3fe   :  { %1768 = vmatprep.subr.bf16.mxu0 %v4832_v62  ;;  %1809 = vmatprep.subr.bf16.mxu1 %v4834_v63  ;;  %v6663_v62 = vld [vmem:[#allocation73_spill] sm:$0xff]  ;;  %v6664_v63 = vld [vmem:[#allocation74_spill] sm:$0xff] }
 0x401   :  { %1769 = vmatpush1.bf16.msra.mxu0 %v4838_v1  ;;  %1810 = vmatpush1.bf16.msra.mxu1 %v4840_v23  ;;  %v6665_v1 = vld [vmem:[#allocation75_spill] sm:$0xff]  ;;  %v6666_v23 = vld [vmem:[#allocation76_spill] sm:$0xff] }
 0x402   :  { %1864 = vmatprep.subr.bf16.mxu0 %v4996_v28  ;;  %1905 = vmatprep.subr.bf16.mxu1 %v4999_v46 }
 0x404   :  { %1787 = vmatmul.mubr.bf16.vlgmr.msra.gmra.mrb[48].mxu0 %v1561_v0  ;;  %1828 = vmatmul.mubr.bf16.vlgmr.msra.gmra.mrb[48].mxu1 %v1561_v0  ;;  %v5297_v0 = vld [vmem:[#allocation8 + $0xcc] ss:$16 sps:$4 sm:$0xff]  }
 0x405   :  { %1865 = vmatpush1.bf16.msra.mxu0 %v5002_v41  ;;  %1906 = vmatpush1.bf16.msra.mxu1 %v5005_v38  ;;  %6699 = vst [vmem:[#allocation48_spill] sm:$0xff] %v5297_v0 }
 0x406   :  { %1866 = vmatprep.subr.bf16.mxu0 %v5008_v31  ;;  %1907 = vmatprep.subr.bf16.mxu1 %v5011_v49 }
 0x407   :  { %1896 = vmatprep.mubr.bf16.mxu0 %v6544_v10  ;;  %1937 = vmatprep.mubr.bf16.mxu1 %v6544_v10 }
 0x409   :  { %1867 = vmatpush1.bf16.msra.mxu0 %v6652_v9  ;;  %1908 = vmatpush1.bf16.msra.mxu1 %v6653_v13 }
 0x40a   :  { %1868 = vmatprep.subr.bf16.mxu0 %v6654_v12  ;;  %1909 = vmatprep.subr.bf16.mxu1 %v6655_v11 }
 0x40d   :  { %1869 = vmatpush1.bf16.msra.mxu0 %v6656_v22  ;;  %1910 = vmatpush1.bf16.msra.mxu1 %v6657_v33 }
 0x40e   :  { %1870 = vmatprep.subr.bf16.mxu0 %v6658_v2  ;;  %1911 = vmatprep.subr.bf16.mxu1 %v6659_v34 }
 0x411   :  { %1871 = vmatpush1.bf16.msra.mxu0 %v6660_v50  ;;  %1912 = vmatpush1.bf16.msra.mxu1 %v6661_v37 }
 0x412   :  { %1872 = vmatprep.subr.bf16.mxu0 %v6662_v26  ;;  %1913 = vmatprep.subr.bf16.mxu1 %v6663_v62 }
 0x415   :  { %1873 = vmatpush1.bf16.msra.mxu0 %v6664_v63  ;;  %1914 = vmatpush1.bf16.msra.mxu1 %v6665_v1 }
 0x416   :  { %1874 = vmatprep.subr.bf16.mxu0 %v6666_v23  ;;  %1915 = vmatprep.subr.bf16.mxu1 %v6667_v3 }
 0x419   :  { %1875 = vmatpush1.bf16.msra.mxu0 %v6668_v32  ;;  %1916 = vmatpush1.bf16.msra.mxu1 %v6669_v42 }
 0x41a   :  { %1876 = vmatprep.subr.bf16.mxu0 %v6670_v43  ;;  %1917 = vmatprep.subr.bf16.mxu1 %v6671_v54 }
 0x41d   :  { %1877 = vmatpush1.bf16.msra.mxu0 %v6672_v40  ;;  %1918 = vmatpush1.bf16.msra.mxu1 %v6673_v44 }
 0x41e   :  { %1878 = vmatprep.subr.bf16.mxu0 %v6674_v25  ;;  %1919 = vmatprep.subr.bf16.mxu1 %v6675_v29 }
 0x421   :  { %1879 = vmatpush1.bf16.msra.mxu0 %v6676_v55  ;;  %1920 = vmatpush1.bf16.msra.mxu1 %v6677_v60 }
 0x422   :  { %1969 = vmatprep.subr.bf16.mxu0 %v5218_v39  ;;  %2010 = vmatprep.subr.bf16.mxu1 %v5221_v27 }
 0x424   :  { %1897 = vmatmul.mubr.bf16.vlgmr.msra.gmra.mrb[52].mxu0 %v5146_v18  ;;  %1938 = vmatmul.mubr.bf16.vlgmr.msra.gmra.mrb[52].mxu1 %v5146_v18  ;;  %v5273_v18 = vld [vmem:[#allocation8 + $0x8c] ss:$16 sps:$4 sm:$0xff]  }
 0x425   :  { %1970 = vmatpush1.bf16.msra.mxu0 %v5226_v61  ;;  %2011 = vmatpush1.bf16.msra.mxu1 %v5229_v19  ;;  %6691 = vst [vmem:[#allocation37_spill] sm:$0xff] %v5273_v18 }
 0x426   :  { %1971 = vmatprep.subr.bf16.mxu0 %v5232_v35  ;;  %2012 = vmatprep.subr.bf16.mxu1 %v5235_v48 }
 0x427   :  { %2001 = vmatprep.mubr.bf16.mxu0 %v6544_v10  ;;  %2042 = vmatprep.mubr.bf16.mxu1 %v6544_v10 }
 0x429   :  { %1972 = vmatpush1.bf16.msra.mxu0 %v5240_v20  ;;  %2013 = vmatpush1.bf16.msra.mxu1 %v5243_v52 }
 0x42a   :  { %1973 = vmatprep.subr.bf16.mxu0 %v5246_v56  ;;  %2014 = vmatprep.subr.bf16.mxu1 %v5249_v57 }
 0x42d   :  { %1974 = vmatpush1.bf16.msra.mxu0 %v5252_v15  ;;  %2015 = vmatpush1.bf16.msra.mxu1 %v5255_v14 }
 0x42e   :  { %1975 = vmatprep.subr.bf16.mxu0 %v5258_v51  ;;  %2016 = vmatprep.subr.bf16.mxu1 %v5261_v17 }
 0x431   :  { %1976 = vmatpush1.bf16.msra.mxu0 %v5264_v58  ;;  %2017 = vmatpush1.bf16.msra.mxu1 %v5267_v21 }
 0x432   :  { %1977 = vmatprep.subr.bf16.mxu0 %v5270_v59  ;;  %2018 = vmatprep.subr.bf16.mxu1 %v5273_v18 }
 0x435   :  { %1978 = vmatpush1.bf16.msra.mxu0 %v5276_v36  ;;  %2019 = vmatpush1.bf16.msra.mxu1 %v5279_v47 }
 0x436   :  { %1979 = vmatprep.subr.bf16.mxu0 %v5282_v5  ;;  %2020 = vmatprep.subr.bf16.mxu1 %v5285_v6  ;;  %v5300_v5 = vld [vmem:[#allocation8 + $0xc0] ss:$16 sps:$4 sm:$0xff]   ;;  %v5303_v6 = vld [vmem:[#allocation8 + $0xc8] ss:$16 sps:$4 sm:$0xff]  }
 0x437   :  { %6700 = vst [vmem:[#allocation49_spill] sm:$0xff] %v5300_v5  ;;  %6701 = vst [vmem:[#allocation50_spill] sm:$0xff] %v5303_v6 }
 0x439   :  { %1980 = vmatpush1.bf16.msra.mxu0 %v5288_v8  ;;  %2021 = vmatpush1.bf16.msra.mxu1 %v5291_v7  ;;  %v5306_v8 = vld [vmem:[#allocation8 + $0xe4] ss:$16 sps:$4 sm:$0xff]   ;;  %v5309_v7 = vld [vmem:[#allocation8 + $0xec] ss:$16 sps:$4 sm:$0xff]  }
 0x43a   :  { %1981 = vmatprep.subr.bf16.mxu0 %v5294_v45  ;;  %2022 = vmatprep.subr.bf16.mxu1 %v5297_v0  ;;  %6702 = vst [vmem:[#allocation51_spill] sm:$0xff] %v5306_v8  ;;  %6703 = vst [vmem:[#allocation19_spill] sm:$0xff] %v5309_v7  ;;  %v5312_v45 = vld [vmem:[#allocation8 + $0xe0] ss:$16 sps:$4 sm:$0xff]   ;;  %v5315_v0 = vld [vmem:[#allocation8 + $0xe8] ss:$16 sps:$4 sm:$0xff]  }
 0x43b   :  { %6704 = vst [vmem:[#allocation20_spill] sm:$0xff] %v5312_v45  ;;  %6705 = vst [vmem:[#allocation21_spill] sm:$0xff] %v5315_v0 }
 0x43d   :  { %1982 = vmatpush1.bf16.msra.mxu0 %v5300_v5  ;;  %2023 = vmatpush1.bf16.msra.mxu1 %v5303_v6  ;;  %v5318_v5 = vld [vmem:[#allocation9 + $0x4] ss:$16 sps:$4 sm:$0xff]   ;;  %v5321_v6 = vld [vmem:[#allocation9 + $0xc] ss:$16 sps:$4 sm:$0xff]  }
 0x43e   :  { %1983 = vmatprep.subr.bf16.mxu0 %v5306_v8  ;;  %2024 = vmatprep.subr.bf16.mxu1 %v5309_v7  ;;  %6706 = vst [vmem:[#allocation22_spill] sm:$0xff] %v5318_v5  ;;  %6707 = vst [vmem:[#allocation23_spill] sm:$0xff] %v5321_v6 }
 0x441   :  { %1984 = vmatpush1.bf16.msra.mxu0 %v5312_v45  ;;  %2025 = vmatpush1.bf16.msra.mxu1 %v5315_v0 }
 0x442   :  { %2051 = vmatprep.subr.bf16.mxu0 %v5318_v5  ;;  %2092 = vmatprep.subr.bf16.mxu1 %v5321_v6 }
 0x4b7   :  { %v1706_v8 = vpop.f32.mrb[44].mxu0  ;;  %v1747_v47 = vpop.f32.mrb[44].mxu1 }
 0x4b8   :  { %v1708_v36 = vpop.f32.mrb[45].mxu0  ;;  %v1749_v7 = vpop.f32.mrb[45].mxu1 }
 0x4b9   :  { %v1710_v18 = vpop.f32.mrb[46].mxu0  ;;  %v1751_v59 = vpop.f32.mrb[46].mxu1 }
 0x4ba   :  { %v1711_v21 = vpop.f32.mrb[47].mxu0  ;;  %v1752_v45 = vpop.f32.mrb[47].mxu1 }
 0x4bb   :  { %v6708_v21 = vld [vmem:[#allocation18_spill] sm:$0xff] }
 0x4d7   :  { %v1788_v58 = vpop.f32.mrb[48].mxu0  ;;  %v1829_v17 = vpop.f32.mrb[48].mxu1 }
 0x4d8   :  { %v1789_v51 = vadd.f32 %v1788_v58, %v1706_v8  ;;  %v1830_v0 = vadd.f32 %v1829_v17, %v1747_v47  ;;  %v1790_v14 = vpop.f32.mrb[49].mxu0  ;;  %v1831_v15 = vpop.f32.mrb[49].mxu1  ;;  %v6710_v8 = vld [vmem:[#allocation53_spill] sm:$0xff] }
 0x4d9   :  { %v1791_v57 = vadd.f32 %v1790_v14, %v1708_v36  ;;  %v1832_v5 = vadd.f32 %v1831_v15, %v1749_v7  ;;  %v1792_v56 = vpop.f32.mrb[50].mxu0  ;;  %v1833_v52 = vpop.f32.mrb[50].mxu1 }
 0x4da   :  { %v1836_v6 = vadd.f32 %v1789_v51, %v6645_v24  ;;  %v1793_v20 = vpop.f32.mrb[51].mxu0  ;;  %v1834_v48 = vpop.f32.mrb[51].mxu1  ;;  %v1838_v45 = vadd.f32 %v1830_v0, %v6708_v21 }
 0x4db   :  { %v1837_v35 = vadd.f32 %v1791_v57, %v6646_v4 }
 0x4dc   :  { %v1840_v18 = vmul.f32 0.5, %v1836_v6 }
 0x4dd   :  { %v1844_v59 = vmul.f32 0.5, %v1837_v35  ;;  %v6709_v35 = vld [vmem:[#allocation52_spill] sm:$0xff] }
 0x4de   :  { %3850 = vtanh.f32 %v1840_v18 }
 0x4df   :  { %3852 = vtanh.f32 %v1844_v59  ;;  %v6711_v59 = vld [vmem:[#allocation54_spill] sm:$0xff] }
 0x4e0   :  { %3854 = vtanh.f32 %v1838_v45 }
 0x4e8   :  { %v3851_v17 = vpop.eup %3850 }
 0x4e9   :  { %v3853_v58 = vpop.eup %3852  ;;  %v1842_v47 = vmul.f32 0.5, %v3851_v17  ;;  %v6712_v17 = vld [vmem:[#allocation55_spill] sm:$0xff] }
 0x4ea   :  { %v1846_v14 = vmul.f32 0.5, %v3853_v58  ;;  %v3855_v56 = vpop.eup %3854 }
 0x4eb   :  { %v1843_v15 = vadd.f32 0.5, %v1842_v47 }
 0x4ec   :  { %v1847_v52 = vadd.f32 0.5, %v1846_v14 }
 0x4ed   :  { %v1854_v36 = vmul.f32 %v3855_v56, %v1843_v15 }
 0x4ee   :  { %v1853_v20 = vmul.f32 %v1847_v52, %v5136_v53 }
 0x4f0   :  { %v5328_v48 = vadd.f32 %v1854_v36, %v1853_v20 }
 0x4f7   :  { %v1898_v57 = vpop.f32.mrb[52].mxu0  ;;  %v1939_v51 = vpop.f32.mrb[52].mxu1 }
 0x4f8   :  { %v1946_v6 = vadd.f32 %v1898_v57, %v6709_v35  ;;  %v1948_v7 = vadd.f32 %v1939_v51, %v6710_v8  ;;  %v1900_v0 = vpop.f32.mrb[53].mxu0  ;;  %v1941_v18 = vpop.f32.mrb[53].mxu1 }
 0x4f9   :  { %v1947_v45 = vadd.f32 %v1900_v0, %v6711_v59  ;;  %v1949_v58 = vadd.f32 %v1941_v18, %v6712_v17  ;;  %v1902_v47 = vpop.f32.mrb[54].mxu0  ;;  %v1943_v21 = vpop.f32.mrb[54].mxu1 }
 0x4fa   :  { %v1950_v14 = vmul.f32 0.5, %v1946_v6  ;;  %v1903_v15 = vpop.f32.mrb[55].mxu0  ;;  %v1944_v56 = vpop.f32.mrb[55].mxu1 }
 0x4fb   :  { %v1954_v53 = vmul.f32 0.5, %v1947_v45  ;;  %v1959_v52 = vmul.f32 0.5, %v1949_v58  ;;  %v5343_v15 = vld [vmem:[#allocation9] ss:$16 sps:$4 sm:$0xff]   ;;  %v5349_v56 = vld [vmem:[#allocation9 + $0x24] ss:$16 sps:$4 sm:$0xff]  }
 0x4fc   :  { %3856 = vtanh.f32 %v1950_v14  ;;  %v1839_v14 = vadd.f32 %v1832_v5, %v4956_v30 }
 0x4fd   :  { %3858 = vtanh.f32 %v1954_v53  ;;  %v5352_v53 = vld [vmem:[#allocation9 + $0x2c] ss:$16 sps:$4 sm:$0xff]  }
 0x4fe   :  { %3860 = vtanh.f32 %v1948_v7  ;;  %v1849_v5 = vmul.f32 0.5, %v1839_v14  ;;  %v5400_v14 = vld [vmem:[#allocation9 + $0xa4] ss:$16 sps:$4 sm:$0xff]  }
 0x4ff   :  { %3862 = vtanh.f32 %v1959_v52  ;;  %v5357_v52 = vld [vmem:[#allocation9 + $0x20] ss:$16 sps:$4 sm:$0xff]   ;;  %6719 = vst [vmem:[#allocation73_spill] sm:$0xff] %v5400_v14 }
 0x506   :  { %v3857_v36 = vpop.eup %3856 }
 0x507   :  { %v3859_v20 = vpop.eup %3858  ;;  %v1952_v57 = vmul.f32 0.5, %v3857_v36  ;;  %v5360_v36 = vld [vmem:[#allocation9 + $0x28] ss:$16 sps:$4 sm:$0xff]  }
 0x508   :  { %v1956_v51 = vmul.f32 0.5, %v3859_v20  ;;  %v3861_v8 = vpop.eup %3860  ;;  %v5363_v20 = vld [vmem:[#allocation9 + $0x44] ss:$16 sps:$4 sm:$0xff]  }
 0x509   :  { %v1953_v35 = vadd.f32 0.5, %v1952_v57  ;;  %v3863_v6 = vpop.eup %3862  ;;  %v5366_v57 = vld [vmem:[#allocation9 + $0x4c] ss:$16 sps:$4 sm:$0xff]  }
 0x50a   :  { %v1957_v0 = vadd.f32 0.5, %v1956_v51  ;;  %v1961_v45 = vmul.f32 0.5, %v3863_v6  ;;  %v5369_v51 = vld [vmem:[#allocation9 + $0x40] ss:$16 sps:$4 sm:$0xff]   ;;  %v5388_v6 = vld [vmem:[#allocation9 + $0x84] ss:$16 sps:$4 sm:$0xff]  }
 0x50b   :  { %v1964_v59 = vmul.f32 %v3861_v8, %v1953_v35  ;;  %v5372_v35 = vld [vmem:[#allocation9 + $0x48] ss:$16 sps:$4 sm:$0xff]   ;;  %v5375_v8 = vld [vmem:[#allocation9 + $0x64] ss:$16 sps:$4 sm:$0xff]   ;;  %6715 = vst [vmem:[#allocation45_spill] sm:$0xff] %v5388_v6 }
 0x50c   :  { %v1963_v18 = vmul.f32 %v1957_v0, %v5143_v16  ;;  %v1962_v17 = vadd.f32 0.5, %v1961_v45  ;;  %v5346_v16 = vld [vmem:[#allocation9 + $0x8] ss:$16 sps:$4 sm:$0xff]   ;;  %v5378_v0 = vld [vmem:[#allocation9 + $0x6c] ss:$16 sps:$4 sm:$0xff]  }
 0x50d   :  { %v5391_v45 = vld [vmem:[#allocation9 + $0x8c] ss:$16 sps:$4 sm:$0xff]  }
 0x50e   :  { %v5335_v21 = vadd.f32 %v1964_v59, %v1963_v18  ;;  %v5382_v59 = vld [vmem:[#allocation9 + $0x60] ss:$16 sps:$4 sm:$0xff]   ;;  %v5385_v18 = vld [vmem:[#allocation9 + $0x68] ss:$16 sps:$4 sm:$0xff]   ;;  %6716 = vst [vmem:[#allocation46_spill] sm:$0xff] %v5391_v45 }
 0x50f   :  { %6713 = vst [vmem:[#allocation43_spill] sm:$0xff] %v5382_v59  ;;  %6714 = vst [vmem:[#allocation44_spill] sm:$0xff] %v5385_v18 }
 0x510   :  { %3864 = vtanh.f32 %v5335_v21 }
 0x511   :  { %3866 = vtanh.f32 %v1849_v5  ;;  %v5403_v5 = vld [vmem:[#allocation9 + $0xac] ss:$16 sps:$4 sm:$0xff]  }
 0x512   :  { %3868 = vtanh.f32 %v5328_v48  ;;  %6720 = vst [vmem:[#allocation74_spill] sm:$0xff] %v5403_v5 }
 0x51a   :  { %v3865_v7 = vpop.eup %3864 }
 0x51b   :  { %v1967_v58 = vmul.f32 %v3865_v7, %v1962_v17  ;;  %v3867_v17 = vpop.eup %3866  ;;  %v5394_v7 = vld [vmem:[#allocation9 + $0x80] ss:$16 sps:$4 sm:$0xff]  }
 0x51c   :  { %6717 = vst [vmem:[#allocation47_spill] sm:$0xff] %v5394_v7 }
 0x51d   :  { %v5338_v47 = vpack.c.bf16 %v1967_v58, %v1967_v58  ;;  %v5397_v58 = vld [vmem:[#allocation9 + $0x88] ss:$16 sps:$4 sm:$0xff]  }
 0x51e   :  { %6718 = vst [vmem:[#allocation72_spill] sm:$0xff] %v5397_v58 }
 0x51f   :  { %2002 = vmatmul.mubr.bf16.vlgmr.msra.gmra.mrb[56].mxu0 %v5338_v47  ;;  %2043 = vmatmul.mubr.bf16.vlgmr.msra.gmra.mrb[56].mxu1 %v5338_v47 }
 0x520   :  { %2052 = vmatpush1.bf16.msra.mxu0 %v5343_v15  ;;  %2093 = vmatpush1.bf16.msra.mxu1 %v5346_v16 }
 0x521   :  { %2053 = vmatprep.subr.bf16.mxu0 %v5349_v56  ;;  %2094 = vmatprep.subr.bf16.mxu1 %v5352_v53 }
 0x522   :  { %2083 = vmatprep.mubr.bf16.mxu0 %v6544_v10  ;;  %2124 = vmatprep.mubr.bf16.mxu1 %v6544_v10 }
 0x524   :  { %2054 = vmatpush1.bf16.msra.mxu0 %v5357_v52  ;;  %2095 = vmatpush1.bf16.msra.mxu1 %v5360_v36 }
 0x525   :  { %2055 = vmatprep.subr.bf16.mxu0 %v5363_v20  ;;  %2096 = vmatprep.subr.bf16.mxu1 %v5366_v57 }
 0x528   :  { %2056 = vmatpush1.bf16.msra.mxu0 %v5369_v51  ;;  %2097 = vmatpush1.bf16.msra.mxu1 %v5372_v35 }
 0x529   :  { %2057 = vmatprep.subr.bf16.mxu0 %v5375_v8  ;;  %2098 = vmatprep.subr.bf16.mxu1 %v5378_v0 }
 0x52c   :  { %2058 = vmatpush1.bf16.msra.mxu0 %v5382_v59  ;;  %2099 = vmatpush1.bf16.msra.mxu1 %v5385_v18  ;;  %v5406_v18 = vld [vmem:[#allocation9 + $0xa0] ss:$16 sps:$4 sm:$0xff]  }
 0x52d   :  { %2059 = vmatprep.subr.bf16.mxu0 %v5388_v6  ;;  %2100 = vmatprep.subr.bf16.mxu1 %v5391_v45  ;;  %v1851_v6 = vmul.f32 0.5, %v3867_v17  ;;  %6721 = vst [vmem:[#allocation75_spill] sm:$0xff] %v5406_v18  ;;  %v5409_v45 = vld [vmem:[#allocation9 + $0xa8] ss:$16 sps:$4 sm:$0xff]  }
 0x52e   :  { %6722 = vst [vmem:[#allocation76_spill] sm:$0xff] %v5409_v45  ;;  %v5421_v17 = vld [vmem:[#allocation9 + $0xc8] ss:$16 sps:$4 sm:$0xff]  }
 0x52f   :  { %v1852_v59 = vadd.f32 0.5, %v1851_v6  ;;  %v5433_v6 = vld [vmem:[#allocation9 + $0xe8] ss:$16 sps:$4 sm:$0xff]  }
 0x530   :  { %2060 = vmatpush1.bf16.msra.mxu0 %v5394_v7  ;;  %2101 = vmatpush1.bf16.msra.mxu1 %v5397_v58  ;;  %v5412_v7 = vld [vmem:[#allocation9 + $0xc4] ss:$16 sps:$4 sm:$0xff]   ;;  %v5415_v58 = vld [vmem:[#allocation9 + $0xcc] ss:$16 sps:$4 sm:$0xff]  }
 0x531   :  { %2061 = vmatprep.subr.bf16.mxu0 %v5400_v14  ;;  %2102 = vmatprep.subr.bf16.mxu1 %v5403_v5  ;;  %6723 = vst [vmem:[#allocation77_spill] sm:$0xff] %v5412_v7  ;;  %6724 = vst [vmem:[#allocation78_spill] sm:$0xff] %v5415_v58  ;;  %v3869_v14 = vpop.eup %3868  ;;  %v5418_v5 = vld [vmem:[#allocation9 + $0xc0] ss:$16 sps:$4 sm:$0xff]  }
 0x532   :  { %6725 = vst [vmem:[#allocation79_spill] sm:$0xff] %v5418_v5 }
 0x534   :  { %2062 = vmatpush1.bf16.msra.mxu0 %v5406_v18  ;;  %2103 = vmatpush1.bf16.msra.mxu1 %v5409_v45  ;;  %v5424_v18 = vld [vmem:[#allocation9 + $0xe4] ss:$16 sps:$4 sm:$0xff]   ;;  %v5427_v45 = vld [vmem:[#allocation9 + $0xec] ss:$16 sps:$4 sm:$0xff]  }
 0x535   :  { %2063 = vmatprep.subr.bf16.mxu0 %v5412_v7  ;;  %2104 = vmatprep.subr.bf16.mxu1 %v5415_v58  ;;  %v1857_v7 = vmul.f32 %v3869_v14, %v1852_v59  ;;  %v5430_v58 = vld [vmem:[#allocation9 + $0xe0] ss:$16 sps:$4 sm:$0xff]  }
 0x538   :  { %2064 = vmatpush1.bf16.msra.mxu0 %v5418_v5  ;;  %2105 = vmatpush1.bf16.msra.mxu1 %v5421_v17  ;;  %v1858_v5 = vpack.c.bf16 %v1857_v7, %v1857_v7 }
 0x539   :  { %2065 = vmatprep.subr.bf16.mxu0 %v5424_v18  ;;  %2106 = vmatprep.subr.bf16.mxu1 %v5427_v45 }
 0x53c   :  { %2066 = vmatpush1.bf16.msra.mxu0 %v5430_v58  ;;  %2107 = vmatpush1.bf16.msra.mxu1 %v5433_v6 }
 0x53d   :  { %2161 = vmatprep.subr.bf16.mxu0 %v4996_v28  ;;  %2202 = vmatprep.subr.bf16.mxu1 %v4999_v46  ;;  %v6726_v28 = vld [vmem:[#allocation24_spill] sm:$0xff]  ;;  %v6727_v46 = vld [vmem:[#allocation25_spill] sm:$0xff] }
 0x53f   :  { %2084 = vmatmul.mubr.bf16.vlgmr.msra.gmra.mrb[60].mxu0 %v1858_v5  ;;  %2125 = vmatmul.mubr.bf16.vlgmr.msra.gmra.mrb[60].mxu1 %v1858_v5 }
 0x540   :  { %2162 = vmatpush1.bf16.msra.mxu0 %v5002_v41  ;;  %2203 = vmatpush1.bf16.msra.mxu1 %v5005_v38  ;;  %v6728_v41 = vld [vmem:[#allocation26_spill] sm:$0xff]  ;;  %v6729_v38 = vld [vmem:[#allocation27_spill] sm:$0xff] }
 0x541   :  { %2163 = vmatprep.subr.bf16.mxu0 %v5008_v31  ;;  %2204 = vmatprep.subr.bf16.mxu1 %v5011_v49  ;;  %v6730_v31 = vld [vmem:[#allocation28_spill] sm:$0xff]  ;;  %v6731_v49 = vld [vmem:[#allocation29_spill] sm:$0xff] }
 0x542   :  { %2193 = vmatprep.mubr.bf16.mxu0 %v6544_v10  ;;  %2234 = vmatprep.mubr.bf16.mxu1 %v6544_v10 }
 0x544   :  { %2164 = vmatpush1.bf16.msra.mxu0 %v6652_v9  ;;  %2205 = vmatpush1.bf16.msra.mxu1 %v6653_v13  ;;  %v6732_v9 = vld [vmem:[#allocation30_spill] sm:$0xff]  ;;  %v6733_v13 = vld [vmem:[#allocation31_spill] sm:$0xff] }
 0x545   :  { %2165 = vmatprep.subr.bf16.mxu0 %v6654_v12  ;;  %2206 = vmatprep.subr.bf16.mxu1 %v6655_v11  ;;  %v6734_v12 = vld [vmem:[#allocation32_spill] sm:$0xff]  ;;  %v6735_v11 = vld [vmem:[#allocation33_spill] sm:$0xff] }
 0x548   :  { %2166 = vmatpush1.bf16.msra.mxu0 %v6656_v22  ;;  %2207 = vmatpush1.bf16.msra.mxu1 %v6657_v33  ;;  %v6736_v22 = vld [vmem:[#allocation34_spill] sm:$0xff]  ;;  %v6737_v33 = vld [vmem:[#allocation35_spill] sm:$0xff] }
 0x549   :  { %2167 = vmatprep.subr.bf16.mxu0 %v6658_v2  ;;  %2208 = vmatprep.subr.bf16.mxu1 %v6659_v34  ;;  %v6738_v2 = vld [vmem:[#allocation36_spill] sm:$0xff]  ;;  %v6739_v34 = vld [vmem:[#allocation37_spill] sm:$0xff] }
 0x54c   :  { %2168 = vmatpush1.bf16.msra.mxu0 %v6660_v50  ;;  %2209 = vmatpush1.bf16.msra.mxu1 %v6661_v37  ;;  %v6740_v50 = vld [vmem:[#allocation38_spill] sm:$0xff]  ;;  %v6741_v37 = vld [vmem:[#allocation39_spill] sm:$0xff] }
 0x54d   :  { %2169 = vmatprep.subr.bf16.mxu0 %v6662_v26  ;;  %2210 = vmatprep.subr.bf16.mxu1 %v6663_v62  ;;  %v6742_v26 = vld [vmem:[#allocation40_spill] sm:$0xff]  ;;  %v6743_v62 = vld [vmem:[#allocation41_spill] sm:$0xff] }
 0x550   :  { %2170 = vmatpush1.bf16.msra.mxu0 %v6664_v63  ;;  %2211 = vmatpush1.bf16.msra.mxu1 %v6665_v1  ;;  %v6744_v63 = vld [vmem:[#allocation42_spill] sm:$0xff]  ;;  %v6745_v1 = vld [vmem:[#allocation16_spill] sm:$0xff] }
 0x551   :  { %2171 = vmatprep.subr.bf16.mxu0 %v6666_v23  ;;  %2212 = vmatprep.subr.bf16.mxu1 %v6667_v3  ;;  %v6746_v23 = vld [vmem:[#allocation17_spill] sm:$0xff]  ;;  %v6747_v3 = vld [vmem:[#allocation48_spill] sm:$0xff] }
 0x554   :  { %2172 = vmatpush1.bf16.msra.mxu0 %v6668_v32  ;;  %2213 = vmatpush1.bf16.msra.mxu1 %v6669_v42  ;;  %v6748_v32 = vld [vmem:[#allocation49_spill] sm:$0xff]  ;;  %v6749_v42 = vld [vmem:[#allocation50_spill] sm:$0xff] }
 0x555   :  { %2173 = vmatprep.subr.bf16.mxu0 %v6670_v43  ;;  %2214 = vmatprep.subr.bf16.mxu1 %v6671_v54  ;;  %v6750_v43 = vld [vmem:[#allocation51_spill] sm:$0xff] }
 0x556   :  { %v6751_v54 = vld [vmem:[#allocation19_spill] sm:$0xff] }
 0x558   :  { %2174 = vmatpush1.bf16.msra.mxu0 %v6672_v40  ;;  %2215 = vmatpush1.bf16.msra.mxu1 %v6673_v44  ;;  %v6752_v40 = vld [vmem:[#allocation20_spill] sm:$0xff]  ;;  %v6753_v44 = vld [vmem:[#allocation21_spill] sm:$0xff] }
 0x559   :  { %2175 = vmatprep.subr.bf16.mxu0 %v6674_v25  ;;  %2216 = vmatprep.subr.bf16.mxu1 %v6675_v29  ;;  %v6754_v25 = vld [vmem:[#allocation22_spill] sm:$0xff]  ;;  %v6755_v29 = vld [vmem:[#allocation23_spill] sm:$0xff] }
 0x55c   :  { %2176 = vmatpush1.bf16.msra.mxu0 %v6676_v55  ;;  %2217 = vmatpush1.bf16.msra.mxu1 %v6677_v60 }
 0x55d   :  { %2266 = vmatprep.subr.bf16.mxu0 %v5218_v39  ;;  %2307 = vmatprep.subr.bf16.mxu1 %v5221_v27 }
 0x55f   :  { %2194 = vmatmul.mubr.bf16.vlgmr.msra.gmra.mrb[64].mxu0 %v5338_v47  ;;  %2235 = vmatmul.mubr.bf16.vlgmr.msra.gmra.mrb[64].mxu1 %v5338_v47 }
 0x560   :  { %2267 = vmatpush1.bf16.msra.mxu0 %v5226_v61  ;;  %2308 = vmatpush1.bf16.msra.mxu1 %v5229_v19 }
 0x561   :  { %2268 = vmatprep.subr.bf16.mxu0 %v6726_v28  ;;  %2309 = vmatprep.subr.bf16.mxu1 %v6727_v46 }
 0x562   :  { %2298 = vmatprep.mubr.bf16.mxu0 %v6544_v10  ;;  %2339 = vmatprep.mubr.bf16.mxu1 %v6544_v10 }
 0x564   :  { %2269 = vmatpush1.bf16.msra.mxu0 %v6728_v41  ;;  %2310 = vmatpush1.bf16.msra.mxu1 %v6729_v38 }
 0x565   :  { %2270 = vmatprep.subr.bf16.mxu0 %v6730_v31  ;;  %2311 = vmatprep.subr.bf16.mxu1 %v6731_v49 }
 0x568   :  { %2271 = vmatpush1.bf16.msra.mxu0 %v6732_v9  ;;  %2312 = vmatpush1.bf16.msra.mxu1 %v6733_v13 }
 0x569   :  { %2272 = vmatprep.subr.bf16.mxu0 %v6734_v12  ;;  %2313 = vmatprep.subr.bf16.mxu1 %v6735_v11 }
 0x56c   :  { %2273 = vmatpush1.bf16.msra.mxu0 %v6736_v22  ;;  %2314 = vmatpush1.bf16.msra.mxu1 %v6737_v33 }
 0x56d   :  { %2274 = vmatprep.subr.bf16.mxu0 %v6738_v2  ;;  %2315 = vmatprep.subr.bf16.mxu1 %v6739_v34 }
 0x570   :  { %2275 = vmatpush1.bf16.msra.mxu0 %v6740_v50  ;;  %2316 = vmatpush1.bf16.msra.mxu1 %v6741_v37 }
 0x571   :  { %2276 = vmatprep.subr.bf16.mxu0 %v6742_v26  ;;  %2317 = vmatprep.subr.bf16.mxu1 %v6743_v62 }
 0x574   :  { %2277 = vmatpush1.bf16.msra.mxu0 %v6744_v63  ;;  %2318 = vmatpush1.bf16.msra.mxu1 %v6745_v1 }
 0x575   :  { %2278 = vmatprep.subr.bf16.mxu0 %v6746_v23  ;;  %2319 = vmatprep.subr.bf16.mxu1 %v6747_v3 }
 0x578   :  { %2279 = vmatpush1.bf16.msra.mxu0 %v6748_v32  ;;  %2320 = vmatpush1.bf16.msra.mxu1 %v6749_v42 }
 0x579   :  { %2280 = vmatprep.subr.bf16.mxu0 %v6750_v43  ;;  %2321 = vmatprep.subr.bf16.mxu1 %v6751_v54 }
 0x57c   :  { %2281 = vmatpush1.bf16.msra.mxu0 %v6752_v40  ;;  %2322 = vmatpush1.bf16.msra.mxu1 %v6753_v44 }
 0x57d   :  { %2348 = vmatprep.subr.bf16.mxu0 %v6754_v25  ;;  %2389 = vmatprep.subr.bf16.mxu1 %v6755_v29 }
 0x5f2   :  { %v2003_v55 = vpop.f32.mrb[56].mxu0  ;;  %v2044_v60 = vpop.f32.mrb[56].mxu1 }
 0x5f3   :  { %v2005_v47 = vpop.f32.mrb[57].mxu0  ;;  %v2046_v59 = vpop.f32.mrb[57].mxu1 }
 0x5f4   :  { %v2007_v7 = vpop.f32.mrb[58].mxu0  ;;  %v2048_v14 = vpop.f32.mrb[58].mxu1 }
 0x5f5   :  { %v2008_v5 = vpop.f32.mrb[59].mxu0  ;;  %v2049_v42 = vpop.f32.mrb[59].mxu1 }
 0x5f6   :  { %v6756_v42 = vld [vmem:[#allocation18_spill] sm:$0xff] }
 0x612   :  { %v2085_v32 = vpop.f32.mrb[60].mxu0  ;;  %v2126_v43 = vpop.f32.mrb[60].mxu1 }
 0x613   :  { %v2086_v3 = vadd.f32 %v2085_v32, %v2003_v55  ;;  %v2127_v54 = vadd.f32 %v2126_v43, %v2044_v60  ;;  %v2087_v23 = vpop.f32.mrb[61].mxu0  ;;  %v2128_v40 = vpop.f32.mrb[61].mxu1 }
 0x614   :  { %v2088_v1 = vadd.f32 %v2087_v23, %v2005_v47  ;;  %v2129_v44 = vadd.f32 %v2128_v40, %v2046_v59  ;;  %v2089_v63 = vpop.f32.mrb[62].mxu0  ;;  %v2130_v25 = vpop.f32.mrb[62].mxu1  ;;  %v6758_v47 = vld [vmem:[#allocation57_spill] sm:$0xff] }
 0x615   :  { %v2133_v29 = vadd.f32 %v2086_v3, %v6645_v24  ;;  %v2090_v62 = vpop.f32.mrb[63].mxu0  ;;  %v2131_v26 = vpop.f32.mrb[63].mxu1  ;;  %v2135_v5 = vadd.f32 %v2127_v54, %v6756_v42 }
 0x616   :  { %v2134_v37 = vadd.f32 %v2088_v1, %v6646_v4 }
 0x617   :  { %v2137_v7 = vmul.f32 0.5, %v2133_v29 }
 0x618   :  { %v2141_v14 = vmul.f32 0.5, %v2134_v37  ;;  %v6757_v37 = vld [vmem:[#allocation56_spill] sm:$0xff] }
 0x619   :  { %3870 = vtanh.f32 %v2137_v7 }
 0x61a   :  { %3872 = vtanh.f32 %v2141_v14  ;;  %v6759_v14 = vld [vmem:[#allocation58_spill] sm:$0xff] }
 0x61b   :  { %3874 = vtanh.f32 %v2135_v5 }
 0x623   :  { %v3871_v32 = vpop.eup %3870 }
 0x624   :  { %v3873_v43 = vpop.eup %3872  ;;  %v2139_v55 = vmul.f32 0.5, %v3871_v32  ;;  %v6760_v32 = vld [vmem:[#allocation59_spill] sm:$0xff] }
 0x625   :  { %v2143_v23 = vmul.f32 0.5, %v3873_v43  ;;  %v3875_v63 = vpop.eup %3874 }
 0x626   :  { %v2140_v40 = vadd.f32 0.5, %v2139_v55 }
 0x627   :  { %v2144_v25 = vadd.f32 0.5, %v2143_v23 }
 0x628   :  { %v2151_v60 = vmul.f32 %v3875_v63, %v2140_v40 }
 0x629   :  { %v2150_v62 = vmul.f32 %v2144_v25, %v5328_v48 }
 0x62b   :  { %v5512_v26 = vadd.f32 %v2151_v60, %v2150_v62 }
 0x632   :  { %v2195_v1 = vpop.f32.mrb[64].mxu0  ;;  %v2236_v3 = vpop.f32.mrb[64].mxu1 }
 0x633   :  { %v2243_v29 = vadd.f32 %v2195_v1, %v6757_v37  ;;  %v2245_v54 = vadd.f32 %v2236_v3, %v6758_v47  ;;  %v2197_v59 = vpop.f32.mrb[65].mxu0  ;;  %v2238_v7 = vpop.f32.mrb[65].mxu1 }
 0x634   :  { %v2244_v5 = vadd.f32 %v2197_v59, %v6759_v14  ;;  %v2246_v43 = vadd.f32 %v2238_v7, %v6760_v32  ;;  %v2199_v55 = vpop.f32.mrb[66].mxu0  ;;  %v2240_v42 = vpop.f32.mrb[66].mxu1 }
 0x635   :  { %v2247_v23 = vmul.f32 0.5, %v2243_v29  ;;  %v2200_v40 = vpop.f32.mrb[67].mxu0  ;;  %v2241_v63 = vpop.f32.mrb[67].mxu1 }
 0x636   :  { %v2251_v48 = vmul.f32 0.5, %v2244_v5  ;;  %v2256_v25 = vmul.f32 0.5, %v2246_v43  ;;  %v6762_v40 = vld [vmem:[#allocation44_spill] sm:$0xff]  ;;  %v6763_v63 = vld [vmem:[#allocation45_spill] sm:$0xff] }
 0x637   :  { %3876 = vtanh.f32 %v2247_v23  ;;  %v2136_v23 = vadd.f32 %v2129_v44, %v4956_v30  ;;  %v6761_v44 = vld [vmem:[#allocation43_spill] sm:$0xff] }
 0x638   :  { %3878 = vtanh.f32 %v2251_v48  ;;  %v6764_v48 = vld [vmem:[#allocation46_spill] sm:$0xff] }
 0x639   :  { %3880 = vtanh.f32 %v2245_v54 }
 0x63a   :  { %3882 = vtanh.f32 %v2256_v25 }
 0x641   :  { %v3877_v60 = vpop.eup %3876 }
 0x642   :  { %v3879_v62 = vpop.eup %3878  ;;  %v2249_v1 = vmul.f32 0.5, %v3877_v60  ;;  %v6765_v60 = vld [vmem:[#allocation47_spill] sm:$0xff] }
 0x643   :  { %v2253_v3 = vmul.f32 0.5, %v3879_v62  ;;  %v3881_v47 = vpop.eup %3880  ;;  %v6766_v62 = vld [vmem:[#allocation72_spill] sm:$0xff] }
 0x644   :  { %v2250_v37 = vadd.f32 0.5, %v2249_v1  ;;  %v3883_v29 = vpop.eup %3882  ;;  %v6767_v1 = vld [vmem:[#allocation73_spill] sm:$0xff] }
 0x645   :  { %v2254_v59 = vadd.f32 0.5, %v2253_v3  ;;  %v2258_v5 = vmul.f32 0.5, %v3883_v29  ;;  %v6768_v3 = vld [vmem:[#allocation74_spill] sm:$0xff] }
 0x646   :  { %v2261_v14 = vmul.f32 %v3881_v47, %v2250_v37  ;;  %v6769_v47 = vld [vmem:[#allocation75_spill] sm:$0xff] }
 0x647   :  { %v2260_v7 = vmul.f32 %v2254_v59, %v5335_v21  ;;  %v2259_v32 = vadd.f32 0.5, %v2258_v5  ;;  %v2146_v21 = vmul.f32 0.5, %v2136_v23  ;;  %v6770_v59 = vld [vmem:[#allocation76_spill] sm:$0xff]  ;;  %v5560_v23 = vld [vmem:[#allocation6 + $0x4] ss:$16 sps:$4 sm:$0xff]  }
 0x649   :  { %v5519_v42 = vadd.f32 %v2261_v14, %v2260_v7  ;;  %v6771_v14 = vld [vmem:[#allocation77_spill] sm:$0xff]  ;;  %v6772_v7 = vld [vmem:[#allocation78_spill] sm:$0xff] }
 0x64b   :  { %3884 = vtanh.f32 %v5519_v42 }
 0x64c   :  { %3886 = vtanh.f32 %v2146_v21  ;;  %v5563_v21 = vld [vmem:[#allocation6 + $0xc] ss:$16 sps:$4 sm:$0xff]  }
 0x64d   :  { %3888 = vtanh.f32 %v5512_v26 }
 0x655   :  { %v3885_v54 = vpop.eup %3884 }
 0x656   :  { %v2264_v43 = vmul.f32 %v3885_v54, %v2259_v32  ;;  %v3887_v25 = vpop.eup %3886  ;;  %v6773_v32 = vld [vmem:[#allocation79_spill] sm:$0xff] }
 0x657   :  { %v2148_v37 = vmul.f32 0.5, %v3887_v25  ;;  %v3889_v29 = vpop.eup %3888  ;;  %v5566_v25 = vld [vmem:[#allocation6] ss:$16 sps:$4 sm:$0xff]  }
 0x658   :  { %v5522_v55 = vpack.c.bf16 %v2264_v43, %v2264_v43  ;;  %6774 = vst [vmem:[#allocation80_spill] sm:$0xff] %v5566_v25 }
 0x659   :  { %v2149_v5 = vadd.f32 0.5, %v2148_v37  ;;  %v5569_v37 = vld [vmem:[#allocation6 + $0x8] ss:$16 sps:$4 sm:$0xff]  }
 0x65a   :  { %2299 = vmatmul.mubr.bf16.vlgmr.msra.gmra.mrb[68].mxu0 %v5522_v55  ;;  %2340 = vmatmul.mubr.bf16.vlgmr.msra.gmra.mrb[68].mxu1 %v5522_v55  ;;  %6775 = vst [vmem:[#allocation81_spill] sm:$0xff] %v5569_v37 }
 0x65b   :  { %2349 = vmatpush1.bf16.msra.mxu0 %v5343_v15  ;;  %2390 = vmatpush1.bf16.msra.mxu1 %v5346_v16  ;;  %v2154_v54 = vmul.f32 %v3889_v29, %v2149_v5  ;;  %v5572_v29 = vld [vmem:[#allocation6 + $0x24] ss:$16 sps:$4 sm:$0xff]   ;;  %v5575_v5 = vld [vmem:[#allocation6 + $0x2c] ss:$16 sps:$4 sm:$0xff]  }
 0x65c   :  { %2350 = vmatprep.subr.bf16.mxu0 %v5349_v56  ;;  %2391 = vmatprep.subr.bf16.mxu1 %v5352_v53  ;;  %6776 = vst [vmem:[#allocation82_spill] sm:$0xff] %v5572_v29  ;;  %6777 = vst [vmem:[#allocation83_spill] sm:$0xff] %v5575_v5 }
 0x65d   :  { %2380 = vmatprep.mubr.bf16.mxu0 %v6544_v10  ;;  %2421 = vmatprep.mubr.bf16.mxu1 %v6544_v10  ;;  %v2155_v43 = vpack.c.bf16 %v2154_v54, %v2154_v54  ;;  %v5580_v54 = vld [vmem:[#allocation6 + $0x20] ss:$16 sps:$4 sm:$0xff]  }
 0x65e   :  { %6778 = vst [vmem:[#allocation84_spill] sm:$0xff] %v5580_v54 }
 0x65f   :  { %2351 = vmatpush1.bf16.msra.mxu0 %v5357_v52  ;;  %2392 = vmatpush1.bf16.msra.mxu1 %v5360_v36 }
 0x660   :  { %2352 = vmatprep.subr.bf16.mxu0 %v5363_v20  ;;  %2393 = vmatprep.subr.bf16.mxu1 %v5366_v57 }
 0x663   :  { %2353 = vmatpush1.bf16.msra.mxu0 %v5369_v51  ;;  %2394 = vmatpush1.bf16.msra.mxu1 %v5372_v35 }
 0x664   :  { %2354 = vmatprep.subr.bf16.mxu0 %v5375_v8  ;;  %2395 = vmatprep.subr.bf16.mxu1 %v5378_v0 }
 0x667   :  { %2355 = vmatpush1.bf16.msra.mxu0 %v6761_v44  ;;  %2396 = vmatpush1.bf16.msra.mxu1 %v6762_v40 }
 0x668   :  { %2356 = vmatprep.subr.bf16.mxu0 %v6763_v63  ;;  %2397 = vmatprep.subr.bf16.mxu1 %v6764_v48 }
 0x66b   :  { %2357 = vmatpush1.bf16.msra.mxu0 %v6765_v60  ;;  %2398 = vmatpush1.bf16.msra.mxu1 %v6766_v62 }
 0x66c   :  { %2358 = vmatprep.subr.bf16.mxu0 %v6767_v1  ;;  %2399 = vmatprep.subr.bf16.mxu1 %v6768_v3 }
 0x66f   :  { %2359 = vmatpush1.bf16.msra.mxu0 %v6769_v47  ;;  %2400 = vmatpush1.bf16.msra.mxu1 %v6770_v59 }
 0x670   :  { %2360 = vmatprep.subr.bf16.mxu0 %v6771_v14  ;;  %2401 = vmatprep.subr.bf16.mxu1 %v6772_v7 }
 0x673   :  { %2361 = vmatpush1.bf16.msra.mxu0 %v6773_v32  ;;  %2402 = vmatpush1.bf16.msra.mxu1 %v5421_v17 }
 0x674   :  { %2362 = vmatprep.subr.bf16.mxu0 %v5424_v18  ;;  %2403 = vmatprep.subr.bf16.mxu1 %v5427_v45 }
 0x677   :  { %2363 = vmatpush1.bf16.msra.mxu0 %v5430_v58  ;;  %2404 = vmatpush1.bf16.msra.mxu1 %v5433_v6 }
 0x678   :  { %2458 = vmatprep.subr.bf16.mxu0 %v5560_v23  ;;  %2499 = vmatprep.subr.bf16.mxu1 %v5563_v21 }
 0x67a   :  { %2381 = vmatmul.mubr.bf16.vlgmr.msra.gmra.mrb[72].mxu0 %v2155_v43  ;;  %2422 = vmatmul.mubr.bf16.vlgmr.msra.gmra.mrb[72].mxu1 %v2155_v43  ;;  %v5583_v43 = vld [vmem:[#allocation6 + $0x28] ss:$16 sps:$4 sm:$0xff]  }
 0x67b   :  { %2459 = vmatpush1.bf16.msra.mxu0 %v5566_v25  ;;  %2500 = vmatpush1.bf16.msra.mxu1 %v5569_v37  ;;  %6779 = vst [vmem:[#allocation85_spill] sm:$0xff] %v5583_v43  ;;  %v5586_v37 = vld [vmem:[#allocation6 + $0x44] ss:$16 sps:$4 sm:$0xff]   ;;  %v5595_v25 = vld [vmem:[#allocation6 + $0x48] ss:$16 sps:$4 sm:$0xff]  }
 0x67c   :  { %2460 = vmatprep.subr.bf16.mxu0 %v5572_v29  ;;  %2501 = vmatprep.subr.bf16.mxu1 %v5575_v5  ;;  %6780 = vst [vmem:[#allocation86_spill] sm:$0xff] %v5586_v37  ;;  %v5589_v29 = vld [vmem:[#allocation6 + $0x4c] ss:$16 sps:$4 sm:$0xff]   ;;  %v5592_v5 = vld [vmem:[#allocation6 + $0x40] ss:$16 sps:$4 sm:$0xff]   ;;  %6783 = vst [vmem:[#allocation53_spill] sm:$0xff] %v5595_v25 }
 0x67d   :  { %2490 = vmatprep.mubr.bf16.mxu0 %v6544_v10  ;;  %2531 = vmatprep.mubr.bf16.mxu1 %v6544_v10  ;;  %6781 = vst [vmem:[#allocation87_spill] sm:$0xff] %v5589_v29  ;;  %6782 = vst [vmem:[#allocation52_spill] sm:$0xff] %v5592_v5 }
 0x67f   :  { %2461 = vmatpush1.bf16.msra.mxu0 %v5580_v54  ;;  %2502 = vmatpush1.bf16.msra.mxu1 %v5583_v43  ;;  %v5598_v54 = vld [vmem:[#allocation6 + $0x64] ss:$16 sps:$4 sm:$0xff]   ;;  %v5601_v43 = vld [vmem:[#allocation6 + $0x6c] ss:$16 sps:$4 sm:$0xff]  }
 0x680   :  { %2462 = vmatprep.subr.bf16.mxu0 %v5586_v37  ;;  %2503 = vmatprep.subr.bf16.mxu1 %v5589_v29  ;;  %6784 = vst [vmem:[#allocation54_spill] sm:$0xff] %v5598_v54  ;;  %6785 = vst [vmem:[#allocation55_spill] sm:$0xff] %v5601_v43  ;;  %v5604_v37 = vld [vmem:[#allocation6 + $0x60] ss:$16 sps:$4 sm:$0xff]   ;;  %v5607_v29 = vld [vmem:[#allocation6 + $0x68] ss:$16 sps:$4 sm:$0xff]  }
 0x681   :  { %6786 = vst [vmem:[#allocation24_spill] sm:$0xff] %v5604_v37  ;;  %6787 = vst [vmem:[#allocation25_spill] sm:$0xff] %v5607_v29 }
 0x683   :  { %2463 = vmatpush1.bf16.msra.mxu0 %v5592_v5  ;;  %2504 = vmatpush1.bf16.msra.mxu1 %v5595_v25  ;;  %v5610_v5 = vld [vmem:[#allocation6 + $0x84] ss:$16 sps:$4 sm:$0xff]   ;;  %v5613_v25 = vld [vmem:[#allocation6 + $0x8c] ss:$16 sps:$4 sm:$0xff]  }
 0x684   :  { %2464 = vmatprep.subr.bf16.mxu0 %v5598_v54  ;;  %2505 = vmatprep.subr.bf16.mxu1 %v5601_v43  ;;  %6788 = vst [vmem:[#allocation26_spill] sm:$0xff] %v5610_v5  ;;  %6789 = vst [vmem:[#allocation27_spill] sm:$0xff] %v5613_v25  ;;  %v5616_v54 = vld [vmem:[#allocation6 + $0x80] ss:$16 sps:$4 sm:$0xff]   ;;  %v5619_v43 = vld [vmem:[#allocation6 + $0x88] ss:$16 sps:$4 sm:$0xff]  }
 0x685   :  { %6790 = vst [vmem:[#allocation28_spill] sm:$0xff] %v5616_v54  ;;  %6791 = vst [vmem:[#allocation29_spill] sm:$0xff] %v5619_v43 }
 0x687   :  { %2465 = vmatpush1.bf16.msra.mxu0 %v5604_v37  ;;  %2506 = vmatpush1.bf16.msra.mxu1 %v5607_v29  ;;  %v5622_v37 = vld [vmem:[#allocation6 + $0xa4] ss:$16 sps:$4 sm:$0xff]   ;;  %v5625_v29 = vld [vmem:[#allocation6 + $0xac] ss:$16 sps:$4 sm:$0xff]  }
 0x688   :  { %2466 = vmatprep.subr.bf16.mxu0 %v5610_v5  ;;  %2507 = vmatprep.subr.bf16.mxu1 %v5613_v25  ;;  %6792 = vst [vmem:[#allocation30_spill] sm:$0xff] %v5622_v37  ;;  %6793 = vst [vmem:[#allocation31_spill] sm:$0xff] %v5625_v29  ;;  %v5628_v5 = vld [vmem:[#allocation6 + $0xa0] ss:$16 sps:$4 sm:$0xff]   ;;  %v5631_v25 = vld [vmem:[#allocation6 + $0xa8] ss:$16 sps:$4 sm:$0xff]  }
 0x689   :  { %6794 = vst [vmem:[#allocation32_spill] sm:$0xff] %v5628_v5  ;;  %6795 = vst [vmem:[#allocation33_spill] sm:$0xff] %v5631_v25 }
 0x68b   :  { %2467 = vmatpush1.bf16.msra.mxu0 %v5616_v54  ;;  %2508 = vmatpush1.bf16.msra.mxu1 %v5619_v43  ;;  %v5634_v54 = vld [vmem:[#allocation6 + $0xc4] ss:$16 sps:$4 sm:$0xff]   ;;  %v5637_v43 = vld [vmem:[#allocation6 + $0xcc] ss:$16 sps:$4 sm:$0xff]  }
 0x68c   :  { %2468 = vmatprep.subr.bf16.mxu0 %v5622_v37  ;;  %2509 = vmatprep.subr.bf16.mxu1 %v5625_v29  ;;  %6796 = vst [vmem:[#allocation34_spill] sm:$0xff] %v5634_v54  ;;  %6797 = vst [vmem:[#allocation35_spill] sm:$0xff] %v5637_v43  ;;  %v5640_v37 = vld [vmem:[#allocation6 + $0xc0] ss:$16 sps:$4 sm:$0xff]   ;;  %v5643_v29 = vld [vmem:[#allocation6 + $0xc8] ss:$16 sps:$4 sm:$0xff]  }
 0x68f   :  { %2469 = vmatpush1.bf16.msra.mxu0 %v5628_v5  ;;  %2510 = vmatpush1.bf16.msra.mxu1 %v5631_v25  ;;  %v5646_v5 = vld [vmem:[#allocation6 + $0xe4] ss:$16 sps:$4 sm:$0xff]   ;;  %v5649_v25 = vld [vmem:[#allocation6 + $0xec] ss:$16 sps:$4 sm:$0xff]  }
 0x690   :  { %2470 = vmatprep.subr.bf16.mxu0 %v5634_v54  ;;  %2511 = vmatprep.subr.bf16.mxu1 %v5637_v43  ;;  %v5652_v54 = vld [vmem:[#allocation6 + $0xe0] ss:$16 sps:$4 sm:$0xff]   ;;  %v5655_v43 = vld [vmem:[#allocation6 + $0xe8] ss:$16 sps:$4 sm:$0xff]  }
 0x691   :  { %6798 = vst [vmem:[#allocation36_spill] sm:$0xff] %v5652_v54  ;;  %6799 = vst [vmem:[#allocation37_spill] sm:$0xff] %v5655_v43 }
 0x693   :  { %2471 = vmatpush1.bf16.msra.mxu0 %v5640_v37  ;;  %2512 = vmatpush1.bf16.msra.mxu1 %v5643_v29 }
 0x694   :  { %2472 = vmatprep.subr.bf16.mxu0 %v5646_v5  ;;  %2513 = vmatprep.subr.bf16.mxu1 %v5649_v25 }
 0x697   :  { %2473 = vmatpush1.bf16.msra.mxu0 %v5652_v54  ;;  %2514 = vmatpush1.bf16.msra.mxu1 %v5655_v43 }
 0x698   :  { %2563 = vmatprep.subr.bf16.mxu0 %v5218_v39  ;;  %2604 = vmatprep.subr.bf16.mxu1 %v5221_v27  ;;  %v6800_v39 = vld [vmem:[#allocation39_spill] sm:$0xff]  ;;  %v6801_v27 = vld [vmem:[#allocation40_spill] sm:$0xff] }
 0x69a   :  { %2491 = vmatmul.mubr.bf16.vlgmr.msra.gmra.mrb[76].mxu0 %v5522_v55  ;;  %2532 = vmatmul.mubr.bf16.vlgmr.msra.gmra.mrb[76].mxu1 %v5522_v55 }
 0x69b   :  { %2564 = vmatpush1.bf16.msra.mxu0 %v5226_v61  ;;  %2605 = vmatpush1.bf16.msra.mxu1 %v5229_v19  ;;  %v6802_v61 = vld [vmem:[#allocation41_spill] sm:$0xff]  ;;  %v6803_v19 = vld [vmem:[#allocation42_spill] sm:$0xff] }
 0x69c   :  { %2565 = vmatprep.subr.bf16.mxu0 %v6726_v28  ;;  %2606 = vmatprep.subr.bf16.mxu1 %v6727_v46  ;;  %v6804_v28 = vld [vmem:[#allocation16_spill] sm:$0xff]  ;;  %v6805_v46 = vld [vmem:[#allocation17_spill] sm:$0xff] }
 0x69d   :  { %2595 = vmatprep.mubr.bf16.mxu0 %v6544_v10  ;;  %2636 = vmatprep.mubr.bf16.mxu1 %v6544_v10 }
 0x69f   :  { %2566 = vmatpush1.bf16.msra.mxu0 %v6728_v41  ;;  %2607 = vmatpush1.bf16.msra.mxu1 %v6729_v38  ;;  %v6806_v41 = vld [vmem:[#allocation48_spill] sm:$0xff]  ;;  %v6807_v38 = vld [vmem:[#allocation49_spill] sm:$0xff] }
 0x6a0   :  { %2567 = vmatprep.subr.bf16.mxu0 %v6730_v31  ;;  %2608 = vmatprep.subr.bf16.mxu1 %v6731_v49  ;;  %v6808_v31 = vld [vmem:[#allocation50_spill] sm:$0xff]  ;;  %v6809_v49 = vld [vmem:[#allocation51_spill] sm:$0xff] }
 0x6a3   :  { %2568 = vmatpush1.bf16.msra.mxu0 %v6732_v9  ;;  %2609 = vmatpush1.bf16.msra.mxu1 %v6733_v13  ;;  %v6810_v9 = vld [vmem:[#allocation19_spill] sm:$0xff]  ;;  %v6811_v13 = vld [vmem:[#allocation20_spill] sm:$0xff] }
 0x6a4   :  { %2569 = vmatprep.subr.bf16.mxu0 %v6734_v12  ;;  %2610 = vmatprep.subr.bf16.mxu1 %v6735_v11  ;;  %v6812_v12 = vld [vmem:[#allocation21_spill] sm:$0xff]  ;;  %v6813_v11 = vld [vmem:[#allocation22_spill] sm:$0xff] }
 0x6a7   :  { %2570 = vmatpush1.bf16.msra.mxu0 %v6736_v22  ;;  %2611 = vmatpush1.bf16.msra.mxu1 %v6737_v33  ;;  %v6814_v22 = vld [vmem:[#allocation23_spill] sm:$0xff] }
 0x6a8   :  { %2571 = vmatprep.subr.bf16.mxu0 %v6738_v2  ;;  %2612 = vmatprep.subr.bf16.mxu1 %v6739_v34 }
 0x6ab   :  { %2572 = vmatpush1.bf16.msra.mxu0 %v6740_v50  ;;  %2613 = vmatpush1.bf16.msra.mxu1 %v6800_v39 }
 0x6ac   :  { %2573 = vmatprep.subr.bf16.mxu0 %v6801_v27  ;;  %2614 = vmatprep.subr.bf16.mxu1 %v6802_v61 }
 0x6af   :  { %2574 = vmatpush1.bf16.msra.mxu0 %v6803_v19  ;;  %2615 = vmatpush1.bf16.msra.mxu1 %v6804_v28 }
 0x6b0   :  { %2575 = vmatprep.subr.bf16.mxu0 %v6805_v46  ;;  %2616 = vmatprep.subr.bf16.mxu1 %v6806_v41 }
 0x6b3   :  { %2576 = vmatpush1.bf16.msra.mxu0 %v6807_v38  ;;  %2617 = vmatpush1.bf16.msra.mxu1 %v6808_v31 }
 0x6b4   :  { %2577 = vmatprep.subr.bf16.mxu0 %v6809_v49  ;;  %2618 = vmatprep.subr.bf16.mxu1 %v6810_v9 }
 0x6b7   :  { %2578 = vmatpush1.bf16.msra.mxu0 %v6811_v13  ;;  %2619 = vmatpush1.bf16.msra.mxu1 %v6812_v12 }
 0x6b8   :  { %2645 = vmatprep.subr.bf16.mxu0 %v6813_v11  ;;  %2686 = vmatprep.subr.bf16.mxu1 %v6814_v22 }
 0x72d   :  { %v2300_v33 = vpop.f32.mrb[68].mxu0  ;;  %v2341_v2 = vpop.f32.mrb[68].mxu1 }
 0x72e   :  { %v2302_v34 = vpop.f32.mrb[69].mxu0  ;;  %v2343_v50 = vpop.f32.mrb[69].mxu1 }
 0x72f   :  { %v2304_v55 = vpop.f32.mrb[70].mxu0  ;;  %v2345_v39 = vpop.f32.mrb[70].mxu1 }
 0x730   :  { %v2305_v27 = vpop.f32.mrb[71].mxu0  ;;  %v2346_v61 = vpop.f32.mrb[71].mxu1 }
 0x731   :  { %v6815_v27 = vld [vmem:[#allocation18_spill] sm:$0xff] }
 0x74d   :  { %v2382_v19 = vpop.f32.mrb[72].mxu0  ;;  %v2423_v28 = vpop.f32.mrb[72].mxu1 }
 0x74e   :  { %v2383_v46 = vadd.f32 %v2382_v19, %v2300_v33  ;;  %v2424_v41 = vadd.f32 %v2423_v28, %v2341_v2  ;;  %v2384_v38 = vpop.f32.mrb[73].mxu0  ;;  %v2425_v31 = vpop.f32.mrb[73].mxu1 }
 0x74f   :  { %v2385_v49 = vadd.f32 %v2384_v38, %v2302_v34  ;;  %v2426_v9 = vadd.f32 %v2425_v31, %v2343_v50  ;;  %v2386_v13 = vpop.f32.mrb[74].mxu0  ;;  %v2427_v12 = vpop.f32.mrb[74].mxu1 }
 0x750   :  { %v2430_v11 = vadd.f32 %v2383_v46, %v6645_v24  ;;  %v2387_v22 = vpop.f32.mrb[75].mxu0  ;;  %v2428_v43 = vpop.f32.mrb[75].mxu1  ;;  %v2432_v61 = vadd.f32 %v2424_v41, %v6815_v27 }
 0x751   :  { %v2431_v54 = vadd.f32 %v2385_v49, %v6646_v4 }
 0x752   :  { %v2434_v55 = vmul.f32 0.5, %v2430_v11  ;;  %v6817_v11 = vld [vmem:[#allocation61_spill] sm:$0xff] }
 0x753   :  { %v2438_v39 = vmul.f32 0.5, %v2431_v54  ;;  %v6816_v54 = vld [vmem:[#allocation60_spill] sm:$0xff] }
 0x754   :  { %3890 = vtanh.f32 %v2434_v55 }
 0x755   :  { %3892 = vtanh.f32 %v2438_v39  ;;  %v6818_v39 = vld [vmem:[#allocation62_spill] sm:$0xff] }
 0x756   :  { %3894 = vtanh.f32 %v2432_v61 }
 0x75e   :  { %v3891_v33 = vpop.eup %3890 }
 0x75f   :  { %v3893_v2 = vpop.eup %3892  ;;  %v2436_v19 = vmul.f32 0.5, %v3891_v33  ;;  %v6819_v33 = vld [vmem:[#allocation63_spill] sm:$0xff] }
 0x760   :  { %v2440_v34 = vmul.f32 0.5, %v3893_v2  ;;  %v3895_v28 = vpop.eup %3894 }
 0x761   :  { %v2437_v50 = vadd.f32 0.5, %v2436_v19 }
 0x762   :  { %v2441_v38 = vadd.f32 0.5, %v2440_v34 }
 0x763   :  { %v2448_v31 = vmul.f32 %v3895_v28, %v2437_v50 }
 0x764   :  { %v2447_v46 = vmul.f32 %v2441_v38, %v5512_v26 }
 0x766   :  { %v5700_v43 = vadd.f32 %v2448_v31, %v2447_v46 }
 0x76d   :  { %v2492_v49 = vpop.f32.mrb[76].mxu0  ;;  %v2533_v13 = vpop.f32.mrb[76].mxu1 }
 0x76e   :  { %v2540_v12 = vadd.f32 %v2492_v49, %v6816_v54  ;;  %v2542_v41 = vadd.f32 %v2533_v13, %v6817_v11  ;;  %v2494_v22 = vpop.f32.mrb[77].mxu0  ;;  %v2535_v55 = vpop.f32.mrb[77].mxu1 }
 0x76f   :  { %v2541_v61 = vadd.f32 %v2494_v22, %v6818_v39  ;;  %v2543_v2 = vadd.f32 %v2535_v55, %v6819_v33  ;;  %v2496_v19 = vpop.f32.mrb[78].mxu0  ;;  %v2537_v27 = vpop.f32.mrb[78].mxu1 }
 0x770   :  { %v2544_v34 = vmul.f32 0.5, %v2540_v12  ;;  %v2497_v50 = vpop.f32.mrb[79].mxu0  ;;  %v2538_v28 = vpop.f32.mrb[79].mxu1 }
 0x771   :  { %v2548_v26 = vmul.f32 0.5, %v2541_v61  ;;  %v2553_v38 = vmul.f32 0.5, %v2543_v2  ;;  %v6845_v50 = vld [vmem:[#allocation37_spill] sm:$0xff] }
 0x772   :  { %3896 = vtanh.f32 %v2544_v34  ;;  %v2433_v34 = vadd.f32 %v2426_v9, %v4956_v30  ;;  %v6844_v9 = vld [vmem:[#allocation36_spill] sm:$0xff]  ;;  %v5782_v28 = vld [vmem:[#allocation8 + $0x4] ss:$16 sps:$4 sm:$0xff]  }
 0x773   :  { %3898 = vtanh.f32 %v2548_v26  ;;  %v5785_v26 = vld [vmem:[#allocation8 + $0xc] ss:$16 sps:$4 sm:$0xff]  }
 0x774   :  { %3900 = vtanh.f32 %v2542_v41 }
 0x775   :  { %3902 = vtanh.f32 %v2553_v38  ;;  %v5790_v38 = vld [vmem:[#allocation8] ss:$16 sps:$4 sm:$0xff]  }
 0x77c   :  { %v3897_v31 = vpop.eup %3896 }
 0x77d   :  { %v3899_v46 = vpop.eup %3898  ;;  %v2546_v49 = vmul.f32 0.5, %v3897_v31  ;;  %v5793_v31 = vld [vmem:[#allocation8 + $0x8] ss:$16 sps:$4 sm:$0xff]  }
 0x77e   :  { %v2550_v13 = vmul.f32 0.5, %v3899_v46  ;;  %v3901_v11 = vpop.eup %3900  ;;  %v5796_v46 = vld [vmem:[#allocation8 + $0x24] ss:$16 sps:$4 sm:$0xff]  }
 0x77f   :  { %v2547_v54 = vadd.f32 0.5, %v2546_v49  ;;  %v3903_v12 = vpop.eup %3902  ;;  %6846 = vst [vmem:[#allocation38_spill] sm:$0xff] %v5796_v46  ;;  %v5799_v49 = vld [vmem:[#allocation8 + $0x2c] ss:$16 sps:$4 sm:$0xff]  }
 0x780   :  { %v2551_v22 = vadd.f32 0.5, %v2550_v13  ;;  %v2555_v61 = vmul.f32 0.5, %v3903_v12  ;;  %6847 = vst [vmem:[#allocation56_spill] sm:$0xff] %v5799_v49  ;;  %v5804_v13 = vld [vmem:[#allocation8 + $0x20] ss:$16 sps:$4 sm:$0xff]  }
 0x781   :  { %v2558_v39 = vmul.f32 %v3901_v11, %v2547_v54  ;;  %6848 = vst [vmem:[#allocation57_spill] sm:$0xff] %v5804_v13  ;;  %v5807_v54 = vld [vmem:[#allocation8 + $0x28] ss:$16 sps:$4 sm:$0xff]   ;;  %v5810_v11 = vld [vmem:[#allocation8 + $0x44] ss:$16 sps:$4 sm:$0xff]  }
 0x782   :  { %v2557_v55 = vmul.f32 %v2551_v22, %v5519_v42  ;;  %v2556_v33 = vadd.f32 0.5, %v2555_v61  ;;  %v2443_v42 = vmul.f32 0.5, %v2433_v34  ;;  %6849 = vst [vmem:[#allocation58_spill] sm:$0xff] %v5807_v54  ;;  %6850 = vst [vmem:[#allocation59_spill] sm:$0xff] %v5810_v11  ;;  %v5813_v22 = vld [vmem:[#allocation8 + $0x4c] ss:$16 sps:$4 sm:$0xff]  }
 0x783   :  { %6851 = vst [vmem:[#allocation43_spill] sm:$0xff] %v5813_v22  ;;  %v5822_v12 = vld [vmem:[#allocation8 + $0x64] ss:$16 sps:$4 sm:$0xff]   ;;  %v5825_v61 = vld [vmem:[#allocation8 + $0x6c] ss:$16 sps:$4 sm:$0xff]  }
 0x784   :  { %v5707_v27 = vadd.f32 %v2558_v39, %v2557_v55  ;;  %v5816_v39 = vld [vmem:[#allocation8 + $0x40] ss:$16 sps:$4 sm:$0xff]   ;;  %v5819_v55 = vld [vmem:[#allocation8 + $0x48] ss:$16 sps:$4 sm:$0xff]   ;;  %6854 = vst [vmem:[#allocation46_spill] sm:$0xff] %v5822_v12  ;;  %6855 = vst [vmem:[#allocation47_spill] sm:$0xff] %v5825_v61 }
 0x785   :  { %6852 = vst [vmem:[#allocation44_spill] sm:$0xff] %v5816_v39  ;;  %6853 = vst [vmem:[#allocation45_spill] sm:$0xff] %v5819_v55  ;;  %v5840_v34 = vld [vmem:[#allocation8 + $0x80] ss:$16 sps:$4 sm:$0xff]  }
 0x786   :  { %3904 = vtanh.f32 %v5707_v27  ;;  %6860 = vst [vmem:[#allocation76_spill] sm:$0xff] %v5840_v34 }
 0x787   :  { %3906 = vtanh.f32 %v2443_v42  ;;  %v5843_v42 = vld [vmem:[#allocation8 + $0x88] ss:$16 sps:$4 sm:$0xff]  }
 0x788   :  { %3908 = vtanh.f32 %v5700_v43  ;;  %6861 = vst [vmem:[#allocation77_spill] sm:$0xff] %v5843_v42 }
 0x790   :  { %v3905_v41 = vpop.eup %3904 }
 0x791   :  { %v2561_v2 = vmul.f32 %v3905_v41, %v2556_v33  ;;  %v5828_v33 = vld [vmem:[#allocation8 + $0x60] ss:$16 sps:$4 sm:$0xff]   ;;  %v5831_v41 = vld [vmem:[#allocation8 + $0x68] ss:$16 sps:$4 sm:$0xff]  }
 0x792   :  { %6856 = vst [vmem:[#allocation72_spill] sm:$0xff] %v5828_v33  ;;  %6857 = vst [vmem:[#allocation73_spill] sm:$0xff] %v5831_v41 }
 0x793   :  { %v5710_v19 = vpack.c.bf16 %v2561_v2, %v2561_v2  ;;  %v5834_v2 = vld [vmem:[#allocation8 + $0x84] ss:$16 sps:$4 sm:$0xff]  }
 0x794   :  { %6858 = vst [vmem:[#allocation74_spill] sm:$0xff] %v5834_v2 }
 0x795   :  { %2596 = vmatmul.mubr.bf16.vlgmr.msra.gmra.mrb[80].mxu0 %v5710_v19  ;;  %2637 = vmatmul.mubr.bf16.vlgmr.msra.gmra.mrb[80].mxu1 %v5710_v19 }
 0x796   :  { %2646 = vmatpush1.bf16.msra.mxu0 %v5343_v15  ;;  %2687 = vmatpush1.bf16.msra.mxu1 %v5346_v16  ;;  %v3907_v15 = vpop.eup %3906 }
 0x797   :  { %2647 = vmatprep.subr.bf16.mxu0 %v5349_v56  ;;  %2688 = vmatprep.subr.bf16.mxu1 %v5352_v53  ;;  %v2445_v16 = vmul.f32 0.5, %v3907_v15  ;;  %v3909_v56 = vpop.eup %3908  ;;  %v5846_v15 = vld [vmem:[#allocation8 + $0xa4] ss:$16 sps:$4 sm:$0xff]  }
 0x798   :  { %2677 = vmatprep.mubr.bf16.mxu0 %v6544_v10  ;;  %2718 = vmatprep.mubr.bf16.mxu1 %v6544_v10  ;;  %6862 = vst [vmem:[#allocation78_spill] sm:$0xff] %v5846_v15 }
 0x799   :  { %v2446_v53 = vadd.f32 0.5, %v2445_v16  ;;  %v5849_v16 = vld [vmem:[#allocation8 + $0xac] ss:$16 sps:$4 sm:$0xff]  }
 0x79a   :  { %2648 = vmatpush1.bf16.msra.mxu0 %v5357_v52  ;;  %2689 = vmatpush1.bf16.msra.mxu1 %v5360_v36  ;;  %6863 = vst [vmem:[#allocation79_spill] sm:$0xff] %v5849_v16 }
 0x79b   :  { %2649 = vmatprep.subr.bf16.mxu0 %v5363_v20  ;;  %2690 = vmatprep.subr.bf16.mxu1 %v5366_v57  ;;  %v2451_v52 = vmul.f32 %v3909_v56, %v2446_v53  ;;  %v6820_v20 = vld [vmem:[#allocation80_spill] sm:$0xff]  ;;  %v6821_v57 = vld [vmem:[#allocation81_spill] sm:$0xff] }
 0x79c   :  { %v5852_v56 = vld [vmem:[#allocation8 + $0xa0] ss:$16 sps:$4 sm:$0xff]   ;;  %v5855_v53 = vld [vmem:[#allocation8 + $0xa8] ss:$16 sps:$4 sm:$0xff]  }
 0x79d   :  { %v2452_v36 = vpack.c.bf16 %v2451_v52, %v2451_v52  ;;  %6864 = vst [vmem:[#allocation39_spill] sm:$0xff] %v5852_v56  ;;  %6865 = vst [vmem:[#allocation40_spill] sm:$0xff] %v5855_v53  ;;  %v5858_v52 = vld [vmem:[#allocation8 + $0xc4] ss:$16 sps:$4 sm:$0xff]  }
 0x79e   :  { %2650 = vmatpush1.bf16.msra.mxu0 %v5369_v51  ;;  %2691 = vmatpush1.bf16.msra.mxu1 %v5372_v35  ;;  %v6822_v51 = vld [vmem:[#allocation82_spill] sm:$0xff]  ;;  %v6823_v35 = vld [vmem:[#allocation83_spill] sm:$0xff]  ;;  %6866 = vst [vmem:[#allocation41_spill] sm:$0xff] %v5858_v52 }
 0x79f   :  { %2651 = vmatprep.subr.bf16.mxu0 %v5375_v8  ;;  %2692 = vmatprep.subr.bf16.mxu1 %v5378_v0  ;;  %v6824_v8 = vld [vmem:[#allocation84_spill] sm:$0xff]  ;;  %v6825_v0 = vld [vmem:[#allocation85_spill] sm:$0xff] }
 0x7a2   :  { %2652 = vmatpush1.bf16.msra.mxu0 %v6761_v44  ;;  %2693 = vmatpush1.bf16.msra.mxu1 %v6762_v40  ;;  %v6831_v44 = vld [vmem:[#allocation55_spill] sm:$0xff]  ;;  %v6832_v40 = vld [vmem:[#allocation24_spill] sm:$0xff] }
 0x7a3   :  { %2653 = vmatprep.subr.bf16.mxu0 %v6763_v63  ;;  %2694 = vmatprep.subr.bf16.mxu1 %v6764_v48  ;;  %v6833_v63 = vld [vmem:[#allocation25_spill] sm:$0xff]  ;;  %v6834_v48 = vld [vmem:[#allocation26_spill] sm:$0xff] }
 0x7a6   :  { %2654 = vmatpush1.bf16.msra.mxu0 %v6765_v60  ;;  %2695 = vmatpush1.bf16.msra.mxu1 %v6766_v62  ;;  %v6835_v60 = vld [vmem:[#allocation27_spill] sm:$0xff]  ;;  %v6836_v62 = vld [vmem:[#allocation28_spill] sm:$0xff] }
 0x7a7   :  { %2655 = vmatprep.subr.bf16.mxu0 %v6767_v1  ;;  %2696 = vmatprep.subr.bf16.mxu1 %v6768_v3  ;;  %v6837_v1 = vld [vmem:[#allocation29_spill] sm:$0xff]  ;;  %v6838_v3 = vld [vmem:[#allocation30_spill] sm:$0xff] }
 0x7aa   :  { %2656 = vmatpush1.bf16.msra.mxu0 %v6769_v47  ;;  %2697 = vmatpush1.bf16.msra.mxu1 %v6770_v59  ;;  %v6839_v47 = vld [vmem:[#allocation31_spill] sm:$0xff]  ;;  %v6840_v59 = vld [vmem:[#allocation32_spill] sm:$0xff] }
 0x7ab   :  { %2657 = vmatprep.subr.bf16.mxu0 %v6771_v14  ;;  %2698 = vmatprep.subr.bf16.mxu1 %v6772_v7  ;;  %v6841_v14 = vld [vmem:[#allocation33_spill] sm:$0xff]  ;;  %v6842_v7 = vld [vmem:[#allocation34_spill] sm:$0xff] }
 0x7ae   :  { %2658 = vmatpush1.bf16.msra.mxu0 %v6773_v32  ;;  %2699 = vmatpush1.bf16.msra.mxu1 %v5421_v17  ;;  %v6829_v17 = vld [vmem:[#allocation53_spill] sm:$0xff]  ;;  %v6843_v32 = vld [vmem:[#allocation35_spill] sm:$0xff] }
 0x7af   :  { %2659 = vmatprep.subr.bf16.mxu0 %v5424_v18  ;;  %2700 = vmatprep.subr.bf16.mxu1 %v5427_v45  ;;  %v6826_v18 = vld [vmem:[#allocation86_spill] sm:$0xff]  ;;  %v6827_v45 = vld [vmem:[#allocation87_spill] sm:$0xff] }
 0x7b2   :  { %2660 = vmatpush1.bf16.msra.mxu0 %v5430_v58  ;;  %2701 = vmatpush1.bf16.msra.mxu1 %v5433_v6  ;;  %v6828_v58 = vld [vmem:[#allocation52_spill] sm:$0xff]  ;;  %v6830_v6 = vld [vmem:[#allocation54_spill] sm:$0xff] }
 0x7b3   :  { %2755 = vmatprep.subr.bf16.mxu0 %v5560_v23  ;;  %2796 = vmatprep.subr.bf16.mxu1 %v5563_v21 }
 0x7b5   :  { %2678 = vmatmul.mubr.bf16.vlgmr.msra.gmra.mrb[84].mxu0 %v2452_v36  ;;  %2719 = vmatmul.mubr.bf16.vlgmr.msra.gmra.mrb[84].mxu1 %v2452_v36  ;;  %v5861_v36 = vld [vmem:[#allocation8 + $0xcc] ss:$16 sps:$4 sm:$0xff]  }
 0x7b6   :  { %2756 = vmatpush1.bf16.msra.mxu0 %v6820_v20  ;;  %2797 = vmatpush1.bf16.msra.mxu1 %v6821_v57  ;;  %6867 = vst [vmem:[#allocation42_spill] sm:$0xff] %v5861_v36 }
 0x7b7   :  { %2757 = vmatprep.subr.bf16.mxu0 %v6822_v51  ;;  %2798 = vmatprep.subr.bf16.mxu1 %v6823_v35 }
 0x7b8   :  { %2787 = vmatprep.mubr.bf16.mxu0 %v6544_v10  ;;  %2828 = vmatprep.mubr.bf16.mxu1 %v6544_v10 }
 0x7ba   :  { %2758 = vmatpush1.bf16.msra.mxu0 %v6824_v8  ;;  %2799 = vmatpush1.bf16.msra.mxu1 %v6825_v0 }
 0x7bb   :  { %2759 = vmatprep.subr.bf16.mxu0 %v6826_v18  ;;  %2800 = vmatprep.subr.bf16.mxu1 %v6827_v45 }
 0x7be   :  { %2760 = vmatpush1.bf16.msra.mxu0 %v6828_v58  ;;  %2801 = vmatpush1.bf16.msra.mxu1 %v6829_v17 }
 0x7bf   :  { %2761 = vmatprep.subr.bf16.mxu0 %v6830_v6  ;;  %2802 = vmatprep.subr.bf16.mxu1 %v6831_v44 }
 0x7c2   :  { %2762 = vmatpush1.bf16.msra.mxu0 %v6832_v40  ;;  %2803 = vmatpush1.bf16.msra.mxu1 %v6833_v63 }
 0x7c3   :  { %2763 = vmatprep.subr.bf16.mxu0 %v6834_v48  ;;  %2804 = vmatprep.subr.bf16.mxu1 %v6835_v60 }
 0x7c6   :  { %2764 = vmatpush1.bf16.msra.mxu0 %v6836_v62  ;;  %2805 = vmatpush1.bf16.msra.mxu1 %v6837_v1 }
 0x7c7   :  { %2765 = vmatprep.subr.bf16.mxu0 %v6838_v3  ;;  %2806 = vmatprep.subr.bf16.mxu1 %v6839_v47 }
 0x7ca   :  { %2766 = vmatpush1.bf16.msra.mxu0 %v6840_v59  ;;  %2807 = vmatpush1.bf16.msra.mxu1 %v6841_v14 }
 0x7cb   :  { %2767 = vmatprep.subr.bf16.mxu0 %v6842_v7  ;;  %2808 = vmatprep.subr.bf16.mxu1 %v6843_v32 }
 0x7ce   :  { %2768 = vmatpush1.bf16.msra.mxu0 %v5640_v37  ;;  %2809 = vmatpush1.bf16.msra.mxu1 %v5643_v29 }
 0x7cf   :  { %2769 = vmatprep.subr.bf16.mxu0 %v5646_v5  ;;  %2810 = vmatprep.subr.bf16.mxu1 %v5649_v25 }
 0x7d2   :  { %2770 = vmatpush1.bf16.msra.mxu0 %v6844_v9  ;;  %2811 = vmatpush1.bf16.msra.mxu1 %v6845_v50 }
 0x7d3   :  { %2860 = vmatprep.subr.bf16.mxu0 %v5782_v28  ;;  %2901 = vmatprep.subr.bf16.mxu1 %v5785_v26 }
 0x7d5   :  { %2788 = vmatmul.mubr.bf16.vlgmr.msra.gmra.mrb[88].mxu0 %v5710_v19  ;;  %2829 = vmatmul.mubr.bf16.vlgmr.msra.gmra.mrb[88].mxu1 %v5710_v19  ;;  %v5837_v19 = vld [vmem:[#allocation8 + $0x8c] ss:$16 sps:$4 sm:$0xff]  }
 0x7d6   :  { %2861 = vmatpush1.bf16.msra.mxu0 %v5790_v38  ;;  %2902 = vmatpush1.bf16.msra.mxu1 %v5793_v31  ;;  %6859 = vst [vmem:[#allocation75_spill] sm:$0xff] %v5837_v19 }
 0x7d7   :  { %2862 = vmatprep.subr.bf16.mxu0 %v5796_v46  ;;  %2903 = vmatprep.subr.bf16.mxu1 %v5799_v49 }
 0x7d8   :  { %2892 = vmatprep.mubr.bf16.mxu0 %v6544_v10  ;;  %2933 = vmatprep.mubr.bf16.mxu1 %v6544_v10 }
 0x7da   :  { %2863 = vmatpush1.bf16.msra.mxu0 %v5804_v13  ;;  %2904 = vmatpush1.bf16.msra.mxu1 %v5807_v54 }
 0x7db   :  { %2864 = vmatprep.subr.bf16.mxu0 %v5810_v11  ;;  %2905 = vmatprep.subr.bf16.mxu1 %v5813_v22 }
 0x7de   :  { %2865 = vmatpush1.bf16.msra.mxu0 %v5816_v39  ;;  %2906 = vmatpush1.bf16.msra.mxu1 %v5819_v55 }
 0x7df   :  { %2866 = vmatprep.subr.bf16.mxu0 %v5822_v12  ;;  %2907 = vmatprep.subr.bf16.mxu1 %v5825_v61 }
 0x7e2   :  { %2867 = vmatpush1.bf16.msra.mxu0 %v5828_v33  ;;  %2908 = vmatpush1.bf16.msra.mxu1 %v5831_v41 }
 0x7e3   :  { %2868 = vmatprep.subr.bf16.mxu0 %v5834_v2  ;;  %2909 = vmatprep.subr.bf16.mxu1 %v5837_v19 }
 0x7e6   :  { %2869 = vmatpush1.bf16.msra.mxu0 %v5840_v34  ;;  %2910 = vmatpush1.bf16.msra.mxu1 %v5843_v42 }
 0x7e7   :  { %2870 = vmatprep.subr.bf16.mxu0 %v5846_v15  ;;  %2911 = vmatprep.subr.bf16.mxu1 %v5849_v16  ;;  %v5864_v15 = vld [vmem:[#allocation8 + $0xc0] ss:$16 sps:$4 sm:$0xff]   ;;  %v5867_v16 = vld [vmem:[#allocation8 + $0xc8] ss:$16 sps:$4 sm:$0xff]  }
 0x7e8   :  { %6868 = vst [vmem:[#allocation16_spill] sm:$0xff] %v5864_v15  ;;  %6869 = vst [vmem:[#allocation17_spill] sm:$0xff] %v5867_v16 }
 0x7ea   :  { %2871 = vmatpush1.bf16.msra.mxu0 %v5852_v56  ;;  %2912 = vmatpush1.bf16.msra.mxu1 %v5855_v53  ;;  %v5870_v56 = vld [vmem:[#allocation8 + $0xe4] ss:$16 sps:$4 sm:$0xff]   ;;  %v5873_v53 = vld [vmem:[#allocation8 + $0xec] ss:$16 sps:$4 sm:$0xff]  }
 0x7eb   :  { %2872 = vmatprep.subr.bf16.mxu0 %v5858_v52  ;;  %2913 = vmatprep.subr.bf16.mxu1 %v5861_v36  ;;  %6870 = vst [vmem:[#allocation48_spill] sm:$0xff] %v5870_v56  ;;  %6871 = vst [vmem:[#allocation49_spill] sm:$0xff] %v5873_v53  ;;  %v5876_v52 = vld [vmem:[#allocation8 + $0xe0] ss:$16 sps:$4 sm:$0xff]   ;;  %v5879_v36 = vld [vmem:[#allocation8 + $0xe8] ss:$16 sps:$4 sm:$0xff]  }
 0x7ec   :  { %6872 = vst [vmem:[#allocation50_spill] sm:$0xff] %v5876_v52  ;;  %6873 = vst [vmem:[#allocation51_spill] sm:$0xff] %v5879_v36 }
 0x7ee   :  { %2873 = vmatpush1.bf16.msra.mxu0 %v5864_v15  ;;  %2914 = vmatpush1.bf16.msra.mxu1 %v5867_v16  ;;  %v5882_v15 = vld [vmem:[#allocation9 + $0x4] ss:$16 sps:$4 sm:$0xff]   ;;  %v5885_v16 = vld [vmem:[#allocation9 + $0xc] ss:$16 sps:$4 sm:$0xff]  }
 0x7ef   :  { %2874 = vmatprep.subr.bf16.mxu0 %v5870_v56  ;;  %2915 = vmatprep.subr.bf16.mxu1 %v5873_v53  ;;  %6874 = vst [vmem:[#allocation19_spill] sm:$0xff] %v5882_v15  ;;  %6875 = vst [vmem:[#allocation20_spill] sm:$0xff] %v5885_v16 }
 0x7f2   :  { %2875 = vmatpush1.bf16.msra.mxu0 %v5876_v52  ;;  %2916 = vmatpush1.bf16.msra.mxu1 %v5879_v36 }
 0x7f3   :  { %2942 = vmatprep.subr.bf16.mxu0 %v5882_v15  ;;  %2983 = vmatprep.subr.bf16.mxu1 %v5885_v16 }
 0x868   :  { %v2597_v56 = vpop.f32.mrb[80].mxu0  ;;  %v2638_v42 = vpop.f32.mrb[80].mxu1 }
 0x869   :  { %v2599_v34 = vpop.f32.mrb[81].mxu0  ;;  %v2640_v53 = vpop.f32.mrb[81].mxu1 }
 0x86a   :  { %v2601_v19 = vpop.f32.mrb[82].mxu0  ;;  %v2642_v2 = vpop.f32.mrb[82].mxu1 }
 0x86b   :  { %v2602_v41 = vpop.f32.mrb[83].mxu0  ;;  %v2643_v52 = vpop.f32.mrb[83].mxu1 }
 0x86c   :  { %v6876_v41 = vld [vmem:[#allocation18_spill] sm:$0xff] }
 0x888   :  { %v2679_v33 = vpop.f32.mrb[84].mxu0  ;;  %v2720_v61 = vpop.f32.mrb[84].mxu1 }
 0x889   :  { %v2680_v12 = vadd.f32 %v2679_v33, %v2597_v56  ;;  %v2721_v36 = vadd.f32 %v2720_v61, %v2638_v42  ;;  %v2681_v55 = vpop.f32.mrb[85].mxu0  ;;  %v2722_v39 = vpop.f32.mrb[85].mxu1  ;;  %v6878_v56 = vld [vmem:[#allocation65_spill] sm:$0xff] }
 0x88a   :  { %v2682_v22 = vadd.f32 %v2681_v55, %v2599_v34  ;;  %v2723_v15 = vadd.f32 %v2722_v39, %v2640_v53  ;;  %v2683_v11 = vpop.f32.mrb[86].mxu0  ;;  %v2724_v54 = vpop.f32.mrb[86].mxu1 }
 0x88b   :  { %v2727_v16 = vadd.f32 %v2680_v12, %v6645_v24  ;;  %v2684_v13 = vpop.f32.mrb[87].mxu0  ;;  %v2725_v49 = vpop.f32.mrb[87].mxu1  ;;  %v2729_v52 = vadd.f32 %v2721_v36, %v6876_v41 }
 0x88c   :  { %v2728_v46 = vadd.f32 %v2682_v22, %v6646_v4 }
 0x88d   :  { %v2731_v19 = vmul.f32 0.5, %v2727_v16 }
 0x88e   :  { %v2735_v2 = vmul.f32 0.5, %v2728_v46  ;;  %v6877_v46 = vld [vmem:[#allocation64_spill] sm:$0xff] }
 0x88f   :  { %3910 = vtanh.f32 %v2731_v19 }
 0x890   :  { %3912 = vtanh.f32 %v2735_v2  ;;  %v6879_v2 = vld [vmem:[#allocation66_spill] sm:$0xff] }
 0x891   :  { %3914 = vtanh.f32 %v2729_v52 }
 0x899   :  { %v3911_v61 = vpop.eup %3910 }
 0x89a   :  { %v3913_v33 = vpop.eup %3912  ;;  %v2733_v42 = vmul.f32 0.5, %v3911_v61  ;;  %v6880_v61 = vld [vmem:[#allocation67_spill] sm:$0xff] }
 0x89b   :  { %v2737_v55 = vmul.f32 0.5, %v3913_v33  ;;  %v3915_v11 = vpop.eup %3914 }
 0x89c   :  { %v2734_v39 = vadd.f32 0.5, %v2733_v42 }
 0x89d   :  { %v2738_v54 = vadd.f32 0.5, %v2737_v55 }
 0x89e   :  { %v2745_v34 = vmul.f32 %v3915_v11, %v2734_v39 }
 0x89f   :  { %v2744_v13 = vmul.f32 %v2738_v54, %v5700_v43 }
 0x8a1   :  { %v5892_v49 = vadd.f32 %v2745_v34, %v2744_v13 }
 0x8a8   :  { %v2789_v22 = vpop.f32.mrb[88].mxu0  ;;  %v2830_v12 = vpop.f32.mrb[88].mxu1 }
 0x8a9   :  { %v2837_v16 = vadd.f32 %v2789_v22, %v6877_v46  ;;  %v2839_v53 = vadd.f32 %v2830_v12, %v6878_v56  ;;  %v2791_v36 = vpop.f32.mrb[89].mxu0  ;;  %v2832_v19 = vpop.f32.mrb[89].mxu1 }
 0x8aa   :  { %v2838_v52 = vadd.f32 %v2791_v36, %v6879_v2  ;;  %v2840_v33 = vadd.f32 %v2832_v19, %v6880_v61  ;;  %v2793_v42 = vpop.f32.mrb[90].mxu0  ;;  %v2834_v41 = vpop.f32.mrb[90].mxu1 }
 0x8ab   :  { %v2841_v55 = vmul.f32 0.5, %v2837_v16  ;;  %v2794_v39 = vpop.f32.mrb[91].mxu0  ;;  %v2835_v11 = vpop.f32.mrb[91].mxu1 }
 0x8ac   :  { %v2845_v43 = vmul.f32 0.5, %v2838_v52  ;;  %v2850_v54 = vmul.f32 0.5, %v2840_v33  ;;  %v5907_v39 = vld [vmem:[#allocation9] ss:$16 sps:$4 sm:$0xff]   ;;  %v5913_v11 = vld [vmem:[#allocation9 + $0x24] ss:$16 sps:$4 sm:$0xff]  }
 0x8ad   :  { %3916 = vtanh.f32 %v2841_v55  ;;  %v2730_v55 = vadd.f32 %v2723_v15, %v4956_v30 }
 0x8ae   :  { %3918 = vtanh.f32 %v2845_v43  ;;  %v5916_v43 = vld [vmem:[#allocation9 + $0x2c] ss:$16 sps:$4 sm:$0xff]  }
 0x8af   :  { %3920 = vtanh.f32 %v2839_v53  ;;  %v2740_v15 = vmul.f32 0.5, %v2730_v55  ;;  %v5964_v55 = vld [vmem:[#allocation9 + $0xa4] ss:$16 sps:$4 sm:$0xff]  }
 0x8b0   :  { %3922 = vtanh.f32 %v2850_v54  ;;  %v5921_v54 = vld [vmem:[#allocation9 + $0x20] ss:$16 sps:$4 sm:$0xff]   ;;  %6887 = vst [vmem:[#allocation63_spill] sm:$0xff] %v5964_v55 }
 0x8b7   :  { %v3917_v34 = vpop.eup %3916 }
 0x8b8   :  { %v3919_v13 = vpop.eup %3918  ;;  %v2843_v22 = vmul.f32 0.5, %v3917_v34  ;;  %v5924_v34 = vld [vmem:[#allocation9 + $0x28] ss:$16 sps:$4 sm:$0xff]  }
 0x8b9   :  { %v2847_v12 = vmul.f32 0.5, %v3919_v13  ;;  %v3921_v56 = vpop.eup %3920  ;;  %v5927_v13 = vld [vmem:[#allocation9 + $0x44] ss:$16 sps:$4 sm:$0xff]  }
 0x8ba   :  { %v2844_v46 = vadd.f32 0.5, %v2843_v22  ;;  %v3923_v16 = vpop.eup %3922  ;;  %v5930_v22 = vld [vmem:[#allocation9 + $0x4c] ss:$16 sps:$4 sm:$0xff]  }
 0x8bb   :  { %v2848_v36 = vadd.f32 0.5, %v2847_v12  ;;  %v2852_v52 = vmul.f32 0.5, %v3923_v16  ;;  %v5933_v12 = vld [vmem:[#allocation9 + $0x40] ss:$16 sps:$4 sm:$0xff]   ;;  %v5952_v16 = vld [vmem:[#allocation9 + $0x84] ss:$16 sps:$4 sm:$0xff]  }
 0x8bc   :  { %v2855_v2 = vmul.f32 %v3921_v56, %v2844_v46  ;;  %v5936_v46 = vld [vmem:[#allocation9 + $0x48] ss:$16 sps:$4 sm:$0xff]   ;;  %v5939_v56 = vld [vmem:[#allocation9 + $0x64] ss:$16 sps:$4 sm:$0xff]   ;;  %6883 = vst [vmem:[#allocation23_spill] sm:$0xff] %v5952_v16 }
 0x8bd   :  { %v2854_v19 = vmul.f32 %v2848_v36, %v5707_v27  ;;  %v2853_v61 = vadd.f32 0.5, %v2852_v52  ;;  %v5910_v27 = vld [vmem:[#allocation9 + $0x8] ss:$16 sps:$4 sm:$0xff]   ;;  %v5942_v36 = vld [vmem:[#allocation9 + $0x6c] ss:$16 sps:$4 sm:$0xff]  }
 0x8be   :  { %v5955_v52 = vld [vmem:[#allocation9 + $0x8c] ss:$16 sps:$4 sm:$0xff]  }
 0x8bf   :  { %v5899_v41 = vadd.f32 %v2855_v2, %v2854_v19  ;;  %v5946_v2 = vld [vmem:[#allocation9 + $0x60] ss:$16 sps:$4 sm:$0xff]   ;;  %v5949_v19 = vld [vmem:[#allocation9 + $0x68] ss:$16 sps:$4 sm:$0xff]   ;;  %6884 = vst [vmem:[#allocation60_spill] sm:$0xff] %v5955_v52 }
 0x8c0   :  { %6881 = vst [vmem:[#allocation21_spill] sm:$0xff] %v5946_v2  ;;  %6882 = vst [vmem:[#allocation22_spill] sm:$0xff] %v5949_v19 }
 0x8c1   :  { %3924 = vtanh.f32 %v5899_v41 }
 0x8c2   :  { %3926 = vtanh.f32 %v2740_v15  ;;  %v5967_v15 = vld [vmem:[#allocation9 + $0xac] ss:$16 sps:$4 sm:$0xff]  }
 0x8c3   :  { %3928 = vtanh.f32 %v5892_v49  ;;  %6888 = vst [vmem:[#allocation80_spill] sm:$0xff] %v5967_v15 }
 0x8cb   :  { %v3925_v53 = vpop.eup %3924 }
 0x8cc   :  { %v2858_v33 = vmul.f32 %v3925_v53, %v2853_v61  ;;  %v3927_v61 = vpop.eup %3926  ;;  %v5958_v53 = vld [vmem:[#allocation9 + $0x80] ss:$16 sps:$4 sm:$0xff]  }
 0x8cd   :  { %6885 = vst [vmem:[#allocation61_spill] sm:$0xff] %v5958_v53 }
 0x8ce   :  { %v5902_v42 = vpack.c.bf16 %v2858_v33, %v2858_v33  ;;  %v5961_v33 = vld [vmem:[#allocation9 + $0x88] ss:$16 sps:$4 sm:$0xff]  }
 0x8cf   :  { %6886 = vst [vmem:[#allocation62_spill] sm:$0xff] %v5961_v33 }
 0x8d0   :  { %2893 = vmatmul.mubr.bf16.vlgmr.msra.gmra.mrb[92].mxu0 %v5902_v42  ;;  %2934 = vmatmul.mubr.bf16.vlgmr.msra.gmra.mrb[92].mxu1 %v5902_v42 }
 0x8d1   :  { %2943 = vmatpush1.bf16.msra.mxu0 %v5907_v39  ;;  %2984 = vmatpush1.bf16.msra.mxu1 %v5910_v27 }
 0x8d2   :  { %2944 = vmatprep.subr.bf16.mxu0 %v5913_v11  ;;  %2985 = vmatprep.subr.bf16.mxu1 %v5916_v43 }
 0x8d3   :  { %2974 = vmatprep.mubr.bf16.mxu0 %v6544_v10  ;;  %3015 = vmatprep.mubr.bf16.mxu1 %v6544_v10 }
 0x8d5   :  { %2945 = vmatpush1.bf16.msra.mxu0 %v5921_v54  ;;  %2986 = vmatpush1.bf16.msra.mxu1 %v5924_v34 }
 0x8d6   :  { %2946 = vmatprep.subr.bf16.mxu0 %v5927_v13  ;;  %2987 = vmatprep.subr.bf16.mxu1 %v5930_v22 }
 0x8d9   :  { %2947 = vmatpush1.bf16.msra.mxu0 %v5933_v12  ;;  %2988 = vmatpush1.bf16.msra.mxu1 %v5936_v46 }
 0x8da   :  { %2948 = vmatprep.subr.bf16.mxu0 %v5939_v56  ;;  %2989 = vmatprep.subr.bf16.mxu1 %v5942_v36 }
 0x8dd   :  { %2949 = vmatpush1.bf16.msra.mxu0 %v5946_v2  ;;  %2990 = vmatpush1.bf16.msra.mxu1 %v5949_v19  ;;  %v5970_v19 = vld [vmem:[#allocation9 + $0xa0] ss:$16 sps:$4 sm:$0xff]  }
 0x8de   :  { %2950 = vmatprep.subr.bf16.mxu0 %v5952_v16  ;;  %2991 = vmatprep.subr.bf16.mxu1 %v5955_v52  ;;  %v2742_v16 = vmul.f32 0.5, %v3927_v61  ;;  %6889 = vst [vmem:[#allocation81_spill] sm:$0xff] %v5970_v19  ;;  %v5973_v52 = vld [vmem:[#allocation9 + $0xa8] ss:$16 sps:$4 sm:$0xff]  }
 0x8df   :  { %6890 = vst [vmem:[#allocation82_spill] sm:$0xff] %v5973_v52  ;;  %v5985_v61 = vld [vmem:[#allocation9 + $0xc8] ss:$16 sps:$4 sm:$0xff]  }
 0x8e0   :  { %v2743_v2 = vadd.f32 0.5, %v2742_v16  ;;  %v5997_v16 = vld [vmem:[#allocation9 + $0xe8] ss:$16 sps:$4 sm:$0xff]  }
 0x8e1   :  { %2951 = vmatpush1.bf16.msra.mxu0 %v5958_v53  ;;  %2992 = vmatpush1.bf16.msra.mxu1 %v5961_v33  ;;  %v5976_v53 = vld [vmem:[#allocation9 + $0xc4] ss:$16 sps:$4 sm:$0xff]   ;;  %v5979_v33 = vld [vmem:[#allocation9 + $0xcc] ss:$16 sps:$4 sm:$0xff]  }
 0x8e2   :  { %2952 = vmatprep.subr.bf16.mxu0 %v5964_v55  ;;  %2993 = vmatprep.subr.bf16.mxu1 %v5967_v15  ;;  %6891 = vst [vmem:[#allocation83_spill] sm:$0xff] %v5976_v53  ;;  %6892 = vst [vmem:[#allocation84_spill] sm:$0xff] %v5979_v33  ;;  %v3929_v55 = vpop.eup %3928  ;;  %v5982_v15 = vld [vmem:[#allocation9 + $0xc0] ss:$16 sps:$4 sm:$0xff]  }
 0x8e3   :  { %6893 = vst [vmem:[#allocation85_spill] sm:$0xff] %v5982_v15 }
 0x8e5   :  { %2953 = vmatpush1.bf16.msra.mxu0 %v5970_v19  ;;  %2994 = vmatpush1.bf16.msra.mxu1 %v5973_v52  ;;  %v5988_v19 = vld [vmem:[#allocation9 + $0xe4] ss:$16 sps:$4 sm:$0xff]   ;;  %v5991_v52 = vld [vmem:[#allocation9 + $0xec] ss:$16 sps:$4 sm:$0xff]  }
 0x8e6   :  { %2954 = vmatprep.subr.bf16.mxu0 %v5976_v53  ;;  %2995 = vmatprep.subr.bf16.mxu1 %v5979_v33  ;;  %v2748_v53 = vmul.f32 %v3929_v55, %v2743_v2  ;;  %v5994_v33 = vld [vmem:[#allocation9 + $0xe0] ss:$16 sps:$4 sm:$0xff]  }
 0x8e9   :  { %2955 = vmatpush1.bf16.msra.mxu0 %v5982_v15  ;;  %2996 = vmatpush1.bf16.msra.mxu1 %v5985_v61  ;;  %v2749_v15 = vpack.c.bf16 %v2748_v53, %v2748_v53 }
 0x8ea   :  { %2956 = vmatprep.subr.bf16.mxu0 %v5988_v19  ;;  %2997 = vmatprep.subr.bf16.mxu1 %v5991_v52 }
 0x8ed   :  { %2957 = vmatpush1.bf16.msra.mxu0 %v5994_v33  ;;  %2998 = vmatpush1.bf16.msra.mxu1 %v5997_v16 }
 0x8ee   :  { %3052 = vmatprep.subr.bf16.mxu0 %v5560_v23  ;;  %3093 = vmatprep.subr.bf16.mxu1 %v5563_v21  ;;  %v6894_v23 = vld [vmem:[#allocation38_spill] sm:$0xff]  ;;  %v6895_v21 = vld [vmem:[#allocation56_spill] sm:$0xff] }
 0x8f0   :  { %2975 = vmatmul.mubr.bf16.vlgmr.msra.gmra.mrb[96].mxu0 %v2749_v15  ;;  %3016 = vmatmul.mubr.bf16.vlgmr.msra.gmra.mrb[96].mxu1 %v2749_v15 }
 0x8f1   :  { %3053 = vmatpush1.bf16.msra.mxu0 %v6820_v20  ;;  %3094 = vmatpush1.bf16.msra.mxu1 %v6821_v57  ;;  %v6900_v20 = vld [vmem:[#allocation44_spill] sm:$0xff]  ;;  %v6901_v57 = vld [vmem:[#allocation45_spill] sm:$0xff] }
 0x8f2   :  { %3054 = vmatprep.subr.bf16.mxu0 %v6822_v51  ;;  %3095 = vmatprep.subr.bf16.mxu1 %v6823_v35  ;;  %v6902_v51 = vld [vmem:[#allocation46_spill] sm:$0xff]  ;;  %v6903_v35 = vld [vmem:[#allocation47_spill] sm:$0xff] }
 0x8f3   :  { %3084 = vmatprep.mubr.bf16.mxu0 %v6544_v10  ;;  %3125 = vmatprep.mubr.bf16.mxu1 %v6544_v10 }
 0x8f5   :  { %3055 = vmatpush1.bf16.msra.mxu0 %v6824_v8  ;;  %3096 = vmatpush1.bf16.msra.mxu1 %v6825_v0  ;;  %v6904_v8 = vld [vmem:[#allocation72_spill] sm:$0xff]  ;;  %v6905_v0 = vld [vmem:[#allocation73_spill] sm:$0xff] }
 0x8f6   :  { %3056 = vmatprep.subr.bf16.mxu0 %v6826_v18  ;;  %3097 = vmatprep.subr.bf16.mxu1 %v6827_v45  ;;  %v6906_v18 = vld [vmem:[#allocation74_spill] sm:$0xff]  ;;  %v6907_v45 = vld [vmem:[#allocation75_spill] sm:$0xff] }
 0x8f9   :  { %3057 = vmatpush1.bf16.msra.mxu0 %v6828_v58  ;;  %3098 = vmatpush1.bf16.msra.mxu1 %v6829_v17  ;;  %v6908_v58 = vld [vmem:[#allocation76_spill] sm:$0xff]  ;;  %v6909_v17 = vld [vmem:[#allocation77_spill] sm:$0xff] }
 0x8fa   :  { %3058 = vmatprep.subr.bf16.mxu0 %v6830_v6  ;;  %3099 = vmatprep.subr.bf16.mxu1 %v6831_v44  ;;  %v6910_v6 = vld [vmem:[#allocation78_spill] sm:$0xff]  ;;  %v6911_v44 = vld [vmem:[#allocation79_spill] sm:$0xff] }
 0x8fd   :  { %3059 = vmatpush1.bf16.msra.mxu0 %v6832_v40  ;;  %3100 = vmatpush1.bf16.msra.mxu1 %v6833_v63  ;;  %v6912_v40 = vld [vmem:[#allocation39_spill] sm:$0xff]  ;;  %v6913_v63 = vld [vmem:[#allocation40_spill] sm:$0xff] }
 0x8fe   :  { %3060 = vmatprep.subr.bf16.mxu0 %v6834_v48  ;;  %3101 = vmatprep.subr.bf16.mxu1 %v6835_v60  ;;  %v6914_v48 = vld [vmem:[#allocation41_spill] sm:$0xff]  ;;  %v6915_v60 = vld [vmem:[#allocation42_spill] sm:$0xff] }
 0x901   :  { %3061 = vmatpush1.bf16.msra.mxu0 %v6836_v62  ;;  %3102 = vmatpush1.bf16.msra.mxu1 %v6837_v1  ;;  %v6916_v62 = vld [vmem:[#allocation16_spill] sm:$0xff]  ;;  %v6917_v1 = vld [vmem:[#allocation17_spill] sm:$0xff] }
 0x902   :  { %3062 = vmatprep.subr.bf16.mxu0 %v6838_v3  ;;  %3103 = vmatprep.subr.bf16.mxu1 %v6839_v47  ;;  %v6918_v3 = vld [vmem:[#allocation48_spill] sm:$0xff]  ;;  %v6919_v47 = vld [vmem:[#allocation49_spill] sm:$0xff] }
 0x905   :  { %3063 = vmatpush1.bf16.msra.mxu0 %v6840_v59  ;;  %3104 = vmatpush1.bf16.msra.mxu1 %v6841_v14  ;;  %v6920_v59 = vld [vmem:[#allocation50_spill] sm:$0xff]  ;;  %v6921_v14 = vld [vmem:[#allocation51_spill] sm:$0xff] }
 0x906   :  { %3064 = vmatprep.subr.bf16.mxu0 %v6842_v7  ;;  %3105 = vmatprep.subr.bf16.mxu1 %v6843_v32  ;;  %v6922_v7 = vld [vmem:[#allocation19_spill] sm:$0xff]  ;;  %v6923_v32 = vld [vmem:[#allocation20_spill] sm:$0xff] }
 0x909   :  { %3065 = vmatpush1.bf16.msra.mxu0 %v5640_v37  ;;  %3106 = vmatpush1.bf16.msra.mxu1 %v5643_v29  ;;  %v6897_v37 = vld [vmem:[#allocation58_spill] sm:$0xff]  ;;  %v6898_v29 = vld [vmem:[#allocation59_spill] sm:$0xff] }
 0x90a   :  { %3066 = vmatprep.subr.bf16.mxu0 %v5646_v5  ;;  %3107 = vmatprep.subr.bf16.mxu1 %v5649_v25  ;;  %v6896_v25 = vld [vmem:[#allocation57_spill] sm:$0xff]  ;;  %v6899_v5 = vld [vmem:[#allocation43_spill] sm:$0xff] }
 0x90d   :  { %3067 = vmatpush1.bf16.msra.mxu0 %v6844_v9  ;;  %3108 = vmatpush1.bf16.msra.mxu1 %v6845_v50 }
 0x90e   :  { %3157 = vmatprep.subr.bf16.mxu0 %v5782_v28  ;;  %3198 = vmatprep.subr.bf16.mxu1 %v5785_v26 }
 0x910   :  { %3085 = vmatmul.mubr.bf16.vlgmr.msra.gmra.mrb[100].mxu0 %v5902_v42  ;;  %3126 = vmatmul.mubr.bf16.vlgmr.msra.gmra.mrb[100].mxu1 %v5902_v42 }
 0x911   :  { %3158 = vmatpush1.bf16.msra.mxu0 %v5790_v38  ;;  %3199 = vmatpush1.bf16.msra.mxu1 %v5793_v31 }
 0x912   :  { %3159 = vmatprep.subr.bf16.mxu0 %v6894_v23  ;;  %3200 = vmatprep.subr.bf16.mxu1 %v6895_v21 }
 0x913   :  { %3189 = vmatprep.mubr.bf16.mxu0 %v6544_v10  ;;  %3230 = vmatprep.mubr.bf16.mxu1 %v6544_v10 }
 0x915   :  { %3160 = vmatpush1.bf16.msra.mxu0 %v6896_v25  ;;  %3201 = vmatpush1.bf16.msra.mxu1 %v6897_v37 }
 0x916   :  { %3161 = vmatprep.subr.bf16.mxu0 %v6898_v29  ;;  %3202 = vmatprep.subr.bf16.mxu1 %v6899_v5 }
 0x919   :  { %3162 = vmatpush1.bf16.msra.mxu0 %v6900_v20  ;;  %3203 = vmatpush1.bf16.msra.mxu1 %v6901_v57 }
 0x91a   :  { %3163 = vmatprep.subr.bf16.mxu0 %v6902_v51  ;;  %3204 = vmatprep.subr.bf16.mxu1 %v6903_v35 }
 0x91d   :  { %3164 = vmatpush1.bf16.msra.mxu0 %v6904_v8  ;;  %3205 = vmatpush1.bf16.msra.mxu1 %v6905_v0 }
 0x91e   :  { %3165 = vmatprep.subr.bf16.mxu0 %v6906_v18  ;;  %3206 = vmatprep.subr.bf16.mxu1 %v6907_v45  ;;  %v6924_v45 = vld [vmem:[#allocation18_spill] sm:$0xff] }
 0x921   :  { %3166 = vmatpush1.bf16.msra.mxu0 %v6908_v58  ;;  %3207 = vmatpush1.bf16.msra.mxu1 %v6909_v17 }
 0x922   :  { %3167 = vmatprep.subr.bf16.mxu0 %v6910_v6  ;;  %3208 = vmatprep.subr.bf16.mxu1 %v6911_v44 }
 0x925   :  { %3168 = vmatpush1.bf16.msra.mxu0 %v6912_v40  ;;  %3209 = vmatpush1.bf16.msra.mxu1 %v6913_v63 }
 0x926   :  { %3169 = vmatprep.subr.bf16.mxu0 %v6914_v48  ;;  %3210 = vmatprep.subr.bf16.mxu1 %v6915_v60 }
 0x929   :  { %3170 = vmatpush1.bf16.msra.mxu0 %v6916_v62  ;;  %3211 = vmatpush1.bf16.msra.mxu1 %v6917_v1 }
 0x92a   :  { %3171 = vmatprep.subr.bf16.mxu0 %v6918_v3  ;;  %3212 = vmatprep.subr.bf16.mxu1 %v6919_v47 }
 0x92d   :  { %3172 = vmatpush1.bf16.msra.mxu0 %v6920_v59  ;;  %3213 = vmatpush1.bf16.msra.mxu1 %v6921_v14  ;;  %v6925_v14 = vld [vmem:[#allocation68_spill] sm:$0xff] }
 0x92e   :  { %3239 = vmatprep.subr.bf16.mxu0 %v6922_v7  ;;  %3280 = vmatprep.subr.bf16.mxu1 %v6923_v32  ;;  %v6926_v32 = vld [vmem:[#allocation69_spill] sm:$0xff] }
 0x9a3   :  { %v2894_v9 = vpop.f32.mrb[92].mxu0  ;;  %v2935_v50 = vpop.f32.mrb[92].mxu1 }
 0x9a4   :  { %v2896_v28 = vpop.f32.mrb[93].mxu0  ;;  %v2937_v26 = vpop.f32.mrb[93].mxu1 }
 0x9a5   :  { %v2898_v38 = vpop.f32.mrb[94].mxu0  ;;  %v2939_v31 = vpop.f32.mrb[94].mxu1 }
 0x9a6   :  { %v2899_v42 = vpop.f32.mrb[95].mxu0  ;;  %v2940_v2 = vpop.f32.mrb[95].mxu1  ;;  %v6928_v31 = vld [vmem:[#allocation71_spill] sm:$0xff] }
 0x9c3   :  { %v2976_v53 = vpop.f32.mrb[96].mxu0  ;;  %v3017_v55 = vpop.f32.mrb[96].mxu1 }
 0x9c4   :  { %v2977_v15 = vadd.f32 %v2976_v53, %v2894_v9  ;;  %v3018_v23 = vadd.f32 %v3017_v55, %v2935_v50  ;;  %v2978_v21 = vpop.f32.mrb[97].mxu0  ;;  %v3019_v25 = vpop.f32.mrb[97].mxu1 }
 0x9c5   :  { %v2979_v37 = vadd.f32 %v2978_v21, %v2896_v28  ;;  %v3020_v29 = vadd.f32 %v3019_v25, %v2937_v26  ;;  %v2980_v5 = vpop.f32.mrb[98].mxu0  ;;  %v3021_v20 = vpop.f32.mrb[98].mxu1  ;;  %v6927_v26 = vld [vmem:[#allocation70_spill] sm:$0xff] }
 0x9c6   :  { %v3024_v57 = vadd.f32 %v2977_v15, %v6645_v24  ;;  %v2981_v51 = vpop.f32.mrb[99].mxu0  ;;  %v3022_v35 = vpop.f32.mrb[99].mxu1  ;;  %v3026_v58 = vadd.f32 %v3018_v23, %v6924_v45 }
 0x9c7   :  { %v3025_v8 = vadd.f32 %v2979_v37, %v6646_v4 }
 0x9c8   :  { %v3028_v0 = vmul.f32 0.5, %v3024_v57 }
 0x9c9   :  { %v3032_v18 = vmul.f32 0.5, %v3025_v8 }
 0x9ca   :  { %3930 = vtanh.f32 %v3028_v0 }
 0x9cb   :  { %3932 = vtanh.f32 %v3032_v18 }
 0x9cc   :  { %3934 = vtanh.f32 %v3026_v58 }
 0x9d4   :  { %v3931_v17 = vpop.eup %3930 }
 0x9d5   :  { %v3933_v6 = vpop.eup %3932  ;;  %v3030_v44 = vmul.f32 0.5, %v3931_v17 }
 0x9d6   :  { %v3034_v40 = vmul.f32 0.5, %v3933_v6  ;;  %v3935_v48 = vpop.eup %3934 }
 0x9d7   :  { %v3031_v63 = vadd.f32 0.5, %v3030_v44 }
 0x9d8   :  { %v3035_v60 = vadd.f32 0.5, %v3034_v40 }
 0x9d9   :  { %v3042_v62 = vmul.f32 %v3935_v48, %v3031_v63  ;;  %v3027_v48 = vadd.f32 %v3020_v29, %v4956_v30  ;;  %v6940_v29 = vld [vmem:[#allocation84_spill] sm:$0xff] }
 0x9da   :  { %v3041_v1 = vmul.f32 %v3035_v60, %v5892_v49 }
 0x9dc   :  { %v6076_v3 = vadd.f32 %v3042_v62, %v3041_v1  ;;  %v6941_v1 = vld [vmem:[#allocation85_spill] sm:$0xff] }
 0x9e3   :  { %v3086_v47 = vpop.f32.mrb[100].mxu0  ;;  %v3127_v59 = vpop.f32.mrb[100].mxu1 }
 0x9e4   :  { %v3134_v7 = vadd.f32 %v3086_v47, %v6925_v14  ;;  %v3136_v9 = vadd.f32 %v3127_v59, %v6926_v32  ;;  %v3088_v50 = vpop.f32.mrb[101].mxu0  ;;  %v3129_v28 = vpop.f32.mrb[101].mxu1  ;;  %v3792_v14 = vld [vmem:[%s6168_s7] sm:$0xff]   ;;  %v3798_v32 = vld [vmem:[%s6168_s7 + $0x30] sm:$0xff]  }
 0x9e5   :  { %v3135_v38 = vadd.f32 %v3088_v50, %v6927_v26  ;;  %v3137_v42 = vadd.f32 %v3129_v28, %v6928_v31  ;;  %v3090_v2 = vpop.f32.mrb[102].mxu0  ;;  %v3131_v53 = vpop.f32.mrb[102].mxu1 }
 0x9e6   :  { %v3138_v55 = vmul.f32 0.5, %v3134_v7  ;;  %v3091_v15 = vpop.f32.mrb[103].mxu0  ;;  %v3132_v23 = vpop.f32.mrb[103].mxu1  ;;  %v4277_v7 = vmov 0.0  }
 0x9e7   :  { %v3142_v49 = vmul.f32 0.5, %v3135_v38  ;;  %v3147_v21 = vmul.f32 0.5, %v3137_v42 }
 0x9e8   :  { %3936 = vtanh.f32 %v3138_v55 }
 0x9e9   :  { %3938 = vtanh.f32 %v3142_v49 }
 0x9ea   :  { %3940 = vtanh.f32 %v3136_v9  ;;  %v3799_v9 = vld [vmem:[%s6168_s7 + $0x38] sm:$0xff]  }
 0x9eb   :  { %3942 = vtanh.f32 %v3147_v21 }
 0x9f2   :  { %v3937_v25 = vpop.eup %3936 }
 0x9f3   :  { %v3939_v37 = vpop.eup %3938  ;;  %v3140_v5 = vmul.f32 0.5, %v3937_v25 }
 0x9f4   :  { %v3144_v20 = vmul.f32 0.5, %v3939_v37  ;;  %v3941_v51 = vpop.eup %3940 }
 0x9f5   :  { %v3141_v57 = vadd.f32 0.5, %v3140_v5  ;;  %v3943_v58 = vpop.eup %3942 }
 0x9f6   :  { %v3145_v35 = vadd.f32 0.5, %v3144_v20  ;;  %v3149_v17 = vmul.f32 0.5, %v3943_v58 }
 0x9f7   :  { %v3152_v8 = vmul.f32 %v3941_v51, %v3141_v57 }
 0x9f8   :  { %v3151_v0 = vmul.f32 %v3145_v35, %v5899_v41  ;;  %v3150_v6 = vadd.f32 0.5, %v3149_v17  ;;  %v3037_v41 = vmul.f32 0.5, %v3027_v48 }
 0x9fa   :  { %v3153_v18 = vadd.f32 %v3152_v8, %v3151_v0 }
 0x9fc   :  { %3944 = vtanh.f32 %v3153_v18 }
 0x9fd   :  { %3946 = vtanh.f32 %v3037_v41 }
 0x9fe   :  { %3948 = vtanh.f32 %v6076_v3 }
 0xa06   :  { %v3945_v44 = vpop.eup %3944 }
 0xa07   :  { %v3155_v40 = vmul.f32 %v3945_v44, %v3150_v6 }
 0xa09   :  { %v3156_v63 = vpack.c.bf16 %v3155_v40, %v3155_v40 }
 0xa0b   :  { %3190 = vmatmul.mubr.bf16.vlgmr.msra.gmra.mrb[104].mxu0 %v3156_v63  ;;  %3231 = vmatmul.mubr.bf16.vlgmr.msra.gmra.mrb[104].mxu1 %v3156_v63 }
 0xa0c   :  { %3240 = vmatpush1.bf16.msra.mxu0 %v5907_v39  ;;  %3281 = vmatpush1.bf16.msra.mxu1 %v5910_v27  ;;  %v6930_v39 = vld [vmem:[#allocation22_spill] sm:$0xff]  ;;  %v6931_v27 = vld [vmem:[#allocation23_spill] sm:$0xff] }
 0xa0d   :  { %3241 = vmatprep.subr.bf16.mxu0 %v5913_v11  ;;  %3282 = vmatprep.subr.bf16.mxu1 %v5916_v43  ;;  %v6932_v11 = vld [vmem:[#allocation60_spill] sm:$0xff]  ;;  %v3947_v43 = vpop.eup %3946 }
 0xa0e   :  { %3271 = vmatprep.mubr.bf16.mxu0 %v6544_v10  ;;  %3312 = vmatprep.mubr.bf16.mxu1 %v6544_v10  ;;  %v6929_v10 = vld [vmem:[#allocation21_spill] sm:$0xff]  ;;  %v3949_v60 = vpop.eup %3948 }
 0xa10   :  { %3242 = vmatpush1.bf16.msra.mxu0 %v5921_v54  ;;  %3283 = vmatpush1.bf16.msra.mxu1 %v5924_v34  ;;  %v6933_v54 = vld [vmem:[#allocation61_spill] sm:$0xff]  ;;  %v6934_v34 = vld [vmem:[#allocation62_spill] sm:$0xff] }
 0xa11   :  { %3243 = vmatprep.subr.bf16.mxu0 %v5927_v13  ;;  %3284 = vmatprep.subr.bf16.mxu1 %v5930_v22  ;;  %v6935_v13 = vld [vmem:[#allocation63_spill] sm:$0xff]  ;;  %v6936_v22 = vld [vmem:[#allocation80_spill] sm:$0xff] }
 0xa14   :  { %3244 = vmatpush1.bf16.msra.mxu0 %v5933_v12  ;;  %3285 = vmatpush1.bf16.msra.mxu1 %v5936_v46  ;;  %v3039_v12 = vmul.f32 0.5, %v3947_v43  ;;  %v6937_v46 = vld [vmem:[#allocation81_spill] sm:$0xff] }
 0xa15   :  { %3245 = vmatprep.subr.bf16.mxu0 %v5939_v56  ;;  %3286 = vmatprep.subr.bf16.mxu1 %v5942_v36  ;;  %v6938_v56 = vld [vmem:[#allocation82_spill] sm:$0xff]  ;;  %v6939_v36 = vld [vmem:[#allocation83_spill] sm:$0xff] }
 0xa16   :  { %v3040_v62 = vadd.f32 0.5, %v3039_v12 }
 0xa18   :  { %3246 = vmatpush1.bf16.msra.mxu0 %v6929_v10  ;;  %3287 = vmatpush1.bf16.msra.mxu1 %v6930_v39  ;;  %v3045_v47 = vmul.f32 %v3949_v60, %v3040_v62 }
 0xa19   :  { %3247 = vmatprep.subr.bf16.mxu0 %v6931_v27  ;;  %3288 = vmatprep.subr.bf16.mxu1 %v6932_v11 }
 0xa1a   :  { %v3046_v59 = vpack.c.bf16 %v3045_v47, %v3045_v47 }
 0xa1c   :  { %3248 = vmatpush1.bf16.msra.mxu0 %v6933_v54  ;;  %3289 = vmatpush1.bf16.msra.mxu1 %v6934_v34 }
 0xa1d   :  { %3249 = vmatprep.subr.bf16.mxu0 %v6935_v13  ;;  %3290 = vmatprep.subr.bf16.mxu1 %v6936_v22  ;;  %v3588_v22 = vld [vmem:[%s6169_s8] ss:$0 sm:$0xff] }
 0xa20   :  { %3250 = vmatpush1.bf16.msra.mxu0 %v6937_v46  ;;  %3291 = vmatpush1.bf16.msra.mxu1 %v6938_v56 }
 0xa21   :  { %3251 = vmatprep.subr.bf16.mxu0 %v6939_v36  ;;  %3292 = vmatprep.subr.bf16.mxu1 %v6940_v29 }
 0xa24   :  { %3252 = vmatpush1.bf16.msra.mxu0 %v6941_v1  ;;  %3293 = vmatpush1.bf16.msra.mxu1 %v5985_v61  ;;  %v3796_v61 = vld [vmem:[%s6168_s7 + $0x20] sm:$0xff]  }
 0xa25   :  { %3253 = vmatprep.subr.bf16.mxu0 %v5988_v19  ;;  %3294 = vmatprep.subr.bf16.mxu1 %v5991_v52  ;;  %v3793_v19 = vld [vmem:[%s6168_s7 + $0x8] sm:$0xff]   ;;  %v3794_v52 = vld [vmem:[%s6168_s7 + $0x10] sm:$0xff]  }
 0xa28   :  { %3254 = vmatpush1.bf16.msra.mxu0 %v5994_v33  ;;  %3295 = vmatpush1.bf16.msra.mxu1 %v5997_v16  ;;  %v3795_v33 = vld [vmem:[%s6168_s7 + $0x18] sm:$0xff]   ;;  %v3797_v16 = vld [vmem:[%s6168_s7 + $0x28] sm:$0xff]  }
 0xa29   :  { %3606 = vmatprep.subr.bf16.mxu0 %v4277_v7 }
 0xa2b   :  { %3272 = vmatmul.mubr.bf16.vlgmr.msra.gmra.mrb[108].mxu0 %v3046_v59  ;;  %3313 = vmatmul.mubr.bf16.vlgmr.msra.gmra.mrb[108].mxu1 %v3046_v59 }
 0xa2c   :  { %3607 = vmatpush3.bf16.msra.mxu0 %v3792_v14  ;;  %3622 = vmatprep.mubr.msk.bf16.mxu0 %vm4278_vm2, %v4277_v7 }
 0xa2d   :  { %3608 = vmatprep.subr.bf16.mxu0 %v4277_v7 }
 0xa30   :  { %3609 = vmatpush3.bf16.msra.mxu0 %v3793_v19 }
 0xa31   :  { %3610 = vmatprep.subr.bf16.mxu0 %v4277_v7 }
 0xa34   :  { %3611 = vmatpush3.bf16.msra.mxu0 %v3794_v52 }
 0xa35   :  { %3612 = vmatprep.subr.bf16.mxu0 %v4277_v7 }
 0xa38   :  { %3613 = vmatpush3.bf16.msra.mxu0 %v3795_v33 }
 0xa39   :  { %3614 = vmatprep.subr.bf16.mxu0 %v4277_v7 }
 0xa3c   :  { %3615 = vmatpush3.bf16.msra.mxu0 %v3796_v61 }
 0xa3d   :  { %3616 = vmatprep.subr.bf16.mxu0 %v4277_v7 }
 0xa40   :  { %3617 = vmatpush3.bf16.msra.mxu0 %v3797_v16 }
 0xa41   :  { %3618 = vmatprep.subr.bf16.mxu0 %v4277_v7 }
 0xa44   :  { %3619 = vmatpush3.bf16.msra.mxu0 %v3798_v32 }
 0xa45   :  { %3620 = vmatprep.subr.bf16.mxu0 %v4277_v7 }
 0xa48   :  { %3621 = vmatpush3.bf16.msra.mxu0 %v3799_v9 }
 0xade   :  { %v3191_v50 = vpop.f32.mrb[104].mxu0  ;;  %v3232_v28 = vpop.f32.mrb[104].mxu1 }
 0xadf   :  { %v3193_v26 = vpop.f32.mrb[105].mxu0  ;;  %v3234_v38 = vpop.f32.mrb[105].mxu1 }
 0xae0   :  { %v3195_v31 = vpop.f32.mrb[106].mxu0  ;;  %v3236_v42 = vpop.f32.mrb[106].mxu1 }
 0xae1   :  { %v3196_v2 = vpop.f32.mrb[107].mxu0  ;;  %v3237_v53 = vpop.f32.mrb[107].mxu1 }
 0xafe   :  { %v3273_v55 = vpop.f32.mrb[108].mxu0  ;;  %v3314_v15 = vpop.f32.mrb[108].mxu1 }
 0xaff   :  { %v3274_v23 = vadd.f32 %v3273_v55, %v3191_v50  ;;  %v3315_v49 = vadd.f32 %v3314_v15, %v3232_v28  ;;  %v3275_v21 = vpop.f32.mrb[109].mxu0  ;;  %v3316_v25 = vpop.f32.mrb[109].mxu1 }
 0xb00   :  { %v3276_v37 = vadd.f32 %v3275_v21, %v3193_v26  ;;  %v3317_v5 = vadd.f32 %v3316_v25, %v3234_v38  ;;  %v3277_v20 = vpop.f32.mrb[110].mxu0  ;;  %v3318_v57 = vpop.f32.mrb[110].mxu1 }
 0xb01   :  { %v3321_v51 = vadd.f32 %v3274_v23, %v6645_v24  ;;  %v3278_v35 = vpop.f32.mrb[111].mxu0  ;;  %v3319_v8 = vpop.f32.mrb[111].mxu1  ;;  %v3323_v17 = vadd.f32 %v3315_v49, %v6924_v45 }
 0xb02   :  { %v3322_v0 = vadd.f32 %v3276_v37, %v6646_v4  ;;  %v3324_v6 = vadd.f32 %v3317_v5, %v4956_v30 }
 0xb03   :  { %v3325_v18 = vmul.f32 0.5, %v3321_v51 }
 0xb04   :  { %v3329_v58 = vmul.f32 0.5, %v3322_v0  ;;  %v3334_v44 = vmul.f32 0.5, %v3324_v6 }
 0xb05   :  { %3950 = vtanh.f32 %v3325_v18 }
 0xb06   :  { %3952 = vtanh.f32 %v3329_v58 }
 0xb07   :  { %3954 = vtanh.f32 %v3323_v17 }
 0xb08   :  { %3956 = vtanh.f32 %v3334_v44 }
 0xb0f   :  { %v3951_v40 = vpop.eup %3950 }
 0xb10   :  { %v3953_v63 = vpop.eup %3952  ;;  %v3327_v48 = vmul.f32 0.5, %v3951_v40 }
 0xb11   :  { %v3331_v41 = vmul.f32 0.5, %v3953_v63  ;;  %v3955_v10 = vpop.eup %3954 }
 0xb12   :  { %v3328_v24 = vadd.f32 0.5, %v3327_v48  ;;  %v3957_v43 = vpop.eup %3956 }
 0xb13   :  { %v3332_v39 = vadd.f32 0.5, %v3331_v41  ;;  %v3336_v45 = vmul.f32 0.5, %v3957_v43 }
 0xb14   :  { %v3339_v27 = vmul.f32 %v3955_v10, %v3328_v24 }
 0xb15   :  { %v3338_v4 = vmul.f32 %v3332_v39, %v6076_v3  ;;  %v3337_v54 = vadd.f32 0.5, %v3336_v45 }
 0xb17   :  { %v3340_v11 = vadd.f32 %v3339_v27, %v3338_v4 }
 0xb19   :  { %3958 = vtanh.f32 %v3340_v11 }
 0xb23   :  { %v3959_v34 = vpop.eup %3958 }
 0xb24   :  { %v3342_v13 = vmul.f32 %v3959_v34, %v3337_v54 }
 0xb26   :  { %v3343_v30 = vpack.c.bf16 %v3342_v13, %v3342_v13 }
 0xb28   :  { %3623 = vmatmul.mubr.bf16.vlgmr.msra.gmra.mrb[112].mxu0 %v3343_v30 }
 0xbfb   :  { %v3449_v12 = vpop.f32.mrb[112].mxu0 }
 0xbfc   :  { %v3450_v46 = vadd.f32 %v3588_v22, %v3449_v12  ;;  %v3624_v56 = vpop.f32.mrb[113].mxu0 }
 0xbfd   :  { %v3452_v3 = vpop.f32.mrb[114].mxu0 }
 0xbfe   :  { %v3625_v36 = vpop.f32.mrb[115].mxu0  ;;  %3456 = vst.msk [vmem:[#allocation11] sm:$0xff] %vm3455_vm3, %v3450_v46 }
 0xbff   :  { %4251 = shalt.err (!%p4248_p8)
}
 0xc00   :  { %s4252_s8 = scalar_lea.hbm %s6170_s9, 128 }
 0xc01   :  { %p4253_p9 = scmp.ne.s32.totalorder %s6170_s9, %s4252_s8  ;;  %p4256_p10 = scmp.lt.u32.totalorder %s4252_s8, %s6170_s9 }
 0xc03   :  { %p4258_p11 = pnand %p4256_p10, %p4253_p9 }
 0xc05   :  { %4261 = shalt.err (!%p4258_p11)
}
 0xc06   :  { %3466 = dma.vmem_to_hbm [thread:$0]  %s3464_s25, 128, %s6170_s9, [#allocation5]  }
 0xc07   :  { %4268 = dma.done.wait [#allocation5], 128  }
 0xc08   :  { %4269 = vsyncadd [#allocation5], 4294967168 }
 0xc09   :  { %3470 = vsyncpa [#allocation4], 1 }
 0xc0a   :  { %3471 = vsyncpa [#allocation7], 1 }
 0xc0b   :  { %3472 = vsyncpa [#allocation10], 1 }
 0xc0c   :  { %3473 = vsyncpa [#allocation5], 1 }

</bundles_post_ra>
